<compile_context>
chip_gen: v7x
topology: tpu7x:2x2x1
jax: 0.10.0
libtpu: 0.0.40
codegen_flags: <defaults>
</compile_context>

<pallas_src>
import jax
import jax.numpy as jnp
import numpy as np
from jax import lax
from jax.experimental import pallas as pl
from jax.experimental.pallas import tpu as pltpu

# small test configuration (constructor args of the PyTorch module)
B = 2            # batch
S = 8            # seq_len
I = 8            # input_size
H = 32           # hidden_size
A = 64           # attn_dim (EntmaxAttention default)
H2 = H // 2
T = 14           # target_size
DS = 9           # static_feat_dim


def attention_lstm_kernel(xflat_ref, xstat_ref, w_ref, ws_ref, out_ref):
    f32 = jnp.float32
    H3 = 3 * H

    # ---- carve the 128-lane parameter slab (static ref slices, one-time loads)
    wih0 = w_ref[0:I, :]                 # [I, 4H]
    whh0 = w_ref[8:40, :]                # [H, 4H]
    wih1 = w_ref[40:72, :]               # [H, 4H]
    whh1 = w_ref[72:104, :]              # [H, 4H]
    b0 = w_ref[104:105, :]               # [1, 4H]
    b1 = w_ref[105:106, :]               # [1, 4H]
    bg = w_ref[106:107, 0:1]             # [1, 1]
    bf1 = w_ref[107:108, 0:H]            # [1, H]
    bf2 = w_ref[108:109, 0:H2]           # [1, H2]
    bf3 = w_ref[109:110, 0:T]            # [1, T]
    wg_row = w_ref[110:111, 0:2 * H]     # [1, 2H]
    wf1 = w_ref[112:153, 0:H]            # [H+DS, H]
    wf2 = w_ref[160:192, 0:H2]           # [H, H2]
    wf3 = w_ref[192:208, 0:T]            # [H2, T]

    # ---- hoisted layer-0 input projection + layer-0 bias: one MXU pass.
    # xflat is [S*B, I] time-major; rows t*B:(t+1)*B are step t's batch.
    xproj = jnp.dot(xflat_ref[...], wih0, preferred_element_type=f32) + b0  # [S*B, 4H]

    b1b = jnp.broadcast_to(b1, (B, 4 * H))   # hoisted broadcast

    zeros_bh = jnp.zeros((B, H), f32)
    h0 = zeros_bh
    c0 = zeros_bh
    h1 = zeros_bh
    c1 = zeros_bh
    h1_list = []

    # fully unrolled recurrence (S static). Gate column order is (f, i, o, g).
    for t in range(S):
        # layer-1 recurrent matmul depends only on h1_{t-1}: issue it first so
        # it overlaps with layer-0's EUP work (different VLIW slots).
        r1 = jnp.dot(h1, whh1, preferred_element_type=f32) + b1b         # [B, 4H]

        # ----- layer 0 cell (input projection + bias already in xproj) -----
        g0 = xproj[t * B:(t + 1) * B, :] + jnp.dot(
            h0, whh0, preferred_element_type=f32)                        # [B, 4H]
        s0 = jax.nn.sigmoid(g0[:, 0:H3])       # f | i | o
        gt0 = jnp.tanh(g0[:, H3:4 * H])        # g
        c0 = s0[:, 0:H] * c0 + s0[:, H:2 * H] * gt0
        h0 = s0[:, 2 * H:H3] * jnp.tanh(c0)
        # inter-layer LSTM dropout is train-only -> no-op at inference.

        # ----- layer 1 cell -----
        g1 = r1 + jnp.dot(h0, wih1, preferred_element_type=f32)          # [B, 4H]
        s1 = jax.nn.sigmoid(g1[:, 0:H3])
        gt1 = jnp.tanh(g1[:, H3:4 * H])
        c1 = s1[:, 0:H] * c1 + s1[:, H:2 * H] * gt1
        h1 = s1[:, 2 * H:H3] * jnp.tanh(c1)
        h1_list.append(h1)

    # ---- attention scorer: one lane-dense matmul pair vs block-diag weights ----
    h1cat = jnp.concatenate(h1_list, axis=1)                  # [B, S*H]
    wa1bd = ws_ref[0:S * H, :]                                # [S*H, S*A]
    ba1t = ws_ref[S * H:S * H + 1, :]                         # [1, S*A]
    wa2bdT = ws_ref[264:272, :]                               # [S, S*A]
    a = jnp.tanh(jnp.dot(h1cat, wa1bd, preferred_element_type=f32) + ba1t)  # [B, S*A]
    scores = lax.dot_general(a, wa2bdT, (((1,), (1,)), ((), ())),
                             preferred_element_type=f32)      # [B, S]
    # ba2 omitted: entmax is shift-invariant, so a constant score offset cannot
    # change the attention weights (the only consumer of the scores).

    # ---- exact Entmax-1.5 over the sequence axis (rank one-hots; S static) ----
    z = (scores - jnp.max(scores, axis=-1, keepdims=True)) * 0.5
    zi = z[:, :, None]                                        # [B, S, 1]
    zj = z[:, None, :]                                        # [B, 1, S]
    idx_k = lax.broadcasted_iota(jnp.int32, (B, S, S), 1)     # shared i/k iota
    idx_j = lax.broadcasted_iota(jnp.int32, (B, S, S), 2)     # shared j iota
    gt = (zj > zi) | ((zj == zi) & (idx_j < idx_k))
    rank = jnp.sum(gt.astype(jnp.int32), axis=2)              # descending rank [B, S]
    onehot = (rank[:, None, :] == idx_k).astype(f32)          # [B, k, i]
    z_srt = jnp.sum(onehot * z[:, None, :], axis=2)           # sorted desc [B, S]
    csmask = (idx_j <= idx_k).astype(f32)
    cs = jnp.sum(csmask * z_srt[:, None, :], axis=2)          # cumsum       [B, S]
    cs2 = jnp.sum(csmask * (z_srt * z_srt)[:, None, :], axis=2)  # cumsum sq  [B, S]
    k_bs = lax.broadcasted_iota(jnp.int32, (B, S), 1)         # shared 2-D k iota
    rho = (k_bs + 1).astype(f32)
    mean = cs / rho
    ss = rho * (cs2 / rho - mean * mean)
    tau = mean - jnp.sqrt(jnp.maximum((1.0 - ss) / rho, 0.0))
    supp = jnp.sum((tau <= z_srt).astype(jnp.int32), axis=-1, keepdims=True)  # [B, 1]
    tau_star = jnp.sum(tau * (k_bs == (supp - 1)).astype(f32),
                       axis=-1, keepdims=True)                # [B, 1]
    w = jnp.maximum(z - tau_star, 0.0)
    w = w * w                                                 # attention weights [B, S]

    # ---- context, gate, MLP head ----
    context = jnp.zeros((B, H), f32)
    for t in range(S):
        context = context + w[:, t:t + 1] * h1_list[t]        # [B, H]
    last_h = h1_list[-1]                                      # lstm_out[:, -1, :]

    combined = jnp.concatenate([context, last_h], axis=1)     # [B, 2H]
    # N=1 gate matmul replaced by a VPU multiply + lane reduction.
    alpha = jax.nn.sigmoid(
        jnp.sum(combined * wg_row, axis=-1, keepdims=True) + bg)          # [B, 1]
    fused = alpha * context + (1.0 - alpha) * last_h          # [B, H]

    fws = jnp.concatenate([fused, xstat_ref[...]], axis=1)    # [B, H+DS]
    x1 = jax.nn.relu(jnp.dot(fws, wf1, preferred_element_type=f32) + bf1)
    x2 = jax.nn.relu(jnp.dot(x1, wf2, preferred_element_type=f32) + bf2)
    y = jnp.dot(x2, wf3, preferred_element_type=f32) + bf3    # [B, T]

    # ---- single lane-padded output slab: preds at lanes 0:T, weights at 16:16+S
    out_ref[...] = jnp.concatenate(
        [y, jnp.zeros((B, 16 - T), f32), w, jnp.zeros((B, 128 - 16 - S), f32)],
        axis=1)


# ---------------- wrapper: parameter packing + pallas_call ----------------
def _reorder_gate_cols(wt):
    """Reorder the 4H gate axis from PyTorch (i, f, g, o) to kernel (f, i, o, g)."""
    return jnp.concatenate(
        [wt[:, H:2 * H], wt[:, 0:H], wt[:, 3 * H:4 * H], wt[:, 2 * H:3 * H]], axis=1)


def _pad2(x, rows, cols):
    return jnp.pad(x, ((0, rows - x.shape[0]), (0, cols - x.shape[1])))


def pack_params(p):
    """Pack all weights/biases into two VMEM slabs (do once per parameter set)."""
    f32 = jnp.float32
    # --- 128-lane slab: LSTM weights/biases + gate + MLP head ---
    rows = [
        _reorder_gate_cols(p['wih0'].T.astype(f32)),                  # rows   0:8
        _reorder_gate_cols(p['whh0'].T.astype(f32)),                  # rows   8:40
        _reorder_gate_cols(p['wih1'].T.astype(f32)),                  # rows  40:72
        _reorder_gate_cols(p['whh1'].T.astype(f32)),                  # rows  72:104
        _reorder_gate_cols(p['b0'].reshape(1, 4 * H).astype(f32)),    # row  104
        _reorder_gate_cols(p['b1'].reshape(1, 4 * H).astype(f32)),    # row  105
        _pad2(p['bg'].reshape(1, 1).astype(f32), 1, 4 * H),           # row  106
        _pad2(p['bf1'].reshape(1, H).astype(f32), 1, 4 * H),          # row  107
        _pad2(p['bf2'].reshape(1, H2).astype(f32), 1, 4 * H),         # row  108
        _pad2(p['bf3'].reshape(1, T).astype(f32), 1, 4 * H),          # row  109
        _pad2(p['wg'].reshape(1, 2 * H).astype(f32), 1, 4 * H),       # row  110
        jnp.zeros((1, 4 * H), f32),                                   # row  111
        _pad2(p['wf1'].T.astype(f32), 48, 4 * H),                     # rows 112:160
        _pad2(p['wf2'].T.astype(f32), 32, 4 * H),                     # rows 160:192
        _pad2(p['wf3'].T.astype(f32), 16, 4 * H),                     # rows 192:208
    ]
    slab_w = jnp.concatenate(rows, axis=0)                            # [208, 128]

    # --- 512-lane slab: block-diagonal Entmax-attention scorer ---
    eye_s = jnp.eye(S, dtype=f32)
    wa1bd = jnp.kron(eye_s, p['wa1'].T.astype(f32))                   # [S*H, S*A]
    ba1t = jnp.tile(p['ba1'].reshape(1, A).astype(f32), (1, S))       # [1, S*A]
    wa2bdT = jnp.kron(eye_s, p['wa2'].reshape(1, A).astype(f32))      # [S, S*A]
    slab_s = jnp.concatenate(
        [wa1bd, ba1t, jnp.zeros((7, S * A), f32), wa2bdT], axis=0)    # [272, 512]
    # ba2 is intentionally dropped (shift-invariance of entmax).
    return slab_w, slab_s


@jax.jit
def attention_lstm_forward(x_seq, x_static, p):
    """x_seq: [B, S, I], x_static: [B, DS] -> (out [B, T], attn_weights [B, S])."""
    slab_w, slab_s = pack_params(p)   # in production, pack once and reuse
    # time-major, flattened to [S*B, I] so the layer-0 input projection is one matmul
    x_flat = jnp.transpose(x_seq, (1, 0, 2)).reshape(S * B, I).astype(jnp.float32)

    vmem = pl.BlockSpec(memory_space=pltpu.MemorySpace.VMEM)
    packed = pl.pallas_call(
        attention_lstm_kernel,
        out_shape=jax.ShapeDtypeStruct((B, 128), jnp.float32),
        in_specs=[vmem, vmem, vmem, vmem],
        out_specs=vmem,
    )(x_flat, x_static.astype(jnp.float32), slab_w, slab_s)
    return packed[:, 0:T], packed[:, 16:16 + S]


# ---------------- pure-JAX reference (for validation only) ----------------
def entmax15_ref(z, axis=-1):
    z = z - jnp.max(z, axis=axis, keepdims=True)
    z = z / 2.0
    z_srt = -jnp.sort(-z, axis=axis)
    rho = jnp.arange(1, z.shape[axis] + 1, dtype=z.dtype)
    cs = jnp.cumsum(z_srt, axis=axis)
    cs2 = jnp.cumsum(z_srt * z_srt, axis=axis)
    mean = cs / rho
    mean_sq = cs2 / rho
    ss = rho * (mean_sq - mean * mean)
    delta = (1.0 - ss) / rho
    tau = mean - jnp.sqrt(jnp.maximum(delta, 0.0))
    supp = jnp.sum((tau <= z_srt).astype(jnp.int32), axis=axis, keepdims=True)
    tau_star = jnp.take_along_axis(tau, supp - 1, axis=axis)
    y = jnp.maximum(z - tau_star, 0.0)
    return y * y


def reference_forward(x_seq, x_static, p):
    def lstm_layer(x, wih, whh, b):
        def cell(carry, x_t):
            h, c = carry
            g = x_t @ wih.T + h @ whh.T + b
            i, f, gg, o = jnp.split(g, 4, axis=-1)
            i = jax.nn.sigmoid(i); f = jax.nn.sigmoid(f)
            gg = jnp.tanh(gg); o = jax.nn.sigmoid(o)
            c = f * c + i * gg
            h = o * jnp.tanh(c)
            return (h, c), h
        h0 = jnp.zeros((x.shape[0], wih.shape[0] // 4), x.dtype)
        c0 = jnp.zeros_like(h0)
        _, hs = lax.scan(cell, (h0, c0), jnp.swapaxes(x, 0, 1))
        return jnp.swapaxes(hs, 0, 1)

    l1 = lstm_layer(x_seq, p['wih0'], p['whh0'], p['b0'])
    l2 = lstm_layer(l1, p['wih1'], p['whh1'], p['b1'])
    scores = jnp.squeeze(jnp.tanh(l2 @ p['wa1'].T + p['ba1']) @ p['wa2'].T + p['ba2'], -1)
    w = entmax15_ref(scores, axis=-1)
    context = jnp.sum(l2 * w[:, :, None], axis=1)
    last_h = l2[:, -1, :]
    combined = jnp.concatenate([context, last_h], axis=1)
    alpha = jax.nn.sigmoid(combined @ p['wg'].T + p['bg'])
    fused = alpha * context + (1.0 - alpha) * last_h
    fws = jnp.concatenate([fused, x_static], axis=1)
    x1 = jax.nn.relu(fws @ p['wf1'].T + p['bf1'])
    x2 = jax.nn.relu(x1 @ p['wf2'].T + p['bf2'])
    out = x2 @ p['wf3'].T + p['bf3']
    return out, w


def make_params(key):
    keys = iter(jax.random.split(key, 20))

    def u(shape, scale=0.2):
        return jax.random.uniform(next(keys), shape, jnp.float32, -scale, scale)

    return dict(
        wih0=u((4 * H, I)), whh0=u((4 * H, H)), b0=u((4 * H,)),
        wih1=u((4 * H, H)), whh1=u((4 * H, H)), b1=u((4 * H,)),
        wa1=u((A, H)), ba1=u((A,)), wa2=u((1, A)), ba2=u((1,)),
        wg=u((1, 2 * H)), bg=u((1,)),
        wf1=u((H, H + DS)), bf1=u((H,)),
        wf2=u((H2, H)), bf2=u((H2,)),
        wf3=u((T, H2)), bf3=u((T,)),
    )


if __name__ == "__main__":
    key = jax.random.PRNGKey(0)
    kx, ks, kp = jax.random.split(key, 3)
    x_seq = jax.random.normal(kx, (B, S, I), jnp.float32)
    x_static = jax.random.normal(ks, (B, DS), jnp.float32)
    params = make_params(kp)

    out, attn_w = attention_lstm_forward(x_seq, x_static, params)
    out = jax.block_until_ready(out)
    attn_w = jax.block_until_ready(attn_w)

    assert out.shape == (B, T) and attn_w.shape == (B, S)
    assert bool(jnp.all(jnp.isfinite(out))) and bool(jnp.all(jnp.isfinite(attn_w)))

    ref_out, ref_w = reference_forward(x_seq, x_static, params)
    np.testing.assert_allclose(np.asarray(out), np.asarray(ref_out), rtol=2e-3, atol=2e-3)
    np.testing.assert_allclose(np.asarray(attn_w), np.asarray(ref_w), rtol=2e-3, atol=2e-3)

    print("KERNEL_OK")
</pallas_src>

<mosaic_0001>
module attributes {stable_mosaic.version = 11 : i64} {
  func.func @attention_lstm_kernel(%arg0: memref<16x8xf32, #tpu.memory_space<vmem>>, %arg1: memref<2x9xf32, #tpu.memory_space<vmem>>, %arg2: memref<208x128xf32, #tpu.memory_space<vmem>>, %arg3: memref<272x512xf32, #tpu.memory_space<vmem>>, %arg4: memref<2x128xf32, #tpu.memory_space<vmem>>) attributes {dimension_semantics = [], scalar_prefetch = 0 : i64, scratch_operands = 0 : i64, tpu.core_type = #tpu.core_type<tc>} {
    %c0 = arith.constant 0 : index
    %c0_0 = arith.constant 0 : index
    %0 = vector.load %arg2[%c0, %c0_0] : memref<208x128xf32, #tpu.memory_space<vmem>>, vector<8x128xf32>
    %c8 = arith.constant 8 : index
    %c0_1 = arith.constant 0 : index
    %1 = vector.load %arg2[%c8, %c0_1] : memref<208x128xf32, #tpu.memory_space<vmem>>, vector<32x128xf32>
    %c40 = arith.constant 40 : index
    %c0_2 = arith.constant 0 : index
    %2 = vector.load %arg2[%c40, %c0_2] : memref<208x128xf32, #tpu.memory_space<vmem>>, vector<32x128xf32>
    %c72 = arith.constant 72 : index
    %c0_3 = arith.constant 0 : index
    %3 = vector.load %arg2[%c72, %c0_3] : memref<208x128xf32, #tpu.memory_space<vmem>>, vector<32x128xf32>
    %c104 = arith.constant 104 : index
    %c0_4 = arith.constant 0 : index
    %4 = vector.load %arg2[%c104, %c0_4] : memref<208x128xf32, #tpu.memory_space<vmem>>, vector<1x128xf32>
    %c105 = arith.constant 105 : index
    %c0_5 = arith.constant 0 : index
    %5 = vector.load %arg2[%c105, %c0_5] : memref<208x128xf32, #tpu.memory_space<vmem>>, vector<1x128xf32>
    %c106 = arith.constant 106 : index
    %c0_6 = arith.constant 0 : index
    %6 = vector.load %arg2[%c106, %c0_6] : memref<208x128xf32, #tpu.memory_space<vmem>>, vector<1x1xf32>
    %c107 = arith.constant 107 : index
    %c0_7 = arith.constant 0 : index
    %7 = vector.load %arg2[%c107, %c0_7] : memref<208x128xf32, #tpu.memory_space<vmem>>, vector<1x32xf32>
    %c108 = arith.constant 108 : index
    %c0_8 = arith.constant 0 : index
    %8 = vector.load %arg2[%c108, %c0_8] : memref<208x128xf32, #tpu.memory_space<vmem>>, vector<1x16xf32>
    %c109 = arith.constant 109 : index
    %c0_9 = arith.constant 0 : index
    %9 = vector.load %arg2[%c109, %c0_9] : memref<208x128xf32, #tpu.memory_space<vmem>>, vector<1x14xf32>
    %c110 = arith.constant 110 : index
    %c0_10 = arith.constant 0 : index
    %10 = vector.load %arg2[%c110, %c0_10] : memref<208x128xf32, #tpu.memory_space<vmem>>, vector<1x64xf32>
    %c112 = arith.constant 112 : index
    %c0_11 = arith.constant 0 : index
    %11 = vector.load %arg2[%c112, %c0_11] : memref<208x128xf32, #tpu.memory_space<vmem>>, vector<41x32xf32>
    %c160 = arith.constant 160 : index
    %c0_12 = arith.constant 0 : index
    %12 = vector.load %arg2[%c160, %c0_12] : memref<208x128xf32, #tpu.memory_space<vmem>>, vector<32x16xf32>
    %c192 = arith.constant 192 : index
    %c0_13 = arith.constant 0 : index
    %13 = vector.load %arg2[%c192, %c0_13] : memref<208x128xf32, #tpu.memory_space<vmem>>, vector<16x14xf32>
    %c0_14 = arith.constant 0 : index
    %c0_15 = arith.constant 0 : index
    %14 = vector.load %arg0[%c0_14, %c0_15] : memref<16x8xf32, #tpu.memory_space<vmem>>, vector<16x8xf32>
    %cst = arith.constant dense<0.000000e+00> : vector<16x128xf32>
    %15 = tpu.matmul %14, %0, %cst {dimension_numbers = #tpu.dot_dimension_numbers<[1], [0], [0], [1], [0, 0, 1, 1], [], []>} : vector<16x8xf32>, vector<8x128xf32>, vector<16x128xf32> -> vector<16x128xf32>
    %16 = vector.broadcast %4 : vector<1x128xf32> to vector<16x128xf32>
    %17 = arith.addf %15, %16 : vector<16x128xf32>
    %18 = vector.shape_cast %5 : vector<1x128xf32> to vector<1x128xf32>
    %19 = vector.broadcast %18 : vector<1x128xf32> to vector<2x128xf32>
    %cst_16 = arith.constant 0.000000e+00 : f32
    %20 = vector.broadcast %cst_16 : f32 to vector<2x32xf32>
    %cst_17 = arith.constant dense<0.000000e+00> : vector<2x128xf32>
    %21 = tpu.matmul %20, %3, %cst_17 {dimension_numbers = #tpu.dot_dimension_numbers<[1], [0], [0], [1], [0, 0, 1, 1], [], []>} : vector<2x32xf32>, vector<32x128xf32>, vector<2x128xf32> -> vector<2x128xf32>
    %22 = arith.addf %21, %19 : vector<2x128xf32>
    %23 = vector.extract_strided_slice %17 {offsets = [0, 0], sizes = [2, 128], strides = [1, 1]} : vector<16x128xf32> to vector<2x128xf32>
    %cst_18 = arith.constant dense<0.000000e+00> : vector<2x128xf32>
    %24 = tpu.matmul %20, %1, %cst_18 {dimension_numbers = #tpu.dot_dimension_numbers<[1], [0], [0], [1], [0, 0, 1, 1], [], []>} : vector<2x32xf32>, vector<32x128xf32>, vector<2x128xf32> -> vector<2x128xf32>
    %25 = arith.addf %23, %24 : vector<2x128xf32>
    %26 = vector.extract_strided_slice %25 {offsets = [0, 0], sizes = [2, 96], strides = [1, 1]} : vector<2x128xf32> to vector<2x96xf32>
    %27 = arith.negf %26 : vector<2x96xf32>
    %28 = math.exp %27 : vector<2x96xf32>
    %cst_19 = arith.constant 1.000000e+00 : f32
    %29 = vector.broadcast %cst_19 : f32 to vector<2x96xf32>
    %30 = arith.addf %29, %28 : vector<2x96xf32>
    %31 = arith.divf %29, %30 : vector<2x96xf32>
    %32 = vector.extract_strided_slice %25 {offsets = [0, 96], sizes = [2, 32], strides = [1, 1]} : vector<2x128xf32> to vector<2x32xf32>
    %33 = math.tanh %32 : vector<2x32xf32>
    %34 = vector.extract_strided_slice %31 {offsets = [0, 0], sizes = [2, 32], strides = [1, 1]} : vector<2x96xf32> to vector<2x32xf32>
    %35 = arith.mulf %34, %20 : vector<2x32xf32>
    %36 = vector.extract_strided_slice %31 {offsets = [0, 32], sizes = [2, 32], strides = [1, 1]} : vector<2x96xf32> to vector<2x32xf32>
    %37 = arith.mulf %36, %33 : vector<2x32xf32>
    %38 = arith.addf %35, %37 : vector<2x32xf32>
    %39 = vector.extract_strided_slice %31 {offsets = [0, 64], sizes = [2, 32], strides = [1, 1]} : vector<2x96xf32> to vector<2x32xf32>
    %40 = math.tanh %38 : vector<2x32xf32>
    %41 = arith.mulf %39, %40 : vector<2x32xf32>
    %cst_20 = arith.constant dense<0.000000e+00> : vector<2x128xf32>
    %42 = tpu.matmul %41, %2, %cst_20 {dimension_numbers = #tpu.dot_dimension_numbers<[1], [0], [0], [1], [0, 0, 1, 1], [], []>} : vector<2x32xf32>, vector<32x128xf32>, vector<2x128xf32> -> vector<2x128xf32>
    %43 = arith.addf %22, %42 : vector<2x128xf32>
    %44 = vector.extract_strided_slice %43 {offsets = [0, 0], sizes = [2, 96], strides = [1, 1]} : vector<2x128xf32> to vector<2x96xf32>
    %45 = arith.negf %44 : vector<2x96xf32>
    %46 = math.exp %45 : vector<2x96xf32>
    %cst_21 = arith.constant 1.000000e+00 : f32
    %47 = vector.broadcast %cst_21 : f32 to vector<2x96xf32>
    %48 = arith.addf %47, %46 : vector<2x96xf32>
    %49 = arith.divf %47, %48 : vector<2x96xf32>
    %50 = vector.extract_strided_slice %43 {offsets = [0, 96], sizes = [2, 32], strides = [1, 1]} : vector<2x128xf32> to vector<2x32xf32>
    %51 = math.tanh %50 : vector<2x32xf32>
    %52 = vector.extract_strided_slice %49 {offsets = [0, 0], sizes = [2, 32], strides = [1, 1]} : vector<2x96xf32> to vector<2x32xf32>
    %53 = arith.mulf %52, %20 : vector<2x32xf32>
    %54 = vector.extract_strided_slice %49 {offsets = [0, 32], sizes = [2, 32], strides = [1, 1]} : vector<2x96xf32> to vector<2x32xf32>
    %55 = arith.mulf %54, %51 : vector<2x32xf32>
    %56 = arith.addf %53, %55 : vector<2x32xf32>
    %57 = vector.extract_strided_slice %49 {offsets = [0, 64], sizes = [2, 32], strides = [1, 1]} : vector<2x96xf32> to vector<2x32xf32>
    %58 = math.tanh %56 : vector<2x32xf32>
    %59 = arith.mulf %57, %58 : vector<2x32xf32>
    %cst_22 = arith.constant dense<0.000000e+00> : vector<2x128xf32>
    %60 = tpu.matmul %59, %3, %cst_22 {dimension_numbers = #tpu.dot_dimension_numbers<[1], [0], [0], [1], [0, 0, 1, 1], [], []>} : vector<2x32xf32>, vector<32x128xf32>, vector<2x128xf32> -> vector<2x128xf32>
    %61 = arith.addf %60, %19 : vector<2x128xf32>
    %62 = vector.extract_strided_slice %17 {offsets = [2, 0], sizes = [2, 128], strides = [1, 1]} : vector<16x128xf32> to vector<2x128xf32>
    %cst_23 = arith.constant dense<0.000000e+00> : vector<2x128xf32>
    %63 = tpu.matmul %41, %1, %cst_23 {dimension_numbers = #tpu.dot_dimension_numbers<[1], [0], [0], [1], [0, 0, 1, 1], [], []>} : vector<2x32xf32>, vector<32x128xf32>, vector<2x128xf32> -> vector<2x128xf32>
    %64 = arith.addf %62, %63 : vector<2x128xf32>
    %65 = vector.extract_strided_slice %64 {offsets = [0, 0], sizes = [2, 96], strides = [1, 1]} : vector<2x128xf32> to vector<2x96xf32>
    %66 = arith.negf %65 : vector<2x96xf32>
    %67 = math.exp %66 : vector<2x96xf32>
    %cst_24 = arith.constant 1.000000e+00 : f32
    %68 = vector.broadcast %cst_24 : f32 to vector<2x96xf32>
    %69 = arith.addf %68, %67 : vector<2x96xf32>
    %70 = arith.divf %68, %69 : vector<2x96xf32>
    %71 = vector.extract_strided_slice %64 {offsets = [0, 96], sizes = [2, 32], strides = [1, 1]} : vector<2x128xf32> to vector<2x32xf32>
    %72 = math.tanh %71 : vector<2x32xf32>
    %73 = vector.extract_strided_slice %70 {offsets = [0, 0], sizes = [2, 32], strides = [1, 1]} : vector<2x96xf32> to vector<2x32xf32>
    %74 = arith.mulf %73, %38 : vector<2x32xf32>
    %75 = vector.extract_strided_slice %70 {offsets = [0, 32], sizes = [2, 32], strides = [1, 1]} : vector<2x96xf32> to vector<2x32xf32>
    %76 = arith.mulf %75, %72 : vector<2x32xf32>
    %77 = arith.addf %74, %76 : vector<2x32xf32>
    %78 = vector.extract_strided_slice %70 {offsets = [0, 64], sizes = [2, 32], strides = [1, 1]} : vector<2x96xf32> to vector<2x32xf32>
    %79 = math.tanh %77 : vector<2x32xf32>
    %80 = arith.mulf %78, %79 : vector<2x32xf32>
    %cst_25 = arith.constant dense<0.000000e+00> : vector<2x128xf32>
    %81 = tpu.matmul %80, %2, %cst_25 {dimension_numbers = #tpu.dot_dimension_numbers<[1], [0], [0], [1], [0, 0, 1, 1], [], []>} : vector<2x32xf32>, vector<32x128xf32>, vector<2x128xf32> -> vector<2x128xf32>
    %82 = arith.addf %61, %81 : vector<2x128xf32>
    %83 = vector.extract_strided_slice %82 {offsets = [0, 0], sizes = [2, 96], strides = [1, 1]} : vector<2x128xf32> to vector<2x96xf32>
    %84 = arith.negf %83 : vector<2x96xf32>
    %85 = math.exp %84 : vector<2x96xf32>
    %cst_26 = arith.constant 1.000000e+00 : f32
    %86 = vector.broadcast %cst_26 : f32 to vector<2x96xf32>
    %87 = arith.addf %86, %85 : vector<2x96xf32>
    %88 = arith.divf %86, %87 : vector<2x96xf32>
    %89 = vector.extract_strided_slice %82 {offsets = [0, 96], sizes = [2, 32], strides = [1, 1]} : vector<2x128xf32> to vector<2x32xf32>
    %90 = math.tanh %89 : vector<2x32xf32>
    %91 = vector.extract_strided_slice %88 {offsets = [0, 0], sizes = [2, 32], strides = [1, 1]} : vector<2x96xf32> to vector<2x32xf32>
    %92 = arith.mulf %91, %56 : vector<2x32xf32>
    %93 = vector.extract_strided_slice %88 {offsets = [0, 32], sizes = [2, 32], strides = [1, 1]} : vector<2x96xf32> to vector<2x32xf32>
    %94 = arith.mulf %93, %90 : vector<2x32xf32>
    %95 = arith.addf %92, %94 : vector<2x32xf32>
    %96 = vector.extract_strided_slice %88 {offsets = [0, 64], sizes = [2, 32], strides = [1, 1]} : vector<2x96xf32> to vector<2x32xf32>
    %97 = math.tanh %95 : vector<2x32xf32>
    %98 = arith.mulf %96, %97 : vector<2x32xf32>
    %cst_27 = arith.constant dense<0.000000e+00> : vector<2x128xf32>
    %99 = tpu.matmul %98, %3, %cst_27 {dimension_numbers = #tpu.dot_dimension_numbers<[1], [0], [0], [1], [0, 0, 1, 1], [], []>} : vector<2x32xf32>, vector<32x128xf32>, vector<2x128xf32> -> vector<2x128xf32>
    %100 = arith.addf %99, %19 : vector<2x128xf32>
    %101 = vector.extract_strided_slice %17 {offsets = [4, 0], sizes = [2, 128], strides = [1, 1]} : vector<16x128xf32> to vector<2x128xf32>
    %cst_28 = arith.constant dense<0.000000e+00> : vector<2x128xf32>
    %102 = tpu.matmul %80, %1, %cst_28 {dimension_numbers = #tpu.dot_dimension_numbers<[1], [0], [0], [1], [0, 0, 1, 1], [], []>} : vector<2x32xf32>, vector<32x128xf32>, vector<2x128xf32> -> vector<2x128xf32>
    %103 = arith.addf %101, %102 : vector<2x128xf32>
    %104 = vector.extract_strided_slice %103 {offsets = [0, 0], sizes = [2, 96], strides = [1, 1]} : vector<2x128xf32> to vector<2x96xf32>
    %105 = arith.negf %104 : vector<2x96xf32>
    %106 = math.exp %105 : vector<2x96xf32>
    %cst_29 = arith.constant 1.000000e+00 : f32
    %107 = vector.broadcast %cst_29 : f32 to vector<2x96xf32>
    %108 = arith.addf %107, %106 : vector<2x96xf32>
    %109 = arith.divf %107, %108 : vector<2x96xf32>
    %110 = vector.extract_strided_slice %103 {offsets = [0, 96], sizes = [2, 32], strides = [1, 1]} : vector<2x128xf32> to vector<2x32xf32>
    %111 = math.tanh %110 : vector<2x32xf32>
    %112 = vector.extract_strided_slice %109 {offsets = [0, 0], sizes = [2, 32], strides = [1, 1]} : vector<2x96xf32> to vector<2x32xf32>
    %113 = arith.mulf %112, %77 : vector<2x32xf32>
    %114 = vector.extract_strided_slice %109 {offsets = [0, 32], sizes = [2, 32], strides = [1, 1]} : vector<2x96xf32> to vector<2x32xf32>
    %115 = arith.mulf %114, %111 : vector<2x32xf32>
    %116 = arith.addf %113, %115 : vector<2x32xf32>
    %117 = vector.extract_strided_slice %109 {offsets = [0, 64], sizes = [2, 32], strides = [1, 1]} : vector<2x96xf32> to vector<2x32xf32>
    %118 = math.tanh %116 : vector<2x32xf32>
    %119 = arith.mulf %117, %118 : vector<2x32xf32>
    %cst_30 = arith.constant dense<0.000000e+00> : vector<2x128xf32>
    %120 = tpu.matmul %119, %2, %cst_30 {dimension_numbers = #tpu.dot_dimension_numbers<[1], [0], [0], [1], [0, 0, 1, 1], [], []>} : vector<2x32xf32>, vector<32x128xf32>, vector<2x128xf32> -> vector<2x128xf32>
    %121 = arith.addf %100, %120 : vector<2x128xf32>
    %122 = vector.extract_strided_slice %121 {offsets = [0, 0], sizes = [2, 96], strides = [1, 1]} : vector<2x128xf32> to vector<2x96xf32>
    %123 = arith.negf %122 : vector<2x96xf32>
    %124 = math.exp %123 : vector<2x96xf32>
    %cst_31 = arith.constant 1.000000e+00 : f32
    %125 = vector.broadcast %cst_31 : f32 to vector<2x96xf32>
    %126 = arith.addf %125, %124 : vector<2x96xf32>
    %127 = arith.divf %125, %126 : vector<2x96xf32>
    %128 = vector.extract_strided_slice %121 {offsets = [0, 96], sizes = [2, 32], strides = [1, 1]} : vector<2x128xf32> to vector<2x32xf32>
    %129 = math.tanh %128 : vector<2x32xf32>
    %130 = vector.extract_strided_slice %127 {offsets = [0, 0], sizes = [2, 32], strides = [1, 1]} : vector<2x96xf32> to vector<2x32xf32>
    %131 = arith.mulf %130, %95 : vector<2x32xf32>
    %132 = vector.extract_strided_slice %127 {offsets = [0, 32], sizes = [2, 32], strides = [1, 1]} : vector<2x96xf32> to vector<2x32xf32>
    %133 = arith.mulf %132, %129 : vector<2x32xf32>
    %134 = arith.addf %131, %133 : vector<2x32xf32>
    %135 = vector.extract_strided_slice %127 {offsets = [0, 64], sizes = [2, 32], strides = [1, 1]} : vector<2x96xf32> to vector<2x32xf32>
    %136 = math.tanh %134 : vector<2x32xf32>
    %137 = arith.mulf %135, %136 : vector<2x32xf32>
    %cst_32 = arith.constant dense<0.000000e+00> : vector<2x128xf32>
    %138 = tpu.matmul %137, %3, %cst_32 {dimension_numbers = #tpu.dot_dimension_numbers<[1], [0], [0], [1], [0, 0, 1, 1], [], []>} : vector<2x32xf32>, vector<32x128xf32>, vector<2x128xf32> -> vector<2x128xf32>
    %139 = arith.addf %138, %19 : vector<2x128xf32>
    %140 = vector.extract_strided_slice %17 {offsets = [6, 0], sizes = [2, 128], strides = [1, 1]} : vector<16x128xf32> to vector<2x128xf32>
    %cst_33 = arith.constant dense<0.000000e+00> : vector<2x128xf32>
    %141 = tpu.matmul %119, %1, %cst_33 {dimension_numbers = #tpu.dot_dimension_numbers<[1], [0], [0], [1], [0, 0, 1, 1], [], []>} : vector<2x32xf32>, vector<32x128xf32>, vector<2x128xf32> -> vector<2x128xf32>
    %142 = arith.addf %140, %141 : vector<2x128xf32>
    %143 = vector.extract_strided_slice %142 {offsets = [0, 0], sizes = [2, 96], strides = [1, 1]} : vector<2x128xf32> to vector<2x96xf32>
    %144 = arith.negf %143 : vector<2x96xf32>
    %145 = math.exp %144 : vector<2x96xf32>
    %cst_34 = arith.constant 1.000000e+00 : f32
    %146 = vector.broadcast %cst_34 : f32 to vector<2x96xf32>
    %147 = arith.addf %146, %145 : vector<2x96xf32>
    %148 = arith.divf %146, %147 : vector<2x96xf32>
    %149 = vector.extract_strided_slice %142 {offsets = [0, 96], sizes = [2, 32], strides = [1, 1]} : vector<2x128xf32> to vector<2x32xf32>
    %150 = math.tanh %149 : vector<2x32xf32>
    %151 = vector.extract_strided_slice %148 {offsets = [0, 0], sizes = [2, 32], strides = [1, 1]} : vector<2x96xf32> to vector<2x32xf32>
    %152 = arith.mulf %151, %116 : vector<2x32xf32>
    %153 = vector.extract_strided_slice %148 {offsets = [0, 32], sizes = [2, 32], strides = [1, 1]} : vector<2x96xf32> to vector<2x32xf32>
    %154 = arith.mulf %153, %150 : vector<2x32xf32>
    %155 = arith.addf %152, %154 : vector<2x32xf32>
    %156 = vector.extract_strided_slice %148 {offsets = [0, 64], sizes = [2, 32], strides = [1, 1]} : vector<2x96xf32> to vector<2x32xf32>
    %157 = math.tanh %155 : vector<2x32xf32>
    %158 = arith.mulf %156, %157 : vector<2x32xf32>
    %cst_35 = arith.constant dense<0.000000e+00> : vector<2x128xf32>
    %159 = tpu.matmul %158, %2, %cst_35 {dimension_numbers = #tpu.dot_dimension_numbers<[1], [0], [0], [1], [0, 0, 1, 1], [], []>} : vector<2x32xf32>, vector<32x128xf32>, vector<2x128xf32> -> vector<2x128xf32>
    %160 = arith.addf %139, %159 : vector<2x128xf32>
    %161 = vector.extract_strided_slice %160 {offsets = [0, 0], sizes = [2, 96], strides = [1, 1]} : vector<2x128xf32> to vector<2x96xf32>
    %162 = arith.negf %161 : vector<2x96xf32>
    %163 = math.exp %162 : vector<2x96xf32>
    %cst_36 = arith.constant 1.000000e+00 : f32
    %164 = vector.broadcast %cst_36 : f32 to vector<2x96xf32>
    %165 = arith.addf %164, %163 : vector<2x96xf32>
    %166 = arith.divf %164, %165 : vector<2x96xf32>
    %167 = vector.extract_strided_slice %160 {offsets = [0, 96], sizes = [2, 32], strides = [1, 1]} : vector<2x128xf32> to vector<2x32xf32>
    %168 = math.tanh %167 : vector<2x32xf32>
    %169 = vector.extract_strided_slice %166 {offsets = [0, 0], sizes = [2, 32], strides = [1, 1]} : vector<2x96xf32> to vector<2x32xf32>
    %170 = arith.mulf %169, %134 : vector<2x32xf32>
    %171 = vector.extract_strided_slice %166 {offsets = [0, 32], sizes = [2, 32], strides = [1, 1]} : vector<2x96xf32> to vector<2x32xf32>
    %172 = arith.mulf %171, %168 : vector<2x32xf32>
    %173 = arith.addf %170, %172 : vector<2x32xf32>
    %174 = vector.extract_strided_slice %166 {offsets = [0, 64], sizes = [2, 32], strides = [1, 1]} : vector<2x96xf32> to vector<2x32xf32>
    %175 = math.tanh %173 : vector<2x32xf32>
    %176 = arith.mulf %174, %175 : vector<2x32xf32>
    %cst_37 = arith.constant dense<0.000000e+00> : vector<2x128xf32>
    %177 = tpu.matmul %176, %3, %cst_37 {dimension_numbers = #tpu.dot_dimension_numbers<[1], [0], [0], [1], [0, 0, 1, 1], [], []>} : vector<2x32xf32>, vector<32x128xf32>, vector<2x128xf32> -> vector<2x128xf32>
    %178 = arith.addf %177, %19 : vector<2x128xf32>
    %179 = vector.extract_strided_slice %17 {offsets = [8, 0], sizes = [2, 128], strides = [1, 1]} : vector<16x128xf32> to vector<2x128xf32>
    %cst_38 = arith.constant dense<0.000000e+00> : vector<2x128xf32>
    %180 = tpu.matmul %158, %1, %cst_38 {dimension_numbers = #tpu.dot_dimension_numbers<[1], [0], [0], [1], [0, 0, 1, 1], [], []>} : vector<2x32xf32>, vector<32x128xf32>, vector<2x128xf32> -> vector<2x128xf32>
    %181 = arith.addf %179, %180 : vector<2x128xf32>
    %182 = vector.extract_strided_slice %181 {offsets = [0, 0], sizes = [2, 96], strides = [1, 1]} : vector<2x128xf32> to vector<2x96xf32>
    %183 = arith.negf %182 : vector<2x96xf32>
    %184 = math.exp %183 : vector<2x96xf32>
    %cst_39 = arith.constant 1.000000e+00 : f32
    %185 = vector.broadcast %cst_39 : f32 to vector<2x96xf32>
    %186 = arith.addf %185, %184 : vector<2x96xf32>
    %187 = arith.divf %185, %186 : vector<2x96xf32>
    %188 = vector.extract_strided_slice %181 {offsets = [0, 96], sizes = [2, 32], strides = [1, 1]} : vector<2x128xf32> to vector<2x32xf32>
    %189 = math.tanh %188 : vector<2x32xf32>
    %190 = vector.extract_strided_slice %187 {offsets = [0, 0], sizes = [2, 32], strides = [1, 1]} : vector<2x96xf32> to vector<2x32xf32>
    %191 = arith.mulf %190, %155 : vector<2x32xf32>
    %192 = vector.extract_strided_slice %187 {offsets = [0, 32], sizes = [2, 32], strides = [1, 1]} : vector<2x96xf32> to vector<2x32xf32>
    %193 = arith.mulf %192, %189 : vector<2x32xf32>
    %194 = arith.addf %191, %193 : vector<2x32xf32>
    %195 = vector.extract_strided_slice %187 {offsets = [0, 64], sizes = [2, 32], strides = [1, 1]} : vector<2x96xf32> to vector<2x32xf32>
    %196 = math.tanh %194 : vector<2x32xf32>
    %197 = arith.mulf %195, %196 : vector<2x32xf32>
    %cst_40 = arith.constant dense<0.000000e+00> : vector<2x128xf32>
    %198 = tpu.matmul %197, %2, %cst_40 {dimension_numbers = #tpu.dot_dimension_numbers<[1], [0], [0], [1], [0, 0, 1, 1], [], []>} : vector<2x32xf32>, vector<32x128xf32>, vector<2x128xf32> -> vector<2x128xf32>
    %199 = arith.addf %178, %198 : vector<2x128xf32>
    %200 = vector.extract_strided_slice %199 {offsets = [0, 0], sizes = [2, 96], strides = [1, 1]} : vector<2x128xf32> to vector<2x96xf32>
    %201 = arith.negf %200 : vector<2x96xf32>
    %202 = math.exp %201 : vector<2x96xf32>
    %cst_41 = arith.constant 1.000000e+00 : f32
    %203 = vector.broadcast %cst_41 : f32 to vector<2x96xf32>
    %204 = arith.addf %203, %202 : vector<2x96xf32>
    %205 = arith.divf %203, %204 : vector<2x96xf32>
    %206 = vector.extract_strided_slice %199 {offsets = [0, 96], sizes = [2, 32], strides = [1, 1]} : vector<2x128xf32> to vector<2x32xf32>
    %207 = math.tanh %206 : vector<2x32xf32>
    %208 = vector.extract_strided_slice %205 {offsets = [0, 0], sizes = [2, 32], strides = [1, 1]} : vector<2x96xf32> to vector<2x32xf32>
    %209 = arith.mulf %208, %173 : vector<2x32xf32>
    %210 = vector.extract_strided_slice %205 {offsets = [0, 32], sizes = [2, 32], strides = [1, 1]} : vector<2x96xf32> to vector<2x32xf32>
    %211 = arith.mulf %210, %207 : vector<2x32xf32>
    %212 = arith.addf %209, %211 : vector<2x32xf32>
    %213 = vector.extract_strided_slice %205 {offsets = [0, 64], sizes = [2, 32], strides = [1, 1]} : vector<2x96xf32> to vector<2x32xf32>
    %214 = math.tanh %212 : vector<2x32xf32>
    %215 = arith.mulf %213, %214 : vector<2x32xf32>
    %cst_42 = arith.constant dense<0.000000e+00> : vector<2x128xf32>
    %216 = tpu.matmul %215, %3, %cst_42 {dimension_numbers = #tpu.dot_dimension_numbers<[1], [0], [0], [1], [0, 0, 1, 1], [], []>} : vector<2x32xf32>, vector<32x128xf32>, vector<2x128xf32> -> vector<2x128xf32>
    %217 = arith.addf %216, %19 : vector<2x128xf32>
    %218 = vector.extract_strided_slice %17 {offsets = [10, 0], sizes = [2, 128], strides = [1, 1]} : vector<16x128xf32> to vector<2x128xf32>
    %cst_43 = arith.constant dense<0.000000e+00> : vector<2x128xf32>
    %219 = tpu.matmul %197, %1, %cst_43 {dimension_numbers = #tpu.dot_dimension_numbers<[1], [0], [0], [1], [0, 0, 1, 1], [], []>} : vector<2x32xf32>, vector<32x128xf32>, vector<2x128xf32> -> vector<2x128xf32>
    %220 = arith.addf %218, %219 : vector<2x128xf32>
    %221 = vector.extract_strided_slice %220 {offsets = [0, 0], sizes = [2, 96], strides = [1, 1]} : vector<2x128xf32> to vector<2x96xf32>
    %222 = arith.negf %221 : vector<2x96xf32>
    %223 = math.exp %222 : vector<2x96xf32>
    %cst_44 = arith.constant 1.000000e+00 : f32
    %224 = vector.broadcast %cst_44 : f32 to vector<2x96xf32>
    %225 = arith.addf %224, %223 : vector<2x96xf32>
    %226 = arith.divf %224, %225 : vector<2x96xf32>
    %227 = vector.extract_strided_slice %220 {offsets = [0, 96], sizes = [2, 32], strides = [1, 1]} : vector<2x128xf32> to vector<2x32xf32>
    %228 = math.tanh %227 : vector<2x32xf32>
    %229 = vector.extract_strided_slice %226 {offsets = [0, 0], sizes = [2, 32], strides = [1, 1]} : vector<2x96xf32> to vector<2x32xf32>
    %230 = arith.mulf %229, %194 : vector<2x32xf32>
    %231 = vector.extract_strided_slice %226 {offsets = [0, 32], sizes = [2, 32], strides = [1, 1]} : vector<2x96xf32> to vector<2x32xf32>
    %232 = arith.mulf %231, %228 : vector<2x32xf32>
    %233 = arith.addf %230, %232 : vector<2x32xf32>
    %234 = vector.extract_strided_slice %226 {offsets = [0, 64], sizes = [2, 32], strides = [1, 1]} : vector<2x96xf32> to vector<2x32xf32>
    %235 = math.tanh %233 : vector<2x32xf32>
    %236 = arith.mulf %234, %235 : vector<2x32xf32>
    %cst_45 = arith.constant dense<0.000000e+00> : vector<2x128xf32>
    %237 = tpu.matmul %236, %2, %cst_45 {dimension_numbers = #tpu.dot_dimension_numbers<[1], [0], [0], [1], [0, 0, 1, 1], [], []>} : vector<2x32xf32>, vector<32x128xf32>, vector<2x128xf32> -> vector<2x128xf32>
    %238 = arith.addf %217, %237 : vector<2x128xf32>
    %239 = vector.extract_strided_slice %238 {offsets = [0, 0], sizes = [2, 96], strides = [1, 1]} : vector<2x128xf32> to vector<2x96xf32>
    %240 = arith.negf %239 : vector<2x96xf32>
    %241 = math.exp %240 : vector<2x96xf32>
    %cst_46 = arith.constant 1.000000e+00 : f32
    %242 = vector.broadcast %cst_46 : f32 to vector<2x96xf32>
    %243 = arith.addf %242, %241 : vector<2x96xf32>
    %244 = arith.divf %242, %243 : vector<2x96xf32>
    %245 = vector.extract_strided_slice %238 {offsets = [0, 96], sizes = [2, 32], strides = [1, 1]} : vector<2x128xf32> to vector<2x32xf32>
    %246 = math.tanh %245 : vector<2x32xf32>
    %247 = vector.extract_strided_slice %244 {offsets = [0, 0], sizes = [2, 32], strides = [1, 1]} : vector<2x96xf32> to vector<2x32xf32>
    %248 = arith.mulf %247, %212 : vector<2x32xf32>
    %249 = vector.extract_strided_slice %244 {offsets = [0, 32], sizes = [2, 32], strides = [1, 1]} : vector<2x96xf32> to vector<2x32xf32>
    %250 = arith.mulf %249, %246 : vector<2x32xf32>
    %251 = arith.addf %248, %250 : vector<2x32xf32>
    %252 = vector.extract_strided_slice %244 {offsets = [0, 64], sizes = [2, 32], strides = [1, 1]} : vector<2x96xf32> to vector<2x32xf32>
    %253 = math.tanh %251 : vector<2x32xf32>
    %254 = arith.mulf %252, %253 : vector<2x32xf32>
    %cst_47 = arith.constant dense<0.000000e+00> : vector<2x128xf32>
    %255 = tpu.matmul %254, %3, %cst_47 {dimension_numbers = #tpu.dot_dimension_numbers<[1], [0], [0], [1], [0, 0, 1, 1], [], []>} : vector<2x32xf32>, vector<32x128xf32>, vector<2x128xf32> -> vector<2x128xf32>
    %256 = arith.addf %255, %19 : vector<2x128xf32>
    %257 = vector.extract_strided_slice %17 {offsets = [12, 0], sizes = [2, 128], strides = [1, 1]} : vector<16x128xf32> to vector<2x128xf32>
    %cst_48 = arith.constant dense<0.000000e+00> : vector<2x128xf32>
    %258 = tpu.matmul %236, %1, %cst_48 {dimension_numbers = #tpu.dot_dimension_numbers<[1], [0], [0], [1], [0, 0, 1, 1], [], []>} : vector<2x32xf32>, vector<32x128xf32>, vector<2x128xf32> -> vector<2x128xf32>
    %259 = arith.addf %257, %258 : vector<2x128xf32>
    %260 = vector.extract_strided_slice %259 {offsets = [0, 0], sizes = [2, 96], strides = [1, 1]} : vector<2x128xf32> to vector<2x96xf32>
    %261 = arith.negf %260 : vector<2x96xf32>
    %262 = math.exp %261 : vector<2x96xf32>
    %cst_49 = arith.constant 1.000000e+00 : f32
    %263 = vector.broadcast %cst_49 : f32 to vector<2x96xf32>
    %264 = arith.addf %263, %262 : vector<2x96xf32>
    %265 = arith.divf %263, %264 : vector<2x96xf32>
    %266 = vector.extract_strided_slice %259 {offsets = [0, 96], sizes = [2, 32], strides = [1, 1]} : vector<2x128xf32> to vector<2x32xf32>
    %267 = math.tanh %266 : vector<2x32xf32>
    %268 = vector.extract_strided_slice %265 {offsets = [0, 0], sizes = [2, 32], strides = [1, 1]} : vector<2x96xf32> to vector<2x32xf32>
    %269 = arith.mulf %268, %233 : vector<2x32xf32>
    %270 = vector.extract_strided_slice %265 {offsets = [0, 32], sizes = [2, 32], strides = [1, 1]} : vector<2x96xf32> to vector<2x32xf32>
    %271 = arith.mulf %270, %267 : vector<2x32xf32>
    %272 = arith.addf %269, %271 : vector<2x32xf32>
    %273 = vector.extract_strided_slice %265 {offsets = [0, 64], sizes = [2, 32], strides = [1, 1]} : vector<2x96xf32> to vector<2x32xf32>
    %274 = math.tanh %272 : vector<2x32xf32>
    %275 = arith.mulf %273, %274 : vector<2x32xf32>
    %cst_50 = arith.constant dense<0.000000e+00> : vector<2x128xf32>
    %276 = tpu.matmul %275, %2, %cst_50 {dimension_numbers = #tpu.dot_dimension_numbers<[1], [0], [0], [1], [0, 0, 1, 1], [], []>} : vector<2x32xf32>, vector<32x128xf32>, vector<2x128xf32> -> vector<2x128xf32>
    %277 = arith.addf %256, %276 : vector<2x128xf32>
    %278 = vector.extract_strided_slice %277 {offsets = [0, 0], sizes = [2, 96], strides = [1, 1]} : vector<2x128xf32> to vector<2x96xf32>
    %279 = arith.negf %278 : vector<2x96xf32>
    %280 = math.exp %279 : vector<2x96xf32>
    %cst_51 = arith.constant 1.000000e+00 : f32
    %281 = vector.broadcast %cst_51 : f32 to vector<2x96xf32>
    %282 = arith.addf %281, %280 : vector<2x96xf32>
    %283 = arith.divf %281, %282 : vector<2x96xf32>
    %284 = vector.extract_strided_slice %277 {offsets = [0, 96], sizes = [2, 32], strides = [1, 1]} : vector<2x128xf32> to vector<2x32xf32>
    %285 = math.tanh %284 : vector<2x32xf32>
    %286 = vector.extract_strided_slice %283 {offsets = [0, 0], sizes = [2, 32], strides = [1, 1]} : vector<2x96xf32> to vector<2x32xf32>
    %287 = arith.mulf %286, %251 : vector<2x32xf32>
    %288 = vector.extract_strided_slice %283 {offsets = [0, 32], sizes = [2, 32], strides = [1, 1]} : vector<2x96xf32> to vector<2x32xf32>
    %289 = arith.mulf %288, %285 : vector<2x32xf32>
    %290 = arith.addf %287, %289 : vector<2x32xf32>
    %291 = vector.extract_strided_slice %283 {offsets = [0, 64], sizes = [2, 32], strides = [1, 1]} : vector<2x96xf32> to vector<2x32xf32>
    %292 = math.tanh %290 : vector<2x32xf32>
    %293 = arith.mulf %291, %292 : vector<2x32xf32>
    %cst_52 = arith.constant dense<0.000000e+00> : vector<2x128xf32>
    %294 = tpu.matmul %293, %3, %cst_52 {dimension_numbers = #tpu.dot_dimension_numbers<[1], [0], [0], [1], [0, 0, 1, 1], [], []>} : vector<2x32xf32>, vector<32x128xf32>, vector<2x128xf32> -> vector<2x128xf32>
    %295 = arith.addf %294, %19 : vector<2x128xf32>
    %296 = vector.extract_strided_slice %17 {offsets = [14, 0], sizes = [2, 128], strides = [1, 1]} : vector<16x128xf32> to vector<2x128xf32>
    %cst_53 = arith.constant dense<0.000000e+00> : vector<2x128xf32>
    %297 = tpu.matmul %275, %1, %cst_53 {dimension_numbers = #tpu.dot_dimension_numbers<[1], [0], [0], [1], [0, 0, 1, 1], [], []>} : vector<2x32xf32>, vector<32x128xf32>, vector<2x128xf32> -> vector<2x128xf32>
    %298 = arith.addf %296, %297 : vector<2x128xf32>
    %299 = vector.extract_strided_slice %298 {offsets = [0, 0], sizes = [2, 96], strides = [1, 1]} : vector<2x128xf32> to vector<2x96xf32>
    %300 = arith.negf %299 : vector<2x96xf32>
    %301 = math.exp %300 : vector<2x96xf32>
    %cst_54 = arith.constant 1.000000e+00 : f32
    %302 = vector.broadcast %cst_54 : f32 to vector<2x96xf32>
    %303 = arith.addf %302, %301 : vector<2x96xf32>
    %304 = arith.divf %302, %303 : vector<2x96xf32>
    %305 = vector.extract_strided_slice %298 {offsets = [0, 96], sizes = [2, 32], strides = [1, 1]} : vector<2x128xf32> to vector<2x32xf32>
    %306 = math.tanh %305 : vector<2x32xf32>
    %307 = vector.extract_strided_slice %304 {offsets = [0, 0], sizes = [2, 32], strides = [1, 1]} : vector<2x96xf32> to vector<2x32xf32>
    %308 = arith.mulf %307, %272 : vector<2x32xf32>
    %309 = vector.extract_strided_slice %304 {offsets = [0, 32], sizes = [2, 32], strides = [1, 1]} : vector<2x96xf32> to vector<2x32xf32>
    %310 = arith.mulf %309, %306 : vector<2x32xf32>
    %311 = arith.addf %308, %310 : vector<2x32xf32>
    %312 = vector.extract_strided_slice %304 {offsets = [0, 64], sizes = [2, 32], strides = [1, 1]} : vector<2x96xf32> to vector<2x32xf32>
    %313 = math.tanh %311 : vector<2x32xf32>
    %314 = arith.mulf %312, %313 : vector<2x32xf32>
    %cst_55 = arith.constant dense<0.000000e+00> : vector<2x128xf32>
    %315 = tpu.matmul %314, %2, %cst_55 {dimension_numbers = #tpu.dot_dimension_numbers<[1], [0], [0], [1], [0, 0, 1, 1], [], []>} : vector<2x32xf32>, vector<32x128xf32>, vector<2x128xf32> -> vector<2x128xf32>
    %316 = arith.addf %295, %315 : vector<2x128xf32>
    %317 = vector.extract_strided_slice %316 {offsets = [0, 0], sizes = [2, 96], strides = [1, 1]} : vector<2x128xf32> to vector<2x96xf32>
    %318 = arith.negf %317 : vector<2x96xf32>
    %319 = math.exp %318 : vector<2x96xf32>
    %cst_56 = arith.constant 1.000000e+00 : f32
    %320 = vector.broadcast %cst_56 : f32 to vector<2x96xf32>
    %321 = arith.addf %320, %319 : vector<2x96xf32>
    %322 = arith.divf %320, %321 : vector<2x96xf32>
    %323 = vector.extract_strided_slice %316 {offsets = [0, 96], sizes = [2, 32], strides = [1, 1]} : vector<2x128xf32> to vector<2x32xf32>
    %324 = math.tanh %323 : vector<2x32xf32>
    %325 = vector.extract_strided_slice %322 {offsets = [0, 0], sizes = [2, 32], strides = [1, 1]} : vector<2x96xf32> to vector<2x32xf32>
    %326 = arith.mulf %325, %290 : vector<2x32xf32>
    %327 = vector.extract_strided_slice %322 {offsets = [0, 32], sizes = [2, 32], strides = [1, 1]} : vector<2x96xf32> to vector<2x32xf32>
    %328 = arith.mulf %327, %324 : vector<2x32xf32>
    %329 = arith.addf %326, %328 : vector<2x32xf32>
    %330 = vector.extract_strided_slice %322 {offsets = [0, 64], sizes = [2, 32], strides = [1, 1]} : vector<2x96xf32> to vector<2x32xf32>
    %331 = math.tanh %329 : vector<2x32xf32>
    %332 = arith.mulf %330, %331 : vector<2x32xf32>
    %333 = tpu.concatenate %59, %98, %137, %176, %215, %254, %293, %332 in 1 : vector<2x32xf32>, vector<2x32xf32>, vector<2x32xf32>, vector<2x32xf32>, vector<2x32xf32>, vector<2x32xf32>, vector<2x32xf32>, vector<2x32xf32> -> vector<2x256xf32>
    %c0_57 = arith.constant 0 : index
    %c0_58 = arith.constant 0 : index
    %334 = vector.load %arg3[%c0_57, %c0_58] : memref<272x512xf32, #tpu.memory_space<vmem>>, vector<256x512xf32>
    %c256 = arith.constant 256 : index
    %c0_59 = arith.constant 0 : index
    %335 = vector.load %arg3[%c256, %c0_59] : memref<272x512xf32, #tpu.memory_space<vmem>>, vector<1x512xf32>
    %c264 = arith.constant 264 : index
    %c0_60 = arith.constant 0 : index
    %336 = vector.load %arg3[%c264, %c0_60] : memref<272x512xf32, #tpu.memory_space<vmem>>, vector<8x512xf32>
    %cst_61 = arith.constant dense<0.000000e+00> : vector<2x512xf32>
    %337 = tpu.matmul %333, %334, %cst_61 {dimension_numbers = #tpu.dot_dimension_numbers<[1], [0], [0], [1], [0, 0, 1, 1], [], []>} : vector<2x256xf32>, vector<256x512xf32>, vector<2x512xf32> -> vector<2x512xf32>
    %338 = vector.broadcast %335 : vector<1x512xf32> to vector<2x512xf32>
    %339 = arith.addf %337, %338 : vector<2x512xf32>
    %340 = math.tanh %339 : vector<2x512xf32>
    %cst_62 = arith.constant dense<0.000000e+00> : vector<2x8xf32>
    %341 = tpu.matmul %340, %336, %cst_62 {dimension_numbers = #tpu.dot_dimension_numbers<[1], [1], [0], [0], [0, 0, 1, 0], [], []>} : vector<2x512xf32>, vector<8x512xf32>, vector<2x8xf32> -> vector<2x8xf32>
    %cst_63 = arith.constant dense<0xFF800000> : vector<2xf32>
    %342 = vector.multi_reduction <maximumf>, %341, %cst_63 [1] : vector<2x8xf32> to vector<2xf32>
    %343 = vector.shape_cast %342 : vector<2xf32> to vector<2x1xf32>
    %344 = vector.broadcast %343 : vector<2x1xf32> to vector<2x8xf32>
    %345 = arith.subf %341, %344 : vector<2x8xf32>
    %cst_64 = arith.constant 5.000000e-01 : f32
    %346 = vector.broadcast %cst_64 : f32 to vector<2x8xf32>
    %347 = arith.mulf %345, %346 : vector<2x8xf32>
    %348 = vector.shape_cast %347 : vector<2x8xf32> to vector<2x8x1xf32>
    %349 = vector.shape_cast %347 : vector<2x8xf32> to vector<2x1x8xf32>
    %350 = tpu.iota {dimensions = array<i32: 1>} : vector<2x8x8xi32>
    %351 = tpu.iota {dimensions = array<i32: 2>} : vector<2x8x8xi32>
    %352 = vector.broadcast %349 : vector<2x1x8xf32> to vector<2x8x8xf32>
    %353 = vector.broadcast %348 : vector<2x8x1xf32> to vector<2x8x8xf32>
    %354 = arith.cmpf ogt, %352, %353 : vector<2x8x8xf32>
    %355 = vector.broadcast %349 : vector<2x1x8xf32> to vector<2x8x8xf32>
    %356 = vector.broadcast %348 : vector<2x8x1xf32> to vector<2x8x8xf32>
    %357 = arith.cmpf oeq, %355, %356 : vector<2x8x8xf32>
    %358 = arith.cmpi slt, %351, %350 : vector<2x8x8xi32>
    %359 = arith.andi %357, %358 : vector<2x8x8xi1>
    %360 = arith.ori %354, %359 : vector<2x8x8xi1>
    %361 = arith.extui %360 : vector<2x8x8xi1> to vector<2x8x8xi32>
    %cst_65 = arith.constant dense<0> : vector<2x8xi32>
    %362 = vector.multi_reduction <add>, %361, %cst_65 [2] : vector<2x8x8xi32> to vector<2x8xi32>
    %363 = vector.shape_cast %362 : vector<2x8xi32> to vector<2x1x8xi32>
    %364 = vector.broadcast %363 : vector<2x1x8xi32> to vector<2x8x8xi32>
    %365 = arith.cmpi eq, %364, %350 : vector<2x8x8xi32>
    %366 = arith.extui %365 : vector<2x8x8xi1> to vector<2x8x8xi32>
    %367 = arith.sitofp %366 : vector<2x8x8xi32> to vector<2x8x8xf32>
    %368 = vector.shape_cast %347 : vector<2x8xf32> to vector<2x1x8xf32>
    %369 = vector.broadcast %368 : vector<2x1x8xf32> to vector<2x8x8xf32>
    %370 = arith.mulf %367, %369 : vector<2x8x8xf32>
    %cst_66 = arith.constant dense<0.000000e+00> : vector<2x8xf32>
    %371 = vector.multi_reduction <add>, %370, %cst_66 [2] : vector<2x8x8xf32> to vector<2x8xf32>
    %372 = arith.cmpi sle, %351, %350 : vector<2x8x8xi32>
    %373 = arith.extui %372 : vector<2x8x8xi1> to vector<2x8x8xi32>
    %374 = arith.sitofp %373 : vector<2x8x8xi32> to vector<2x8x8xf32>
    %375 = vector.shape_cast %371 : vector<2x8xf32> to vector<2x1x8xf32>
    %376 = vector.broadcast %375 : vector<2x1x8xf32> to vector<2x8x8xf32>
    %377 = arith.mulf %374, %376 : vector<2x8x8xf32>
    %cst_67 = arith.constant dense<0.000000e+00> : vector<2x8xf32>
    %378 = vector.multi_reduction <add>, %377, %cst_67 [2] : vector<2x8x8xf32> to vector<2x8xf32>
    %379 = arith.mulf %371, %371 : vector<2x8xf32>
    %380 = vector.shape_cast %379 : vector<2x8xf32> to vector<2x1x8xf32>
    %381 = vector.broadcast %380 : vector<2x1x8xf32> to vector<2x8x8xf32>
    %382 = arith.mulf %374, %381 : vector<2x8x8xf32>
    %cst_68 = arith.constant dense<0.000000e+00> : vector<2x8xf32>
    %383 = vector.multi_reduction <add>, %382, %cst_68 [2] : vector<2x8x8xf32> to vector<2x8xf32>
    %384 = tpu.iota {dimensions = array<i32: 1>} : vector<2x8xi32>
    %c1_i32 = arith.constant 1 : i32
    %385 = vector.broadcast %c1_i32 : i32 to vector<2x8xi32>
    %386 = arith.addi %384, %385 : vector<2x8xi32>
    %387 = arith.sitofp %386 : vector<2x8xi32> to vector<2x8xf32>
    %388 = arith.divf %378, %387 : vector<2x8xf32>
    %389 = arith.divf %383, %387 : vector<2x8xf32>
    %390 = arith.mulf %388, %388 : vector<2x8xf32>
    %391 = arith.subf %389, %390 : vector<2x8xf32>
    %392 = arith.mulf %387, %391 : vector<2x8xf32>
    %cst_69 = arith.constant 1.000000e+00 : f32
    %393 = vector.broadcast %cst_69 : f32 to vector<2x8xf32>
    %394 = arith.subf %393, %392 : vector<2x8xf32>
    %395 = arith.divf %394, %387 : vector<2x8xf32>
    %cst_70 = arith.constant 0.000000e+00 : f32
    %396 = vector.broadcast %cst_70 : f32 to vector<2x8xf32>
    %397 = arith.maximumf %395, %396 : vector<2x8xf32>
    %398 = math.sqrt %397 : vector<2x8xf32>
    %399 = arith.subf %388, %398 : vector<2x8xf32>
    %400 = arith.cmpf ole, %399, %371 : vector<2x8xf32>
    %401 = arith.extui %400 : vector<2x8xi1> to vector<2x8xi32>
    %cst_71 = arith.constant dense<0> : vector<2xi32>
    %402 = vector.multi_reduction <add>, %401, %cst_71 [1] : vector<2x8xi32> to vector<2xi32>
    %403 = vector.shape_cast %402 : vector<2xi32> to vector<2x1xi32>
    %c1_i32_72 = arith.constant 1 : i32
    %404 = vector.broadcast %c1_i32_72 : i32 to vector<2x1xi32>
    %405 = arith.subi %403, %404 : vector<2x1xi32>
    %406 = vector.broadcast %405 : vector<2x1xi32> to vector<2x8xi32>
    %407 = arith.cmpi eq, %384, %406 : vector<2x8xi32>
    %408 = arith.extui %407 : vector<2x8xi1> to vector<2x8xi32>
    %409 = arith.sitofp %408 : vector<2x8xi32> to vector<2x8xf32>
    %410 = arith.mulf %399, %409 : vector<2x8xf32>
    %cst_73 = arith.constant dense<0.000000e+00> : vector<2xf32>
    %411 = vector.multi_reduction <add>, %410, %cst_73 [1] : vector<2x8xf32> to vector<2xf32>
    %412 = vector.shape_cast %411 : vector<2xf32> to vector<2x1xf32>
    %413 = vector.broadcast %412 : vector<2x1xf32> to vector<2x8xf32>
    %414 = arith.subf %347, %413 : vector<2x8xf32>
    %cst_74 = arith.constant 0.000000e+00 : f32
    %415 = vector.broadcast %cst_74 : f32 to vector<2x8xf32>
    %416 = arith.maximumf %414, %415 : vector<2x8xf32>
    %417 = arith.mulf %416, %416 : vector<2x8xf32>
    %cst_75 = arith.constant 0.000000e+00 : f32
    %418 = vector.broadcast %cst_75 : f32 to vector<2x32xf32>
    %419 = vector.extract_strided_slice %417 {offsets = [0, 0], sizes = [2, 1], strides = [1, 1]} : vector<2x8xf32> to vector<2x1xf32>
    %420 = vector.broadcast %419 : vector<2x1xf32> to vector<2x32xf32>
    %421 = arith.mulf %420, %59 : vector<2x32xf32>
    %422 = arith.addf %418, %421 : vector<2x32xf32>
    %423 = vector.extract_strided_slice %417 {offsets = [0, 1], sizes = [2, 1], strides = [1, 1]} : vector<2x8xf32> to vector<2x1xf32>
    %424 = vector.broadcast %423 : vector<2x1xf32> to vector<2x32xf32>
    %425 = arith.mulf %424, %98 : vector<2x32xf32>
    %426 = arith.addf %422, %425 : vector<2x32xf32>
    %427 = vector.extract_strided_slice %417 {offsets = [0, 2], sizes = [2, 1], strides = [1, 1]} : vector<2x8xf32> to vector<2x1xf32>
    %428 = vector.broadcast %427 : vector<2x1xf32> to vector<2x32xf32>
    %429 = arith.mulf %428, %137 : vector<2x32xf32>
    %430 = arith.addf %426, %429 : vector<2x32xf32>
    %431 = vector.extract_strided_slice %417 {offsets = [0, 3], sizes = [2, 1], strides = [1, 1]} : vector<2x8xf32> to vector<2x1xf32>
    %432 = vector.broadcast %431 : vector<2x1xf32> to vector<2x32xf32>
    %433 = arith.mulf %432, %176 : vector<2x32xf32>
    %434 = arith.addf %430, %433 : vector<2x32xf32>
    %435 = vector.extract_strided_slice %417 {offsets = [0, 4], sizes = [2, 1], strides = [1, 1]} : vector<2x8xf32> to vector<2x1xf32>
    %436 = vector.broadcast %435 : vector<2x1xf32> to vector<2x32xf32>
    %437 = arith.mulf %436, %215 : vector<2x32xf32>
    %438 = arith.addf %434, %437 : vector<2x32xf32>
    %439 = vector.extract_strided_slice %417 {offsets = [0, 5], sizes = [2, 1], strides = [1, 1]} : vector<2x8xf32> to vector<2x1xf32>
    %440 = vector.broadcast %439 : vector<2x1xf32> to vector<2x32xf32>
    %441 = arith.mulf %440, %254 : vector<2x32xf32>
    %442 = arith.addf %438, %441 : vector<2x32xf32>
    %443 = vector.extract_strided_slice %417 {offsets = [0, 6], sizes = [2, 1], strides = [1, 1]} : vector<2x8xf32> to vector<2x1xf32>
    %444 = vector.broadcast %443 : vector<2x1xf32> to vector<2x32xf32>
    %445 = arith.mulf %444, %293 : vector<2x32xf32>
    %446 = arith.addf %442, %445 : vector<2x32xf32>
    %447 = vector.extract_strided_slice %417 {offsets = [0, 7], sizes = [2, 1], strides = [1, 1]} : vector<2x8xf32> to vector<2x1xf32>
    %448 = vector.broadcast %447 : vector<2x1xf32> to vector<2x32xf32>
    %449 = arith.mulf %448, %332 : vector<2x32xf32>
    %450 = arith.addf %446, %449 : vector<2x32xf32>
    %451 = tpu.concatenate %450, %332 in 1 : vector<2x32xf32>, vector<2x32xf32> -> vector<2x64xf32>
    %452 = vector.broadcast %10 : vector<1x64xf32> to vector<2x64xf32>
    %453 = arith.mulf %451, %452 : vector<2x64xf32>
    %cst_76 = arith.constant dense<0.000000e+00> : vector<2xf32>
    %454 = vector.multi_reduction <add>, %453, %cst_76 [1] : vector<2x64xf32> to vector<2xf32>
    %455 = vector.shape_cast %454 : vector<2xf32> to vector<2x1xf32>
    %456 = vector.broadcast %6 : vector<1x1xf32> to vector<2x1xf32>
    %457 = arith.addf %455, %456 : vector<2x1xf32>
    %458 = arith.negf %457 : vector<2x1xf32>
    %459 = math.exp %458 : vector<2x1xf32>
    %cst_77 = arith.constant 1.000000e+00 : f32
    %460 = vector.broadcast %cst_77 : f32 to vector<2x1xf32>
    %461 = arith.addf %460, %459 : vector<2x1xf32>
    %462 = arith.divf %460, %461 : vector<2x1xf32>
    %463 = vector.broadcast %462 : vector<2x1xf32> to vector<2x32xf32>
    %464 = arith.mulf %463, %450 : vector<2x32xf32>
    %cst_78 = arith.constant 1.000000e+00 : f32
    %465 = vector.broadcast %cst_78 : f32 to vector<2x1xf32>
    %466 = arith.subf %465, %462 : vector<2x1xf32>
    %467 = vector.broadcast %466 : vector<2x1xf32> to vector<2x32xf32>
    %468 = arith.mulf %467, %332 : vector<2x32xf32>
    %469 = arith.addf %464, %468 : vector<2x32xf32>
    %c0_79 = arith.constant 0 : index
    %c0_80 = arith.constant 0 : index
    %470 = vector.load %arg1[%c0_79, %c0_80] : memref<2x9xf32, #tpu.memory_space<vmem>>, vector<2x9xf32>
    %471 = tpu.concatenate %469, %470 in 1 : vector<2x32xf32>, vector<2x9xf32> -> vector<2x41xf32>
    %cst_81 = arith.constant dense<0.000000e+00> : vector<2x32xf32>
    %472 = tpu.matmul %471, %11, %cst_81 {dimension_numbers = #tpu.dot_dimension_numbers<[1], [0], [0], [1], [0, 0, 1, 1], [], []>} : vector<2x41xf32>, vector<41x32xf32>, vector<2x32xf32> -> vector<2x32xf32>
    %473 = vector.broadcast %7 : vector<1x32xf32> to vector<2x32xf32>
    %474 = arith.addf %472, %473 : vector<2x32xf32>
    %cst_82 = arith.constant 0.000000e+00 : f32
    %475 = vector.broadcast %cst_82 : f32 to vector<2x32xf32>
    %476 = arith.maximumf %474, %475 : vector<2x32xf32>
    %cst_83 = arith.constant dense<0.000000e+00> : vector<2x16xf32>
    %477 = tpu.matmul %476, %12, %cst_83 {dimension_numbers = #tpu.dot_dimension_numbers<[1], [0], [0], [1], [0, 0, 1, 1], [], []>} : vector<2x32xf32>, vector<32x16xf32>, vector<2x16xf32> -> vector<2x16xf32>
    %478 = vector.broadcast %8 : vector<1x16xf32> to vector<2x16xf32>
    %479 = arith.addf %477, %478 : vector<2x16xf32>
    %cst_84 = arith.constant 0.000000e+00 : f32
    %480 = vector.broadcast %cst_84 : f32 to vector<2x16xf32>
    %481 = arith.maximumf %479, %480 : vector<2x16xf32>
    %cst_85 = arith.constant dense<0.000000e+00> : vector<2x14xf32>
    %482 = tpu.matmul %481, %13, %cst_85 {dimension_numbers = #tpu.dot_dimension_numbers<[1], [0], [0], [1], [0, 0, 1, 1], [], []>} : vector<2x16xf32>, vector<16x14xf32>, vector<2x14xf32> -> vector<2x14xf32>
    %483 = vector.broadcast %9 : vector<1x14xf32> to vector<2x14xf32>
    %484 = arith.addf %482, %483 : vector<2x14xf32>
    %cst_86 = arith.constant 0.000000e+00 : f32
    %485 = vector.broadcast %cst_86 : f32 to vector<2x2xf32>
    %cst_87 = arith.constant 0.000000e+00 : f32
    %486 = vector.broadcast %cst_87 : f32 to vector<2x104xf32>
    %487 = tpu.concatenate %484, %485, %417, %486 in 1 : vector<2x14xf32>, vector<2x2xf32>, vector<2x8xf32>, vector<2x104xf32> -> vector<2x128xf32>
    %c0_88 = arith.constant 0 : index
    %c0_89 = arith.constant 0 : index
    %488 = vector.load %arg4[%c0_88, %c0_89] : memref<2x128xf32, #tpu.memory_space<vmem>>, vector<2x128xf32>
    tpu.vector_store %arg4[%c0_88, %c0_89], %487 {strides = array<i32>} : memref<2x128xf32, #tpu.memory_space<vmem>>, vector<2x128xf32>,
    return
  }
}

</mosaic_0001>

<bundles_post_ra>
// kernel: attention_lstm_forward.1
= control target key start
LH: loop header
LB: loop body
LE: loop exit
PB: predicated region body
PF: predicated region fallthrough
CT: control target
= control target key end

     0   :  { %vm55_vm0 = vcmask 64512   ;;  %v4741_v3 = vmov 0.0|0.0   ;;  %vm4742_vm1 = vmmov 0   ;;  %v4743_v4 = vmov 0.0   ;;  %s4744_s30 = smov 64   ;;  %s4745_s5 = smov 96   ;;  %s5870_s2 = inlined_call_operand.vmem [shape: f32[208,128], index: 2, kind: input, shape index: {}]   ;;  %s5871_s0 = inlined_call_operand.vmem [shape: f32[16,8], index: 0, kind: input, shape index: {}]   ;;  %s5872_s3 = inlined_call_operand.vmem [shape: f32[272,512], index: 3, kind: input, shape index: {}]   ;;  %s5873_s1 = inlined_call_operand.vmem [shape: f32[2,9], index: 1, kind: input, shape index: {}]   ;;  %s5874_s4 = inlined_call_operand.vmem [shape: f32[2,128], index: 4, kind: output, shape index: {}]  }
   0x1   :  { %v17_v0 = vld [vmem:[%s5870_s2] sm:$0xff]  ;;  %v50_v2 = vld [vmem:[%s5871_s0 + $0x8] sm:$0xff]  ;;  %4242 = vmatprep.subr.bf16.mxu1 %v4741_v3  ;;  %3953 = vmatprep.mubr.msk.f32.mxu1 %vm4742_vm1, %v4743_v4  ;;  %v19_v6 = vld [vmem:[%s5870_s2 + $0x10] sm:$0xff]  ;;  %vm141_vm2 = vcmask 261120   ;;  %s4746_s29 = smov 32   ;;  %vm2361_vm3 = vcmask 523264  }
   0x2   :  { %v49_v1 = vld [vmem:[%s5871_s0] sm:$0xff]  ;;  %3940 = vmatprep.subr.mxu0 %v17_v0  ;;  %v18_v5 = vld [vmem:[%s5870_s2 + $0x8] sm:$0xff]  ;;  %v20_v7 = vld [vmem:[%s5870_s2 + $0x18] sm:$0xff]  ;;  %vm2363_vm4 = vcmask 785408   ;;  %vm2809_vm5 = vcmask 58368   ;;  %s4757_s12 = smov 16  }
   0x3   :  { %3942 = vmatprep.mubr.msk.f32.mxu0 %vm55_vm0, %v49_v1  ;;  %3941 = vmatpush3.msra.mxu0 %v17_v0  ;;  %v4805_v8 = vpack.c.bf16 %v19_v6, %v18_v5  ;;  %v21_v9 = vld [vmem:[%s5870_s2 + $0x20] sm:$0xff]  ;;  %v3730_v11 = vld [vmem:[%s5870_s2 + $0x68] ss:$0 sm:$0xff]  ;;  %v27_v30 = vld [vmem:[%s5870_s2 + $0x50] sm:$0xff] }
   0x4   :  { %3943 = vmatmul.mubr.msk.f32.vlgmr.msra.gmra.mrb[0].mxu0 %vm55_vm0, %v50_v2  ;;  %4248 = vmatprep.subr.bf16.mxu0 %v4741_v3  ;;  %v4813_v10 = vpack.c.bf16 %v21_v9, %v20_v7  ;;  %v26_v29 = vld [vmem:[%s5870_s2 + $0x48] sm:$0xff]  ;;  %v28_v31 = vld [vmem:[%s5870_s2 + $0x58] sm:$0xff]  ;;  %v29_v33 = vld [vmem:[%s5870_s2 + $0x60] sm:$0xff] }
   0x5   :  { %4250 = vmatpush3.bf16.msra.mxu0 %v4805_v8  ;;  %3964 = vmatprep.mubr.msk.f32.mxu0 %vm4742_vm1, %v4743_v4  ;;  %v4845_v32 = vpack.c.bf16 %v27_v30, %v26_v29  ;;  %v4851_v34 = vpack.c.bf16 %v29_v33, %v28_v31  ;;  %v22_v35 = vld [vmem:[%s5870_s2 + $0x28] sm:$0xff]  ;;  %v23_v36 = vld [vmem:[%s5870_s2 + $0x30] sm:$0xff]  ;;  %v24_v38 = vld [vmem:[%s5870_s2 + $0x38] sm:$0xff] }
   0x6   :  { %4251 = vmatprep.subr.bf16.mxu0 %v4741_v3  ;;  %v4863_v37 = vpack.c.bf16 %v23_v36, %v22_v35  ;;  %v25_v39 = vld [vmem:[%s5870_s2 + $0x40] sm:$0xff]  ;;  %v4902_v45 = vld [vmem:[%s5870_s2 + $0x69] ss:$0 sm:$0xff] }
   0x7   :  { %4244 = vmatpush3.bf16.msra.mxu1 %v4845_v32  ;;  %v4877_v41 = vpack.c.bf16 %v25_v39, %v24_v38 }
   0x8   :  { %4245 = vmatprep.subr.bf16.mxu1 %v4741_v3 }
   0x9   :  { %4253 = vmatpush3.bf16.msra.mxu0 %v4813_v10 }
   0xa   :  { %4260 = vmatprep.subr.bf16.mxu0 %v4741_v3 }
   0xb   :  { %4247 = vmatpush3.bf16.msra.mxu1 %v4851_v34 }
   0xc   :  { %3965 = vmatmul.mubr.f32.vlgmr.msra.gmra.mrb[2].mxu0 %v4743_v4  ;;  %4254 = vmatprep.subr.bf16.mxu1 %v4741_v3 }
   0xd   :  { %3986 = vmatprep.mubr.msk.f32.mxu0 %vm4742_vm1, %v4743_v4  ;;  %4262 = vmatpush3.bf16.msra.mxu0 %v4845_v32 }
   0xe   :  { %4263 = vmatprep.subr.bf16.mxu0 %v4741_v3  ;;  %3954 = vmatmul.mubr.f32.vlgmr.msra.gmra.mrb[0].mxu1 %v4743_v4 }
   0xf   :  { %4256 = vmatpush3.bf16.msra.mxu1 %v4863_v37  ;;  %3975 = vmatprep.mubr.msk.f32.mxu1 %vm4742_vm1, %v4743_v4 }
  0x10   :  { %4257 = vmatprep.subr.bf16.mxu1 %v4741_v3 }
  0x11   :  { %4265 = vmatpush3.bf16.msra.mxu0 %v4851_v34 }
  0x12   :  { %4272 = vmatprep.subr.bf16.mxu0 %v4741_v3 }
  0x13   :  { %4259 = vmatpush3.bf16.msra.mxu1 %v4877_v41 }
  0x14   :  { %4266 = vmatprep.subr.bf16.mxu1 %v4741_v3 }
  0xd7   :  { %v3944_v12 = vpop.f32.mrb[0].mxu0 }
  0xd8   :  { %v4826_v13 = vadd.f32 %v3944_v12, %v3730_v11  ;;  %v128_v14 = vpop.f32.mrb[1].mxu0 }
  0xd9   :  { %v4828_v15 = vadd.f32 %v3730_v11, %v128_v14 }
  0xdf   :  { %v281_v16 = vpop.f32.mrb[2].mxu0 }
  0xe0   :  { %v285_v17 = vadd.f32 %v281_v16, %v4828_v15  ;;  %v3966_v18 = vpop.f32.mrb[3].mxu0 }
  0xe2   :  { %4595 = vtanh.f32 %v285_v17  ;;  %v3734_v20 = vmul.f32 -1.442695, %v285_v17 }
  0xe4   :  { %4597 = vpow2.f32 %v3734_v20 }
  0xec   :  { %v4596_v19 = vpop.eup %4595 }
  0xed   :  { %295 = vrot.lane.b32.xlu0 %v4596_v19, %s4744_s30 }
  0xee   :  { %v4598_v21 = vpop.eup %4597 }
  0xef   :  { %v289_v22 = vadd.f32 1.0, %v4598_v21 }
  0xf1   :  { %4599 = vrcp.f32 %v289_v22 }
  0xfb   :  { %v4600_v23 = vpop.eup %4599 }
  0xfc   :  { %v293_v26 = vmul.f32 0.0, %v4600_v23 }
 0x15f   :  { %v296_v24 = vpop.permute.xlu0 %295 }
 0x160   :  { %v298_v25 = vmul.f32 %v4600_v23, %v296_v24 }
 0x162   :  { %300 = vrot.lane.b32.xlu0 %v298_v25, %s4745_s5 }
 0x1d4   :  { %v301_v27 = vpop.permute.xlu0 %300 }
 0x1d5   :  { %v4833_v28 = vadd.f32 %v301_v27, %v293_v26 }
 0x1d7   :  { %4601 = vtanh.f32 %v4833_v28  ;;  %v567_v9 = vrot.slane %v4833_v28, 6 }
 0x1e1   :  { %v4602_v40 = vpop.eup %4601 }
 0x1e2   :  { %306 = vrot.lane.b32.xlu1 %v4602_v40, %s4744_s30 }
 0x254   :  { %v307_v42 = vpop.permute.xlu1 %306 }
 0x255   :  { %v309_v43 = vmul.f32 %v4600_v23, %v307_v42 }
 0x257   :  { %311 = vrot.lane.b32.xlu1 %v309_v43, %s4744_s30 }
 0x2c9   :  { %v312_v44 = vpop.permute.xlu1 %311 }
 0x2ca   :  { %3976 = vmatmul.mubr.msk.f32.vlgmr.msra.gmra.mrb[0].mxu1 %vm141_vm2, %v312_v44 }
 0x2cb   :  { %4268 = vmatpush3.bf16.msra.mxu1 %v4805_v8  ;;  %3997 = vmatprep.mubr.msk.f32.mxu1 %vm4742_vm1, %v4743_v4 }
 0x2cc   :  { %4269 = vmatprep.subr.bf16.mxu1 %v4741_v3 }
 0x2cf   :  { %4271 = vmatpush3.bf16.msra.mxu1 %v4813_v10 }
 0x2d0   :  { %4278 = vmatprep.subr.bf16.mxu1 %v4741_v3 }
 0x2d2   :  { %3998 = vmatmul.mubr.msk.f32.vlgmr.msra.gmra.mrb[2].mxu1 %vm141_vm2, %v312_v44 }
 0x2d3   :  { %4280 = vmatpush3.bf16.msra.mxu1 %v4845_v32  ;;  %4019 = vmatprep.mubr.msk.f32.mxu1 %vm4742_vm1, %v4743_v4 }
 0x2d4   :  { %4281 = vmatprep.subr.bf16.mxu1 %v4741_v3 }
 0x2d7   :  { %4283 = vmatpush3.bf16.msra.mxu1 %v4851_v34 }
 0x2d8   :  { %4290 = vmatprep.subr.bf16.mxu1 %v4741_v3 }
 0x39d   :  { %v381_v46 = vpop.f32.mrb[0].mxu1 }
 0x39e   :  { %v4533_v47 = vadd.f32 %v4902_v45, %v381_v46  ;;  %v3977_v48 = vpop.f32.mrb[1].mxu1 }
 0x3a0   :  { %4603 = vtanh.f32 %v4533_v47  ;;  %v3736_v55 = vmul.f32 -1.442695, %v4533_v47 }
 0x3a5   :  { %v551_v49 = vpop.f32.mrb[2].mxu1 }
 0x3a6   :  { %v556_v50 = vrot.slane %v551_v49, 6  ;;  %v3999_v51 = vpop.f32.mrb[3].mxu1 }
 0x3a8   :  { %v558_v52 = vadd.f32 %v556_v50, %v4828_v15 }
 0x3aa   :  { %v4604_v53 = vpop.eup %4603  ;;  %4605 = vtanh.f32 %v558_v52  ;;  %v3739_v56 = vmul.f32 -1.442695, %v558_v52 }
 0x3ab   :  { %395 = vrot.lane.b32.xlu0 %v4604_v53, %s4744_s30  ;;  %4607 = vpow2.f32 %v3736_v55 }
 0x3ac   :  { %4609 = vpow2.f32 %v3739_v56 }
 0x3b4   :  { %v4606_v54 = vpop.eup %4605 }
 0x3b5   :  { %571 = vrot.lane.b32.xlu1 %v4606_v54, %s4744_s30  ;;  %v4608_v57 = vpop.eup %4607 }
 0x3b6   :  { %v389_v58 = vadd.f32 1.0, %v4608_v57  ;;  %v4610_v59 = vpop.eup %4609 }
 0x3b7   :  { %v562_v60 = vadd.f32 1.0, %v4610_v59 }
 0x3b8   :  { %4611 = vrcp.f32 %v389_v58 }
 0x3b9   :  { %4613 = vrcp.f32 %v562_v60 }
 0x3c2   :  { %v4612_v61 = vpop.eup %4611 }
 0x3c3   :  { %v4614_v0 = vpop.eup %4613  ;;  %v393_v5 = vmul.f32 0.0, %v4612_v61 }
 0x3c4   :  { %v569_v11 = vmul.f32 %v4614_v0, %v567_v9 }
 0x41d   :  { %v396_v62 = vpop.permute.xlu0 %395 }
 0x41e   :  { %v398_v63 = vmul.f32 %v4612_v61, %v396_v62 }
 0x420   :  { %400 = vrot.lane.b32.xlu0 %v398_v63, %s4745_s5 }
 0x427   :  { %v572_v1 = vpop.permute.xlu1 %571 }
 0x428   :  { %v574_v2 = vmul.f32 %v4614_v0, %v572_v1 }
 0x42a   :  { %576 = vrot.lane.b32.xlu1 %v574_v2, %s4745_s5 }
 0x492   :  { %v401_v6 = vpop.permute.xlu0 %400 }
 0x493   :  { %v4910_v7 = vadd.f32 %v401_v6, %v393_v5 }
 0x495   :  { %4615 = vtanh.f32 %v4910_v7 }
 0x49c   :  { %v577_v12 = vpop.permute.xlu1 %576 }
 0x49d   :  { %v4914_v14 = vadd.f32 %v577_v12, %v569_v11 }
 0x49f   :  { %v4616_v16 = vpop.eup %4615  ;;  %4617 = vtanh.f32 %v4914_v14  ;;  %v844_v54 = vrot.slane %v4914_v14, 6 }
 0x4a0   :  { %406 = vrot.lane.b32.xlu0 %v4616_v16, %s4744_s30 }
 0x4a9   :  { %v4618_v17 = vpop.eup %4617 }
 0x4aa   :  { %582 = vrot.lane.b32.xlu1 %v4618_v17, %s4744_s30 }
 0x512   :  { %v407_v18 = vpop.permute.xlu0 %406 }
 0x513   :  { %v4919_v19 = vmul.f32 %v4612_v61, %v407_v18 }
 0x515   :  { %411 = vrot.lane.b32.xlu0 %v4919_v19, %s4744_s30 }
 0x51c   :  { %v583_v20 = vpop.permute.xlu1 %582 }
 0x51d   :  { %v585_v21 = vmul.f32 %v4614_v0, %v583_v20 }
 0x51f   :  { %v587_v22 = vrot.slane %v585_v21, 2 }
 0x521   :  { %588 = vrot.lane.b32.xlu1 %v587_v22, %s4744_s30 }
 0x587   :  { %v4924_v23 = vpop.permute.xlu0 %411 }
 0x588   :  { %3987 = vmatmul.mubr.msk.f32.vlgmr.msra.gmra.mrb[4].mxu0 %vm141_vm2, %v4924_v23 }
 0x589   :  { %4274 = vmatpush3.bf16.msra.mxu0 %v4863_v37  ;;  %4008 = vmatprep.mubr.msk.f32.mxu0 %vm4742_vm1, %v4743_v4 }
 0x58a   :  { %4275 = vmatprep.subr.bf16.mxu0 %v4741_v3 }
 0x58d   :  { %4277 = vmatpush3.bf16.msra.mxu0 %v4877_v41 }
 0x58e   :  { %4284 = vmatprep.subr.bf16.mxu0 %v4741_v3 }
 0x593   :  { %v589_v24 = vpop.permute.xlu1 %588 }
 0x594   :  { %4009 = vmatmul.mubr.msk.f32.vlgmr.msra.gmra.mrb[4].mxu0 %vm141_vm2, %v589_v24 }
 0x595   :  { %4286 = vmatpush3.bf16.msra.mxu0 %v4805_v8  ;;  %4030 = vmatprep.mubr.msk.f32.mxu0 %vm4742_vm1, %v4743_v4 }
 0x596   :  { %4287 = vmatprep.subr.bf16.mxu0 %v4741_v3 }
 0x599   :  { %4289 = vmatpush3.bf16.msra.mxu0 %v4813_v10 }
 0x59a   :  { %4296 = vmatprep.subr.bf16.mxu0 %v4741_v3 }
 0x59c   :  { %4031 = vmatmul.mubr.msk.f32.vlgmr.msra.gmra.mrb[6].mxu0 %vm141_vm2, %v589_v24 }
 0x59d   :  { %4298 = vmatpush3.bf16.msra.mxu0 %v4845_v32  ;;  %4052 = vmatprep.mubr.msk.f32.mxu0 %vm4742_vm1, %v4743_v4 }
 0x59e   :  { %4299 = vmatprep.subr.bf16.mxu0 %v4741_v3 }
 0x5a1   :  { %4301 = vmatpush3.bf16.msra.mxu0 %v4851_v34 }
 0x5a2   :  { %4308 = vmatprep.subr.bf16.mxu0 %v4741_v3 }
 0x667   :  { %v658_v25 = vpop.f32.mrb[4].mxu0 }
 0x668   :  { %v4534_v26 = vadd.f32 %v4902_v45, %v658_v25  ;;  %v4010_v27 = vpop.f32.mrb[5].mxu0 }
 0x66a   :  { %4619 = vtanh.f32 %v4534_v26  ;;  %v3741_v36 = vmul.f32 -1.442695, %v4534_v26 }
 0x66f   :  { %v828_v28 = vpop.f32.mrb[6].mxu0 }
 0x670   :  { %v833_v29 = vrot.slane %v828_v28, 4  ;;  %v4032_v30 = vpop.f32.mrb[7].mxu0 }
 0x672   :  { %v835_v31 = vadd.f32 %v833_v29, %v4828_v15 }
 0x674   :  { %v4620_v33 = vpop.eup %4619  ;;  %4621 = vtanh.f32 %v835_v31  ;;  %v3744_v38 = vmul.f32 -1.442695, %v835_v31 }
 0x675   :  { %672 = vrot.lane.b32.xlu0 %v4620_v33, %s4744_s30  ;;  %4623 = vpow2.f32 %v3741_v36 }
 0x676   :  { %4625 = vpow2.f32 %v3744_v38 }
 0x67e   :  { %v4622_v35 = vpop.eup %4621 }
 0x67f   :  { %848 = vrot.lane.b32.xlu1 %v4622_v35, %s4744_s30  ;;  %v4624_v39 = vpop.eup %4623 }
 0x680   :  { %v666_v40 = vadd.f32 1.0, %v4624_v39  ;;  %v4626_v42 = vpop.eup %4625 }
 0x681   :  { %v839_v43 = vadd.f32 1.0, %v4626_v42 }
 0x682   :  { %4627 = vrcp.f32 %v666_v40 }
 0x683   :  { %4629 = vrcp.f32 %v839_v43 }
 0x68c   :  { %v4628_v44 = vpop.eup %4627 }
 0x68d   :  { %v4630_v48 = vpop.eup %4629  ;;  %v670_v51 = vmul.f32 %v4628_v44, %v4910_v7 }
 0x68e   :  { %v846_v55 = vmul.f32 %v4630_v48, %v844_v54 }
 0x6e7   :  { %v673_v46 = vpop.permute.xlu0 %672 }
 0x6e8   :  { %v675_v47 = vmul.f32 %v4628_v44, %v673_v46 }
 0x6ea   :  { %677 = vrot.lane.b32.xlu0 %v675_v47, %s4745_s5 }
 0x6f1   :  { %v849_v49 = vpop.permute.xlu1 %848 }
 0x6f2   :  { %v851_v50 = vmul.f32 %v4630_v48, %v849_v49 }
 0x6f4   :  { %853 = vrot.lane.b32.xlu1 %v851_v50, %s4745_s5 }
 0x75c   :  { %v678_v52 = vpop.permute.xlu0 %677 }
 0x75d   :  { %v4955_v53 = vadd.f32 %v678_v52, %v670_v51 }
 0x75f   :  { %4631 = vtanh.f32 %v4955_v53 }
 0x766   :  { %v854_v56 = vpop.permute.xlu1 %853 }
 0x767   :  { %v4959_v57 = vadd.f32 %v854_v56, %v846_v55 }
 0x769   :  { %v4632_v58 = vpop.eup %4631  ;;  %4633 = vtanh.f32 %v4959_v57  ;;  %v1121_v36 = vrot.slane %v4959_v57, 6 }
 0x76a   :  { %683 = vrot.lane.b32.xlu0 %v4632_v58, %s4744_s30 }
 0x773   :  { %v4634_v59 = vpop.eup %4633 }
 0x774   :  { %859 = vrot.lane.b32.xlu1 %v4634_v59, %s4744_s30 }
 0x7dc   :  { %v684_v60 = vpop.permute.xlu0 %683 }
 0x7dd   :  { %v4964_v61 = vmul.f32 %v4628_v44, %v684_v60 }
 0x7df   :  { %688 = vrot.lane.b32.xlu0 %v4964_v61, %s4744_s30 }
 0x7e6   :  { %v860_v62 = vpop.permute.xlu1 %859 }
 0x7e7   :  { %v862_v63 = vmul.f32 %v4630_v48, %v860_v62 }
 0x7e9   :  { %v864_v0 = vrot.slane %v862_v63, 4 }
 0x7eb   :  { %865 = vrot.lane.b32.xlu1 %v864_v0, %s4744_s30 }
 0x851   :  { %v689_v1 = vpop.permute.xlu0 %688 }
 0x852   :  { %4020 = vmatmul.mubr.msk.f32.vlgmr.msra.gmra.mrb[4].mxu1 %vm141_vm2, %v689_v1 }
 0x853   :  { %4292 = vmatpush3.bf16.msra.mxu1 %v4863_v37  ;;  %4041 = vmatprep.mubr.msk.f32.mxu1 %vm4742_vm1, %v4743_v4 }
 0x854   :  { %4293 = vmatprep.subr.bf16.mxu1 %v4741_v3 }
 0x857   :  { %4295 = vmatpush3.bf16.msra.mxu1 %v4877_v41 }
 0x858   :  { %4302 = vmatprep.subr.bf16.mxu1 %v4741_v3 }
 0x85d   :  { %v866_v2 = vpop.permute.xlu1 %865 }
 0x85e   :  { %4042 = vmatmul.mubr.msk.f32.vlgmr.msra.gmra.mrb[4].mxu1 %vm141_vm2, %v866_v2 }
 0x85f   :  { %4304 = vmatpush3.bf16.msra.mxu1 %v4805_v8  ;;  %4063 = vmatprep.mubr.msk.f32.mxu1 %vm4742_vm1, %v4743_v4 }
 0x860   :  { %4305 = vmatprep.subr.bf16.mxu1 %v4741_v3 }
 0x863   :  { %4307 = vmatpush3.bf16.msra.mxu1 %v4813_v10 }
 0x864   :  { %4314 = vmatprep.subr.bf16.mxu1 %v4741_v3 }
 0x866   :  { %4064 = vmatmul.mubr.msk.f32.vlgmr.msra.gmra.mrb[6].mxu1 %vm141_vm2, %v866_v2 }
 0x867   :  { %4316 = vmatpush3.bf16.msra.mxu1 %v4845_v32  ;;  %4085 = vmatprep.mubr.msk.f32.mxu1 %vm4742_vm1, %v4743_v4 }
 0x868   :  { %4317 = vmatprep.subr.bf16.mxu1 %v4741_v3 }
 0x86b   :  { %4319 = vmatpush3.bf16.msra.mxu1 %v4851_v34 }
 0x86c   :  { %4326 = vmatprep.subr.bf16.mxu1 %v4741_v3 }
 0x931   :  { %v935_v5 = vpop.f32.mrb[4].mxu1 }
 0x932   :  { %v4535_v6 = vadd.f32 %v4902_v45, %v935_v5  ;;  %v4043_v7 = vpop.f32.mrb[5].mxu1 }
 0x934   :  { %4635 = vtanh.f32 %v4535_v6  ;;  %v3746_v18 = vmul.f32 -1.442695, %v4535_v6 }
 0x939   :  { %v1105_v9 = vpop.f32.mrb[6].mxu1 }
 0x93a   :  { %v1110_v11 = vrot.slane %v1105_v9, 2  ;;  %v4065_v12 = vpop.f32.mrb[7].mxu1 }
 0x93c   :  { %v1112_v14 = vadd.f32 %v1110_v11, %v4828_v15 }
 0x93e   :  { %v4636_v16 = vpop.eup %4635  ;;  %4637 = vtanh.f32 %v1112_v14  ;;  %v3749_v20 = vmul.f32 -1.442695, %v1112_v14 }
 0x93f   :  { %949 = vrot.lane.b32.xlu0 %v4636_v16, %s4744_s30  ;;  %4639 = vpow2.f32 %v3746_v18 }
 0x940   :  { %4641 = vpow2.f32 %v3749_v20 }
 0x948   :  { %v4638_v17 = vpop.eup %4637 }
 0x949   :  { %1125 = vrot.lane.b32.xlu1 %v4638_v17, %s4744_s30  ;;  %v4640_v21 = vpop.eup %4639 }
 0x94a   :  { %v943_v22 = vadd.f32 1.0, %v4640_v21  ;;  %v4642_v24 = vpop.eup %4641 }
 0x94b   :  { %v1116_v25 = vadd.f32 1.0, %v4642_v24 }
 0x94c   :  { %4643 = vrcp.f32 %v943_v22 }
 0x94d   :  { %4645 = vrcp.f32 %v1116_v25 }
 0x956   :  { %v4644_v26 = vpop.eup %4643 }
 0x957   :  { %v4646_v28 = vpop.eup %4645  ;;  %v947_v31 = vmul.f32 %v4644_v26, %v4955_v53 }
 0x958   :  { %v1123_v38 = vmul.f32 %v4646_v28, %v1121_v36 }
 0x9b1   :  { %v950_v27 = vpop.permute.xlu0 %949 }
 0x9b2   :  { %v952_v15 = vmul.f32 %v4644_v26, %v950_v27 }
 0x9b4   :  { %954 = vrot.lane.b32.xlu0 %v952_v15, %s4745_s5 }
 0x9bb   :  { %v1126_v29 = vpop.permute.xlu1 %1125 }
 0x9bc   :  { %v1128_v30 = vmul.f32 %v4646_v28, %v1126_v29 }
 0x9be   :  { %1130 = vrot.lane.b32.xlu1 %v1128_v30, %s4745_s5 }
 0xa26   :  { %v955_v33 = vpop.permute.xlu0 %954 }
 0xa27   :  { %v4997_v35 = vadd.f32 %v955_v33, %v947_v31 }
 0xa29   :  { %4647 = vtanh.f32 %v4997_v35 }
 0xa30   :  { %v1131_v39 = vpop.permute.xlu1 %1130 }
 0xa31   :  { %v5001_v40 = vadd.f32 %v1131_v39, %v1123_v38 }
 0xa33   :  { %v4648_v42 = vpop.eup %4647  ;;  %4649 = vtanh.f32 %v5001_v40  ;;  %v1395_v18 = vrot.slane %v5001_v40, 6 }
 0xa34   :  { %960 = vrot.lane.b32.xlu0 %v4648_v42, %s4744_s30 }
 0xa3d   :  { %v4650_v43 = vpop.eup %4649 }
 0xa3e   :  { %1136 = vrot.lane.b32.xlu1 %v4650_v43, %s4744_s30 }
 0xaa6   :  { %v961_v44 = vpop.permute.xlu0 %960 }
 0xaa7   :  { %v5006_v46 = vmul.f32 %v4644_v26, %v961_v44 }
 0xaa9   :  { %965 = vrot.lane.b32.xlu0 %v5006_v46, %s4744_s30 }
 0xab0   :  { %v1137_v47 = vpop.permute.xlu1 %1136 }
 0xab1   :  { %v1139_v48 = vmul.f32 %v4646_v28, %v1137_v47 }
 0xab3   :  { %v1141_v49 = vrot.slane %v1139_v48, 6 }
 0xab5   :  { %1142 = vrot.lane.b32.xlu1 %v1141_v49, %s4744_s30 }
 0xb1b   :  { %v966_v50 = vpop.permute.xlu0 %965 }
 0xb1c   :  { %4053 = vmatmul.mubr.msk.f32.vlgmr.msra.gmra.mrb[8].mxu0 %vm141_vm2, %v966_v50 }
 0xb1d   :  { %4310 = vmatpush3.bf16.msra.mxu0 %v4863_v37  ;;  %4074 = vmatprep.mubr.msk.f32.mxu0 %vm4742_vm1, %v4743_v4 }
 0xb1e   :  { %4311 = vmatprep.subr.bf16.mxu0 %v4741_v3 }
 0xb21   :  { %4313 = vmatpush3.bf16.msra.mxu0 %v4877_v41 }
 0xb22   :  { %4320 = vmatprep.subr.bf16.mxu0 %v4741_v3 }
 0xb27   :  { %v1143_v51 = vpop.permute.xlu1 %1142 }
 0xb28   :  { %4075 = vmatmul.mubr.msk.f32.vlgmr.msra.gmra.mrb[8].mxu0 %vm141_vm2, %v1143_v51 }
 0xb29   :  { %4322 = vmatpush3.bf16.msra.mxu0 %v4805_v8  ;;  %4096 = vmatprep.mubr.msk.f32.mxu0 %vm4742_vm1, %v4743_v4 }
 0xb2a   :  { %4323 = vmatprep.subr.bf16.mxu0 %v4741_v3 }
 0xb2d   :  { %4325 = vmatpush3.bf16.msra.mxu0 %v4813_v10 }
 0xb2e   :  { %4332 = vmatprep.subr.bf16.mxu0 %v4741_v3 }
 0xb30   :  { %4097 = vmatmul.mubr.msk.f32.vlgmr.msra.gmra.mrb[10].mxu0 %vm141_vm2, %v1143_v51 }
 0xb31   :  { %4334 = vmatpush3.bf16.msra.mxu0 %v4845_v32  ;;  %4118 = vmatprep.mubr.msk.f32.mxu0 %vm4742_vm1, %v4743_v4 }
 0xb32   :  { %4335 = vmatprep.subr.bf16.mxu0 %v4741_v3 }
 0xb35   :  { %4337 = vmatpush3.bf16.msra.mxu0 %v4851_v34 }
 0xb36   :  { %4344 = vmatprep.subr.bf16.mxu0 %v4741_v3 }
 0xbfb   :  { %v1212_v52 = vpop.f32.mrb[8].mxu0 }
 0xbfc   :  { %v4536_v53 = vadd.f32 %v4902_v45, %v1212_v52  ;;  %v4076_v54 = vpop.f32.mrb[9].mxu0 }
 0xbfe   :  { %4651 = vtanh.f32 %v4536_v53  ;;  %v3751_v60 = vmul.f32 -1.442695, %v4536_v53 }
 0xc03   :  { %v1382_v55 = vpop.f32.mrb[10].mxu0 }
 0xc04   :  { %v1386_v56 = vadd.f32 %v1382_v55, %v4826_v13  ;;  %v4098_v57 = vpop.f32.mrb[11].mxu0 }
 0xc06   :  { %4653 = vtanh.f32 %v1386_v56  ;;  %v3754_v62 = vmul.f32 -1.442695, %v1386_v56 }
 0xc07   :  { %4655 = vpow2.f32 %v3751_v60 }
 0xc08   :  { %v4652_v58 = vpop.eup %4651  ;;  %4657 = vpow2.f32 %v3754_v62 }
 0xc09   :  { %1226 = vrot.lane.b32.xlu0 %v4652_v58, %s4744_s30 }
 0xc10   :  { %v4654_v59 = vpop.eup %4653 }
 0xc11   :  { %1399 = vrot.lane.b32.xlu1 %v4654_v59, %s4744_s30  ;;  %v4656_v63 = vpop.eup %4655 }
 0xc12   :  { %v1220_v0 = vadd.f32 1.0, %v4656_v63  ;;  %v4658_v1 = vpop.eup %4657 }
 0xc13   :  { %v1390_v2 = vadd.f32 1.0, %v4658_v1 }
 0xc14   :  { %4659 = vrcp.f32 %v1220_v0 }
 0xc15   :  { %4661 = vrcp.f32 %v1390_v2 }
 0xc1e   :  { %v4660_v5 = vpop.eup %4659 }
 0xc1f   :  { %v4662_v9 = vpop.eup %4661  ;;  %v1224_v14 = vmul.f32 %v4660_v5, %v4997_v35 }
 0xc20   :  { %v1397_v20 = vmul.f32 %v4662_v9, %v1395_v18 }
 0xc7b   :  { %v1227_v6 = vpop.permute.xlu0 %1226 }
 0xc7c   :  { %v1229_v7 = vmul.f32 %v4660_v5, %v1227_v6 }
 0xc7e   :  { %1231 = vrot.lane.b32.xlu0 %v1229_v7, %s4745_s5 }
 0xc83   :  { %v1400_v11 = vpop.permute.xlu1 %1399 }
 0xc84   :  { %v1402_v12 = vmul.f32 %v4662_v9, %v1400_v11 }
 0xc86   :  { %1404 = vrot.lane.b32.xlu1 %v1402_v12, %s4745_s5 }
 0xcf0   :  { %v1232_v16 = vpop.permute.xlu0 %1231 }
 0xcf1   :  { %v5039_v17 = vadd.f32 %v1232_v16, %v1224_v14 }
 0xcf3   :  { %4663 = vtanh.f32 %v5039_v17 }
 0xcf8   :  { %v1405_v21 = vpop.permute.xlu1 %1404 }
 0xcf9   :  { %v5043_v22 = vadd.f32 %v1405_v21, %v1397_v20 }
 0xcfb   :  { %4665 = vtanh.f32 %v5043_v22  ;;  %v1671_v62 = vrot.slane %v5043_v22, 6 }
 0xcfd   :  { %v4664_v24 = vpop.eup %4663 }
 0xcfe   :  { %1237 = vrot.lane.b32.xlu0 %v4664_v24, %s4744_s30 }
 0xd05   :  { %v4666_v25 = vpop.eup %4665 }
 0xd06   :  { %1410 = vrot.lane.b32.xlu1 %v4666_v25, %s4744_s30 }
 0xd70   :  { %v1238_v26 = vpop.permute.xlu0 %1237 }
 0xd71   :  { %v5048_v27 = vmul.f32 %v4660_v5, %v1238_v26 }
 0xd73   :  { %1242 = vrot.lane.b32.xlu0 %v5048_v27, %s4744_s30 }
 0xd78   :  { %v1411_v15 = vpop.permute.xlu1 %1410 }
 0xd79   :  { %v1413_v28 = vmul.f32 %v4662_v9, %v1411_v15 }
 0xd7b   :  { %1415 = vrot.lane.b32.xlu1 %v1413_v28, %s4744_s30 }
 0xde5   :  { %v1243_v29 = vpop.permute.xlu0 %1242 }
 0xde6   :  { %4086 = vmatmul.mubr.msk.f32.vlgmr.msra.gmra.mrb[8].mxu1 %vm141_vm2, %v1243_v29 }
 0xde7   :  { %4328 = vmatpush3.bf16.msra.mxu1 %v4863_v37  ;;  %4107 = vmatprep.mubr.msk.f32.mxu1 %vm4742_vm1, %v4743_v4 }
 0xde8   :  { %4329 = vmatprep.subr.bf16.mxu1 %v4741_v3 }
 0xdeb   :  { %4331 = vmatpush3.bf16.msra.mxu1 %v4877_v41 }
 0xdec   :  { %4338 = vmatprep.subr.bf16.mxu1 %v4741_v3 }
 0xded   :  { %v1416_v30 = vpop.permute.xlu1 %1415 }
 0xdee   :  { %4108 = vmatmul.mubr.msk.f32.vlgmr.msra.gmra.mrb[8].mxu1 %vm141_vm2, %v1416_v30 }
 0xdef   :  { %4340 = vmatpush3.bf16.msra.mxu1 %v4805_v8  ;;  %4129 = vmatprep.mubr.msk.f32.mxu1 %vm4742_vm1, %v4743_v4 }
 0xdf0   :  { %4341 = vmatprep.subr.bf16.mxu1 %v4741_v3 }
 0xdf3   :  { %4343 = vmatpush3.bf16.msra.mxu1 %v4813_v10 }
 0xdf4   :  { %4350 = vmatprep.subr.bf16.mxu1 %v4741_v3 }
 0xdf6   :  { %4130 = vmatmul.mubr.msk.f32.vlgmr.msra.gmra.mrb[10].mxu1 %vm141_vm2, %v1416_v30 }
 0xdf7   :  { %4352 = vmatpush3.bf16.msra.mxu1 %v4845_v32  ;;  %4151 = vmatprep.mubr.msk.f32.mxu1 %vm4742_vm1, %v4743_v4 }
 0xdf8   :  { %4353 = vmatprep.subr.bf16.mxu1 %v4741_v3 }
 0xdfb   :  { %4355 = vmatpush3.bf16.msra.mxu1 %v4851_v34 }
 0xdfc   :  { %4362 = vmatprep.subr.bf16.mxu1 %v4741_v3 }
 0xec1   :  { %v1485_v31 = vpop.f32.mrb[8].mxu1 }
 0xec2   :  { %v4537_v33 = vadd.f32 %v4902_v45, %v1485_v31  ;;  %v4109_v35 = vpop.f32.mrb[9].mxu1 }
 0xec4   :  { %4667 = vtanh.f32 %v4537_v33  ;;  %v3756_v44 = vmul.f32 -1.442695, %v4537_v33 }
 0xec9   :  { %v1655_v36 = vpop.f32.mrb[10].mxu1 }
 0xeca   :  { %v1660_v38 = vrot.slane %v1655_v36, 6  ;;  %v4131_v39 = vpop.f32.mrb[11].mxu1 }
 0xecc   :  { %v1662_v40 = vadd.f32 %v1660_v38, %v4826_v13 }
 0xece   :  { %v4668_v42 = vpop.eup %4667  ;;  %4669 = vtanh.f32 %v1662_v40  ;;  %v3759_v47 = vmul.f32 -1.442695, %v1662_v40 }
 0xecf   :  { %1499 = vrot.lane.b32.xlu0 %v4668_v42, %s4744_s30  ;;  %4671 = vpow2.f32 %v3756_v44 }
 0xed0   :  { %4673 = vpow2.f32 %v3759_v47 }
 0xed8   :  { %v4670_v43 = vpop.eup %4669 }
 0xed9   :  { %1675 = vrot.lane.b32.xlu1 %v4670_v43, %s4744_s30  ;;  %v4672_v48 = vpop.eup %4671 }
 0xeda   :  { %v1493_v49 = vadd.f32 1.0, %v4672_v48  ;;  %v4674_v50 = vpop.eup %4673 }
 0xedb   :  { %v1666_v51 = vadd.f32 1.0, %v4674_v50 }
 0xedc   :  { %4675 = vrcp.f32 %v1493_v49 }
 0xedd   :  { %4677 = vrcp.f32 %v1666_v51 }
 0xee6   :  { %v4676_v52 = vpop.eup %4675 }
 0xee7   :  { %v4678_v55 = vpop.eup %4677  ;;  %v1497_v58 = vmul.f32 %v4676_v52, %v5039_v17 }
 0xee8   :  { %v1673_v63 = vmul.f32 %v4678_v55, %v1671_v62 }
 0xf41   :  { %v1500_v53 = vpop.permute.xlu0 %1499 }
 0xf42   :  { %v1502_v54 = vmul.f32 %v4676_v52, %v1500_v53 }
 0xf44   :  { %1504 = vrot.lane.b32.xlu0 %v1502_v54, %s4745_s5 }
 0xf4b   :  { %v1676_v56 = vpop.permute.xlu1 %1675 }
 0xf4c   :  { %v1678_v57 = vmul.f32 %v4678_v55, %v1676_v56 }
 0xf4e   :  { %1680 = vrot.lane.b32.xlu1 %v1678_v57, %s4745_s5 }
 0xfb6   :  { %v1505_v59 = vpop.permute.xlu0 %1504 }
 0xfb7   :  { %v5081_v60 = vadd.f32 %v1505_v59, %v1497_v58 }
 0xfb9   :  { %4679 = vtanh.f32 %v5081_v60 }
 0xfc0   :  { %v1681_v0 = vpop.permute.xlu1 %1680 }
 0xfc1   :  { %v5085_v1 = vadd.f32 %v1681_v0, %v1673_v63 }
 0xfc3   :  { %v4680_v2 = vpop.eup %4679  ;;  %4681 = vtanh.f32 %v5085_v1  ;;  %v1948_v47 = vrot.slane %v5085_v1, 6 }
 0xfc4   :  { %1510 = vrot.lane.b32.xlu0 %v4680_v2, %s4744_s30 }
 0xfcd   :  { %v4682_v5 = vpop.eup %4681 }
 0xfce   :  { %1686 = vrot.lane.b32.xlu1 %v4682_v5, %s4744_s30 }
0x1036   :  { %v1511_v6 = vpop.permute.xlu0 %1510 }
0x1037   :  { %v5090_v7 = vmul.f32 %v4676_v52, %v1511_v6 }
0x1039   :  { %1515 = vrot.lane.b32.xlu0 %v5090_v7, %s4744_s30 }
0x1040   :  { %v1687_v9 = vpop.permute.xlu1 %1686 }
0x1041   :  { %v1689_v11 = vmul.f32 %v4678_v55, %v1687_v9 }
0x1043   :  { %v1691_v12 = vrot.slane %v1689_v11, 2 }
0x1045   :  { %1692 = vrot.lane.b32.xlu1 %v1691_v12, %s4744_s30 }
0x10ab   :  { %v5095_v14 = vpop.permute.xlu0 %1515 }
0x10ac   :  { %4119 = vmatmul.mubr.msk.f32.vlgmr.msra.gmra.mrb[12].mxu0 %vm141_vm2, %v5095_v14 }
0x10ad   :  { %4346 = vmatpush3.bf16.msra.mxu0 %v4863_v37  ;;  %4140 = vmatprep.mubr.msk.f32.mxu0 %vm4742_vm1, %v4743_v4 }
0x10ae   :  { %4347 = vmatprep.subr.bf16.mxu0 %v4741_v3 }
0x10b1   :  { %4349 = vmatpush3.bf16.msra.mxu0 %v4877_v41 }
0x10b2   :  { %4356 = vmatprep.subr.bf16.mxu0 %v4741_v3 }
0x10b7   :  { %v1693_v16 = vpop.permute.xlu1 %1692 }
0x10b8   :  { %4141 = vmatmul.mubr.msk.f32.vlgmr.msra.gmra.mrb[12].mxu0 %vm141_vm2, %v1693_v16 }
0x10b9   :  { %4358 = vmatpush3.bf16.msra.mxu0 %v4805_v8  ;;  %4162 = vmatprep.mubr.msk.f32.mxu0 %vm4742_vm1, %v4743_v4 }
0x10ba   :  { %4359 = vmatprep.subr.bf16.mxu0 %v4741_v3 }
0x10bd   :  { %4361 = vmatpush3.bf16.msra.mxu0 %v4813_v10 }
0x10be   :  { %4368 = vmatprep.subr.bf16.mxu0 %v4741_v3 }
0x10c0   :  { %4163 = vmatmul.mubr.msk.f32.vlgmr.msra.gmra.mrb[14].mxu0 %vm141_vm2, %v1693_v16 }
0x10c1   :  { %4370 = vmatpush3.bf16.msra.mxu0 %v4845_v32  ;;  %4184 = vmatprep.mubr.msk.f32.mxu0 %vm4742_vm1, %v4743_v4 }
0x10c2   :  { %4371 = vmatprep.subr.bf16.mxu0 %v4741_v3 }
0x10c5   :  { %4373 = vmatpush3.bf16.msra.mxu0 %v4851_v34 }
0x10c6   :  { %4380 = vmatprep.subr.bf16.mxu0 %v4741_v3 }
0x118b   :  { %v1762_v17 = vpop.f32.mrb[12].mxu0 }
0x118c   :  { %v4538_v18 = vadd.f32 %v4902_v45, %v1762_v17  ;;  %v4142_v20 = vpop.f32.mrb[13].mxu0 }
0x118e   :  { %4683 = vtanh.f32 %v4538_v18  ;;  %v3761_v34 = vmul.f32 -1.442695, %v4538_v18 }
0x1193   :  { %v1932_v21 = vpop.f32.mrb[14].mxu0 }
0x1194   :  { %v1937_v22 = vrot.slane %v1932_v21, 4  ;;  %v4164_v24 = vpop.f32.mrb[15].mxu0 }
0x1196   :  { %v1939_v25 = vadd.f32 %v1937_v22, %v4826_v13 }
0x1198   :  { %v4684_v32 = vpop.eup %4683  ;;  %4685 = vtanh.f32 %v1939_v25  ;;  %v3764_v15 = vmul.f32 -1.442695, %v1939_v25 }
0x1199   :  { %1776 = vrot.lane.b32.xlu0 %v4684_v32, %s4744_s30  ;;  %4687 = vpow2.f32 %v3761_v34 }
0x119a   :  { %4689 = vpow2.f32 %v3764_v15 }
0x11a2   :  { %v4686_v26 = vpop.eup %4685 }
0x11a3   :  { %1952 = vrot.lane.b32.xlu1 %v4686_v26, %s4744_s30  ;;  %v4688_v28 = vpop.eup %4687 }
0x11a4   :  { %v1770_v29 = vadd.f32 1.0, %v4688_v28  ;;  %v4690_v30 = vpop.eup %4689 }
0x11a5   :  { %v1943_v31 = vadd.f32 1.0, %v4690_v30 }
0x11a6   :  { %4691 = vrcp.f32 %v1770_v29 }
0x11a7   :  { %4693 = vrcp.f32 %v1943_v31 }
0x11b0   :  { %v4692_v33 = vpop.eup %4691 }
0x11b1   :  { %v4694_v38 = vpop.eup %4693  ;;  %v1774_v42 = vmul.f32 %v4692_v33, %v5081_v60 }
0x11b2   :  { %v1950_v48 = vmul.f32 %v4694_v38, %v1948_v47 }
0x120b   :  { %v1777_v35 = vpop.permute.xlu0 %1776 }
0x120c   :  { %v1779_v36 = vmul.f32 %v4692_v33, %v1777_v35 }
0x120e   :  { %1781 = vrot.lane.b32.xlu0 %v1779_v36, %s4745_s5 }
0x1215   :  { %v1953_v39 = vpop.permute.xlu1 %1952 }
0x1216   :  { %v1955_v40 = vmul.f32 %v4694_v38, %v1953_v39 }
0x1218   :  { %1957 = vrot.lane.b32.xlu1 %v1955_v40, %s4745_s5 }
0x1280   :  { %v1782_v43 = vpop.permute.xlu0 %1781 }
0x1281   :  { %v5126_v44 = vadd.f32 %v1782_v43, %v1774_v42 }
0x1283   :  { %4695 = vtanh.f32 %v5126_v44 }
0x128a   :  { %v1958_v49 = vpop.permute.xlu1 %1957 }
0x128b   :  { %v5130_v50 = vadd.f32 %v1958_v49, %v1950_v48 }
0x128d   :  { %v4696_v51 = vpop.eup %4695  ;;  %4697 = vtanh.f32 %v5130_v50  ;;  %v2225_v34 = vrot.slane %v5130_v50, 6 }
0x128e   :  { %1787 = vrot.lane.b32.xlu0 %v4696_v51, %s4744_s30 }
0x1297   :  { %v4698_v52 = vpop.eup %4697 }
0x1298   :  { %1963 = vrot.lane.b32.xlu1 %v4698_v52, %s4744_s30 }
0x1300   :  { %v1788_v53 = vpop.permute.xlu0 %1787 }
0x1301   :  { %v5135_v54 = vmul.f32 %v4692_v33, %v1788_v53 }
0x1303   :  { %1792 = vrot.lane.b32.xlu0 %v5135_v54, %s4744_s30 }
0x130a   :  { %v1964_v55 = vpop.permute.xlu1 %1963 }
0x130b   :  { %v1966_v56 = vmul.f32 %v4694_v38, %v1964_v55 }
0x130d   :  { %v1968_v57 = vrot.slane %v1966_v56, 4 }
0x130f   :  { %1969 = vrot.lane.b32.xlu1 %v1968_v57, %s4744_s30  ;;  %v2369_v57 = vld [vmem:[%s5872_s3 + $0x8] sm:$0xff] }
0x1375   :  { %v1793_v58 = vpop.permute.xlu0 %1792 }
0x1376   :  { %4152 = vmatmul.mubr.msk.f32.vlgmr.msra.gmra.mrb[12].mxu1 %vm141_vm2, %v1793_v58  ;;  %v2373_v58 = vld [vmem:[%s5872_s3 + $0x28] sm:$0xff] }
0x1377   :  { %4364 = vmatpush3.bf16.msra.mxu1 %v4863_v37  ;;  %4173 = vmatprep.mubr.msk.f32.mxu1 %vm4742_vm1, %v4743_v4 }
0x1378   :  { %4365 = vmatprep.subr.bf16.mxu1 %v4741_v3 }
0x137b   :  { %4367 = vmatpush3.bf16.msra.mxu1 %v4877_v41 }
0x137c   :  { %4374 = vmatprep.subr.bf16.mxu1 %v4741_v3 }
0x1381   :  { %v1970_v59 = vpop.permute.xlu1 %1969 }
0x1382   :  { %4174 = vmatmul.mubr.msk.f32.vlgmr.msra.gmra.mrb[12].mxu1 %vm141_vm2, %v1970_v59 }
0x1383   :  { %4376 = vmatpush3.bf16.msra.mxu1 %v4805_v8  ;;  %4195 = vmatprep.mubr.msk.f32.mxu1 %vm4742_vm1, %v4743_v4 }
0x1384   :  { %4377 = vmatprep.subr.bf16.mxu1 %v4741_v3 }
0x1387   :  { %4379 = vmatpush3.bf16.msra.mxu1 %v4813_v10 }
0x138a   :  { %4196 = vmatmul.mubr.msk.f32.vlgmr.msra.gmra.mrb[14].mxu1 %vm141_vm2, %v1970_v59  ;;  %v2371_v59 = vld [vmem:[%s5872_s3 + $0x18] sm:$0xff] }
0x1455   :  { %v2039_v60 = vpop.f32.mrb[12].mxu1 }
0x1456   :  { %v4539_v62 = vadd.f32 %v4902_v45, %v2039_v60  ;;  %v4175_v63 = vpop.f32.mrb[13].mxu1  ;;  %v4386_v60 = vpack.c.bf16 %v2373_v58, %v2369_v57 }
0x1457   :  { %v2368_v63 = vld [vmem:[%s5872_s3] sm:$0xff] }
0x1458   :  { %4699 = vtanh.f32 %v4539_v62  ;;  %v3766_v10 = vmul.f32 -1.442695, %v4539_v62  ;;  %v2375_v62 = vld [vmem:[%s5872_s3 + $0x38] sm:$0xff]  ;;  %4387 = vmatprep.subr.bf16.mxu1 %v4386_v60  ;;  %v2404_v60 = vld [vmem:[%s5872_s3 + $0x120] sm:$0xff] }
0x145d   :  { %v2209_v0 = vpop.f32.mrb[14].mxu1 }
0x145e   :  { %v2214_v1 = vrot.slane %v2209_v0, 2  ;;  %v4197_v2 = vpop.f32.mrb[15].mxu1  ;;  %v2372_v0 = vld [vmem:[%s5872_s3 + $0x20] sm:$0xff] }
0x145f   :  { %v4388_v2 = vpack.c.bf16 %v2372_v0, %v2368_v63  ;;  %v2406_v0 = vld [vmem:[%s5872_s3 + $0x130] sm:$0xff] }
0x1460   :  { %v2216_v5 = vadd.f32 %v2214_v1, %v4826_v13  ;;  %v4450_v1 = vpack.c.bf16 %v2375_v62, %v2371_v59  ;;  %v2400_v59 = vld [vmem:[%s5872_s3 + $0x100] sm:$0xff]  ;;  %v2402_v62 = vld [vmem:[%s5872_s3 + $0x110] sm:$0xff] }
0x1461   :  { %4389 = vmatpush1.bf16.msra.mxu1 %v4388_v2  ;;  %v2413_v2 = vld [vmem:[%s5872_s3 + $0x168] sm:$0xff] }
0x1462   :  { %v4700_v8 = vpop.eup %4699  ;;  %4701 = vtanh.f32 %v2216_v5  ;;  %v3769_v9 = vmul.f32 -1.442695, %v2216_v5  ;;  %v2370_v5 = vld [vmem:[%s5872_s3 + $0x10] sm:$0xff] }
0x1463   :  { %2053 = vrot.lane.b32.xlu0 %v4700_v8, %s4744_s30  ;;  %4703 = vpow2.f32 %v3766_v10  ;;  %v2374_v8 = vld [vmem:[%s5872_s3 + $0x30] sm:$0xff] }
0x1464   :  { %4705 = vpow2.f32 %v3769_v9  ;;  %v4452_v10 = vpack.c.bf16 %v2374_v8, %v2370_v5  ;;  %v2381_v9 = vld [vmem:[%s5872_s3 + $0x68] sm:$0xff]  ;;  %v2411_v5 = vld [vmem:[%s5872_s3 + $0x158] sm:$0xff] }
0x1465   :  { %v2415_v8 = vld [vmem:[%s5872_s3 + $0x178] sm:$0xff] }
0x146c   :  { %v4702_v6 = vpop.eup %4701 }
0x146d   :  { %2229 = vrot.lane.b32.xlu1 %v4702_v6, %s4744_s30  ;;  %v4704_v11 = vpop.eup %4703  ;;  %v2377_v6 = vld [vmem:[%s5872_s3 + $0x48] sm:$0xff] }
0x146e   :  { %v2047_v12 = vadd.f32 1.0, %v4704_v11  ;;  %v4706_v16 = vpop.eup %4705  ;;  %v2379_v11 = vld [vmem:[%s5872_s3 + $0x58] sm:$0xff] }
0x146f   :  { %v2220_v17 = vadd.f32 1.0, %v4706_v16  ;;  %v4390_v16 = vpack.c.bf16 %v2381_v9, %v2377_v6  ;;  %v4404_v6 = vpack.c.bf16 %v2404_v60, %v2400_v59  ;;  %v2438_v59 = vld [vmem:[%s5872_s3 + $0x230] sm:$0xff]  ;;  %v2441_v60 = vld [vmem:[%s5872_s3 + $0x248] sm:$0xff] }
0x1470   :  { %4707 = vrcp.f32 %v2047_v12  ;;  %v2383_v12 = vld [vmem:[%s5872_s3 + $0x78] sm:$0xff] }
0x1471   :  { %4709 = vrcp.f32 %v2220_v17  ;;  %v4454_v17 = vpack.c.bf16 %v2383_v12, %v2379_v11  ;;  %4391 = vmatprep.subr.bf16.mxu1 %v4390_v16  ;;  %v2408_v11 = vld [vmem:[%s5872_s3 + $0x140] sm:$0xff]  ;;  %v2410_v16 = vld [vmem:[%s5872_s3 + $0x150] sm:$0xff] }
0x1472   :  { %v2412_v12 = vld [vmem:[%s5872_s3 + $0x160] sm:$0xff] }
0x147a   :  { %v4708_v18 = vpop.eup %4707 }
0x147b   :  { %v4710_v21 = vpop.eup %4709  ;;  %v2051_v25 = vmul.f32 %v4708_v18, %v5126_v44 }
0x147c   :  { %v2227_v15 = vmul.f32 %v4710_v21, %v2225_v34  ;;  %v2387_v34 = vld [vmem:[%s5872_s3 + $0x98] sm:$0xff] }
0x14d5   :  { %v2054_v20 = vpop.permute.xlu0 %2053 }
0x14d6   :  { %v2056_v13 = vmul.f32 %v4708_v18, %v2054_v20  ;;  %v2380_v20 = vld [vmem:[%s5872_s3 + $0x60] sm:$0xff] }
0x14d8   :  { %2058 = vrot.lane.b32.xlu0 %v2056_v13, %s4745_s5  ;;  %v2378_v13 = vld [vmem:[%s5872_s3 + $0x50] sm:$0xff] }
0x14df   :  { %v2230_v22 = vpop.permute.xlu1 %2229 }
0x14e0   :  { %v2232_v24 = vmul.f32 %v4710_v21, %v2230_v22  ;;  %v2382_v22 = vld [vmem:[%s5872_s3 + $0x70] sm:$0xff] }
0x14e2   :  { %2234 = vrot.lane.b32.xlu1 %v2232_v24, %s4745_s5  ;;  %v2385_v24 = vld [vmem:[%s5872_s3 + $0x88] sm:$0xff] }
0x154a   :  { %v2059_v32 = vpop.permute.xlu0 %2058 }
0x154b   :  { %v2061_v26 = vadd.f32 %v2059_v32, %v2051_v25  ;;  %v2389_v25 = vld [vmem:[%s5872_s3 + $0xa8] sm:$0xff]  ;;  %v4456_v32 = vpack.c.bf16 %v2382_v22, %v2378_v13  ;;  %v2423_v22 = vld [vmem:[%s5872_s3 + $0x1b8] sm:$0xff] }
0x154c   :  { %v2421_v13 = vld [vmem:[%s5872_s3 + $0x1a8] sm:$0xff] }
0x154d   :  { %4711 = vtanh.f32 %v2061_v26 }
0x1554   :  { %v2235_v28 = vpop.permute.xlu1 %2234 }
0x1555   :  { %v2237_v29 = vadd.f32 %v2235_v28, %v2227_v15  ;;  %v2391_v15 = vld [vmem:[%s5872_s3 + $0xb8] sm:$0xff]  ;;  %v2384_v28 = vld [vmem:[%s5872_s3 + $0x80] sm:$0xff] }
0x1557   :  { %v4712_v30 = vpop.eup %4711  ;;  %4713 = vtanh.f32 %v2237_v29 }
0x1558   :  { %2064 = vrot.lane.b32.xlu0 %v4712_v30, %s4744_s30  ;;  %v4458_v30 = vpack.c.bf16 %v2391_v15, %v2387_v34  ;;  %v2420_v34 = vld [vmem:[%s5872_s3 + $0x1a0] sm:$0xff]  ;;  %v2418_v15 = vld [vmem:[%s5872_s3 + $0x190] sm:$0xff] }
0x1561   :  { %v4714_v31 = vpop.eup %4713 }
0x1562   :  { %2240 = vrot.lane.b32.xlu1 %v4714_v31, %s4744_s30  ;;  %v2388_v31 = vld [vmem:[%s5872_s3 + $0xa0] sm:$0xff] }
0x15ca   :  { %v2065_v33 = vpop.permute.xlu0 %2064 }
0x15cb   :  { %v5164_v35 = vmul.f32 %v4708_v18, %v2065_v33  ;;  %v2376_v18 = vld [vmem:[%s5872_s3 + $0x40] sm:$0xff]  ;;  %v2386_v33 = vld [vmem:[%s5872_s3 + $0x90] sm:$0xff] }
0x15cd   :  { %2069 = vrot.lane.b32.xlu0 %v5164_v35, %s4744_s30 }
0x15d4   :  { %v2241_v36 = vpop.permute.xlu1 %2240 }
0x15d5   :  { %v2243_v38 = vmul.f32 %v4710_v21, %v2241_v36  ;;  %v4392_v21 = vpack.c.bf16 %v2380_v20, %v2376_v18  ;;  %v2390_v36 = vld [vmem:[%s5872_s3 + $0xb0] sm:$0xff]  ;;  %v2417_v20 = vld [vmem:[%s5872_s3 + $0x188] sm:$0xff] }
0x15d6   :  { %v2414_v18 = vld [vmem:[%s5872_s3 + $0x170] sm:$0xff] }
0x15d7   :  { %v2245_v39 = vrot.slane %v2243_v38, 6  ;;  %4393 = vmatpush1.bf16.msra.mxu1 %v4392_v21  ;;  %v4396_v38 = vpack.c.bf16 %v2388_v31, %v2384_v28  ;;  %v2419_v21 = vld [vmem:[%s5872_s3 + $0x198] sm:$0xff]  ;;  %v2429_v31 = vld [vmem:[%s5872_s3 + $0x1e8] sm:$0xff] }
0x15d8   :  { %v4474_v28 = vpack.c.bf16 %v2423_v22, %v2419_v21  ;;  %v2448_v22 = vld [vmem:[%s5872_s3 + $0x280] sm:$0xff] }
0x15d9   :  { %2246 = vrot.lane.b32.xlu1 %v2245_v39, %s4744_s30  ;;  %v2393_v39 = vld [vmem:[%s5872_s3 + $0xc8] sm:$0xff] }
0x163f   :  { %v2070_v40 = vpop.permute.xlu0 %2069 }
0x1640   :  { %4185 = vmatmul.mubr.msk.f32.vlgmr.msra.gmra.mrb[16].mxu0 %vm141_vm2, %v2070_v40  ;;  %v2397_v40 = vld [vmem:[%s5872_s3 + $0xe8] sm:$0xff] }
0x1641   :  { %4382 = vmatpush3.bf16.msra.mxu0 %v4863_v37  ;;  %4206 = vmatprep.mubr.msk.f32.mxu0 %vm4742_vm1, %v4743_v4 }
0x1642   :  { %4383 = vmatprep.subr.bf16.mxu0 %v4741_v3 }
0x1645   :  { %4385 = vmatpush3.bf16.msra.mxu0 %v4877_v41 }
0x1646   :  { %4451 = vmatprep.subr.bf16.mxu0 %v4450_v1  ;;  %v2409_v1 = vld [vmem:[%s5872_s3 + $0x148] sm:$0xff] }
0x1647   :  { %v4406_v9 = vpack.c.bf16 %v2413_v2, %v2409_v1 }
0x164b   :  { %v2247_v42 = vpop.permute.xlu1 %2246 }
0x164c   :  { %4207 = vmatmul.mubr.msk.f32.vlgmr.msra.gmra.mrb[16].mxu0 %vm141_vm2, %v2247_v42  ;;  %v2395_v42 = vld [vmem:[%s5872_s3 + $0xd8] sm:$0xff] }
0x164d   :  { %4453 = vmatpush1.bf16.msra.mxu0 %v4452_v10  ;;  %v4468_v10 = vpack.c.bf16 %v2406_v0, %v2402_v62  ;;  %v2445_v62 = vld [vmem:[%s5872_s3 + $0x268] sm:$0xff]  ;;  %v2447_v0 = vld [vmem:[%s5872_s3 + $0x278] sm:$0xff] }
0x164e   :  { %4455 = vmatprep.subr.bf16.mxu0 %v4454_v17  ;;  %v4470_v17 = vpack.c.bf16 %v2415_v8, %v2411_v5  ;;  %v4422_v5 = vpack.c.bf16 %v2445_v62, %v2441_v60  ;;  %v2440_v8 = vld [vmem:[%s5872_s3 + $0x240] sm:$0xff] }
0x1651   :  { %4457 = vmatpush1.bf16.msra.mxu0 %v4456_v32  ;;  %v4410_v32 = vpack.c.bf16 %v2421_v13, %v2417_v20 }
0x1652   :  { %4459 = vmatprep.subr.bf16.mxu0 %v4458_v30  ;;  %v2425_v30 = vld [vmem:[%s5872_s3 + $0x1c8] sm:$0xff] }
0x171f   :  { %v2316_v43 = vpop.f32.mrb[16].mxu0 }
0x1720   :  { %v4540_v44 = vadd.f32 %v4902_v45, %v2316_v43  ;;  %v4208_v47 = vpop.f32.mrb[17].mxu0  ;;  %v4576_v45 = vpack.i.bf16 %v4964_v61, %v5135_v54  ;;  %v4460_v43 = vpack.c.bf16 %v2390_v36, %v2386_v33  ;;  %v2427_v33 = vld [vmem:[%s5872_s3 + $0x1d8] sm:$0xff] }
0x1721   :  { %v2399_v47 = vld [vmem:[%s5872_s3 + $0xf8] sm:$0xff] }
0x1722   :  { %4715 = vtanh.f32 %v4540_v44  ;;  %v3771_v49 = vmul.f32 -1.442695, %v4540_v44  ;;  %v4398_v44 = vpack.c.bf16 %v2397_v40, %v2393_v39  ;;  %4461 = vmatpush1.bf16.msra.mxu0 %v4460_v43  ;;  %v2431_v36 = vld [vmem:[%s5872_s3 + $0x1f8] sm:$0xff]  ;;  %v4414_v40 = vpack.c.bf16 %v2429_v31, %v2425_v30  ;;  %v2428_v43 = vld [vmem:[%s5872_s3 + $0x1e0] sm:$0xff] }
0x1724   :  { %4717 = vpow2.f32 %v3771_v49  ;;  %v2396_v49 = vld [vmem:[%s5872_s3 + $0xe0] sm:$0xff] }
0x172c   :  { %v4716_v48 = vpop.eup %4715 }
0x172d   :  { %2330 = vrot.lane.b32.xlu0 %v4716_v48, %s4744_s30  ;;  %v2392_v48 = vld [vmem:[%s5872_s3 + $0xc0] sm:$0xff] }
0x172e   :  { %v4718_v37 = vpop.eup %4717 }
0x172f   :  { %v2324_v50 = vadd.f32 1.0, %v4718_v37  ;;  %v4462_v37 = vpack.c.bf16 %v2399_v47, %v2395_v42  ;;  %v2424_v42 = vld [vmem:[%s5872_s3 + $0x1c0] sm:$0xff]  ;;  %v4478_v47 = vpack.c.bf16 %v2431_v36, %v2427_v33 }
0x1730   :  { %v2456_v36 = vld [vmem:[%s5872_s3 + $0x2c0] sm:$0xff] }
0x1731   :  { %4719 = vrcp.f32 %v2324_v50  ;;  %v2394_v50 = vld [vmem:[%s5872_s3 + $0xd0] sm:$0xff]  ;;  %4463 = vmatprep.subr.bf16.mxu0 %v4462_v37  ;;  %v2437_v37 = vld [vmem:[%s5872_s3 + $0x228] sm:$0xff] }
0x173b   :  { %v5178_v51 = vpop.eup %4719 }
0x173c   :  { %v2328_v53 = vmul.f32 %v5178_v51, %v2061_v26  ;;  %v4394_v26 = vpack.c.bf16 %v2389_v25, %v2385_v24  ;;  %v4408_v24 = vpack.c.bf16 %v2412_v12, %v2408_v11  ;;  %v4472_v25 = vpack.c.bf16 %v2414_v18, %v2410_v16  ;;  %v2446_v11 = vld [vmem:[%s5872_s3 + $0x270] sm:$0xff]  ;;  %v2449_v12 = vld [vmem:[%s5872_s3 + $0x288] sm:$0xff]  ;;  %v2455_v18 = vld [vmem:[%s5872_s3 + $0x2b8] sm:$0xff] }
0x173d   :  { %v2453_v16 = vld [vmem:[%s5872_s3 + $0x2a8] sm:$0xff] }
0x173e   :  { %4395 = vmatprep.subr.bf16.mxu1 %v4394_v26  ;;  %v2416_v26 = vld [vmem:[%s5872_s3 + $0x180] sm:$0xff]  ;;  %v4426_v21 = vpack.c.bf16 %v2453_v16, %v2449_v12 }
0x173f   :  { %4397 = vmatpush1.bf16.msra.mxu1 %v4396_v38  ;;  %v4412_v38 = vpack.c.bf16 %v2420_v34, %v2416_v26  ;;  %v2454_v26 = vld [vmem:[%s5872_s3 + $0x2b0] sm:$0xff]  ;;  %v2457_v34 = vld [vmem:[%s5872_s3 + $0x2c8] sm:$0xff] }
0x1740   :  { %4399 = vmatprep.subr.bf16.mxu1 %v4398_v44  ;;  %v2426_v44 = vld [vmem:[%s5872_s3 + $0x1d0] sm:$0xff] }
0x179f   :  { %v2331_v52 = vpop.permute.xlu0 %2330 }
0x17a0   :  { %v2333_v41 = vmul.f32 %v5178_v51, %v2331_v52  ;;  %v2398_v52 = vld [vmem:[%s5872_s3 + $0xf0] sm:$0xff] }
0x17a1   :  { %v4464_v57 = vpack.c.bf16 %v2398_v52, %v2394_v50  ;;  %v2435_v50 = vld [vmem:[%s5872_s3 + $0x218] sm:$0xff] }
0x17a2   :  { %2335 = vrot.lane.b32.xlu1 %v2333_v41, %s4745_s5  ;;  %v2401_v41 = vld [vmem:[%s5872_s3 + $0x108] sm:$0xff]  ;;  %v2439_v52 = vld [vmem:[%s5872_s3 + $0x238] sm:$0xff] }
0x17a3   :  { %4465 = vmatpush1.bf16.msra.mxu0 %v4464_v57  ;;  %v2434_v57 = vld [vmem:[%s5872_s3 + $0x210] sm:$0xff] }
0x17a4   :  { %v4484_v2 = vpack.c.bf16 %v2438_v59, %v2434_v57  ;;  %v2477_v57 = vld [vmem:[%s5872_s3 + $0x368] sm:$0xff]  ;;  %v2479_v59 = vld [vmem:[%s5872_s3 + $0x378] sm:$0xff] }
0x17a6   :  { %4577 = vrot.lane.b32.xlu1 %v4576_v45, %s4745_s5  ;;  %v2405_v45 = vld [vmem:[%s5872_s3 + $0x128] sm:$0xff] }
0x17a7   :  { %v4402_v58 = vpack.c.bf16 %v2405_v45, %v2401_v41  ;;  %v4416_v41 = vpack.c.bf16 %v2428_v43, %v2424_v42  ;;  %v2462_v42 = vld [vmem:[%s5872_s3 + $0x2f0] sm:$0xff]  ;;  %v2465_v43 = vld [vmem:[%s5872_s3 + $0x308] sm:$0xff] }
0x1814   :  { %v2336_v55 = vpop.permute.xlu1 %2335 }
0x1815   :  { %v2338_v56 = vadd.f32 %v2336_v55, %v2328_v53  ;;  %v2403_v53 = vld [vmem:[%s5872_s3 + $0x118] sm:$0xff] }
0x1816   :  { %v2407_v55 = vld [vmem:[%s5872_s3 + $0x138] sm:$0xff] }
0x1817   :  { %4721 = vtanh.f32 %v2338_v56  ;;  %v4400_v56 = vpack.c.bf16 %v2396_v49, %v2392_v48  ;;  %v4466_v63 = vpack.c.bf16 %v2407_v55, %v2403_v53  ;;  %v2430_v48 = vld [vmem:[%s5872_s3 + $0x1f0] sm:$0xff]  ;;  %v2433_v49 = vld [vmem:[%s5872_s3 + $0x208] sm:$0xff]  ;;  %v2432_v55 = vld [vmem:[%s5872_s3 + $0x200] sm:$0xff] }
0x1818   :  { %v4480_v45 = vpack.c.bf16 %v2430_v48, %v2426_v44  ;;  %v4418_v53 = vpack.c.bf16 %v2437_v37, %v2433_v49  ;;  %v2469_v44 = vld [vmem:[%s5872_s3 + $0x328] sm:$0xff]  ;;  %v2471_v48 = vld [vmem:[%s5872_s3 + $0x338] sm:$0xff] }
0x1819   :  { %4401 = vmatpush1.bf16.msra.mxu1 %v4400_v56  ;;  %4467 = vmatprep.subr.bf16.mxu0 %v4466_v63  ;;  %v2436_v56 = vld [vmem:[%s5872_s3 + $0x220] sm:$0xff]  ;;  %v2443_v63 = vld [vmem:[%s5872_s3 + $0x258] sm:$0xff] }
0x181a   :  { %4403 = vmatprep.subr.bf16.mxu1 %v4402_v58  ;;  %4469 = vmatpush1.bf16.msra.mxu0 %v4468_v10  ;;  %v4482_v58 = vpack.c.bf16 %v2439_v52, %v2435_v50  ;;  %v4420_v1 = vpack.c.bf16 %v2436_v56, %v2432_v55  ;;  %v2442_v10 = vld [vmem:[%s5872_s3 + $0x250] sm:$0xff]  ;;  %v4434_v50 = vpack.c.bf16 %v2469_v44, %v2465_v43  ;;  %v2464_v52 = vld [vmem:[%s5872_s3 + $0x300] sm:$0xff]  ;;  %v2473_v56 = vld [vmem:[%s5872_s3 + $0x348] sm:$0xff]  ;;  %v4578_v44 = vpop.permute.xlu1 %4577 }
0x181b   :  { %4471 = vmatprep.subr.bf16.mxu0 %v4470_v17  ;;  %v2451_v17 = vld [vmem:[%s5872_s3 + $0x298] sm:$0xff]  ;;  %v4488_v13 = vpack.c.bf16 %v2446_v11, %v2442_v10  ;;  %v2470_v55 = vld [vmem:[%s5872_s3 + $0x330] sm:$0xff]  ;;  %v2485_v10 = vld [vmem:[%s5872_s3 + $0x3a8] sm:$0xff] }
0x181c   :  { %v2487_v11 = vld [vmem:[%s5872_s3 + $0x3b8] sm:$0xff] }
0x181d   :  { %4405 = vmatpush1.bf16.msra.mxu1 %v4404_v6  ;;  %v2444_v6 = vld [vmem:[%s5872_s3 + $0x260] sm:$0xff] }
0x181e   :  { %4407 = vmatprep.subr.bf16.mxu1 %v4406_v9  ;;  %4473 = vmatpush1.bf16.msra.mxu0 %v4472_v25  ;;  %v4486_v9 = vpack.c.bf16 %v2447_v0, %v2443_v63  ;;  %v4424_v20 = vpack.c.bf16 %v2444_v6, %v2440_v8  ;;  %v2450_v25 = vld [vmem:[%s5872_s3 + $0x290] sm:$0xff]  ;;  %v4438_v63 = vpack.c.bf16 %v2477_v57, %v2473_v56  ;;  %v2472_v0 = vld [vmem:[%s5872_s3 + $0x340] sm:$0xff]  ;;  %v2481_v6 = vld [vmem:[%s5872_s3 + $0x388] sm:$0xff]  ;;  %v2503_v57 = vlaneseq }
0x181f   :  { %4475 = vmatprep.subr.bf16.mxu0 %v4474_v28  ;;  %v2459_v28 = vld [vmem:[%s5872_s3 + $0x2d8] sm:$0xff]  ;;  %v4492_v31 = vpack.c.bf16 %v2454_v26, %v2450_v25  ;;  %v2478_v8 = vld [vmem:[%s5872_s3 + $0x370] sm:$0xff]  ;;  %v2493_v26 = vld [vmem:[%s5872_s3 + $0x3e8] sm:$0xff] }
0x1820   :  { %v2501_v56 = vld [vmem:[%s5872_s3 + $0x438] sm:$0xff] }
0x1821   :  { %v4722_v29 = vpop.eup %4721  ;;  %4409 = vmatpush1.bf16.msra.mxu1 %v4408_v24  ;;  %v2452_v24 = vld [vmem:[%s5872_s3 + $0x2a0] sm:$0xff] }
0x1822   :  { %2341 = vrot.lane.b32.xlu0 %v4722_v29, %s4744_s30  ;;  %v2422_v29 = vld [vmem:[%s5872_s3 + $0x1b0] sm:$0xff]  ;;  %4411 = vmatprep.subr.bf16.mxu1 %v4410_v32  ;;  %v4490_v32 = vpack.c.bf16 %v2455_v18, %v2451_v17  ;;  %v4428_v30 = vpack.c.bf16 %v2452_v24, %v2448_v22  ;;  %v4442_v17 = vpack.c.bf16 %v2485_v10, %v2481_v6  ;;  %v2480_v18 = vld [vmem:[%s5872_s3 + $0x380] sm:$0xff] }
0x1823   :  { %v4476_v39 = vpack.c.bf16 %v2422_v29, %v2418_v15  ;;  %v2461_v15 = vld [vmem:[%s5872_s3 + $0x2e8] sm:$0xff]  ;;  %v2463_v29 = vld [vmem:[%s5872_s3 + $0x2f8] sm:$0xff]  ;;  %v2486_v22 = vld [vmem:[%s5872_s3 + $0x3b0] sm:$0xff] }
0x1824   :  { %v4430_v33 = vpack.c.bf16 %v2461_v15, %v2457_v34  ;;  %v2491_v34 = vld [vmem:[%s5872_s3 + $0x3d8] sm:$0xff] }
0x1825   :  { %4413 = vmatpush1.bf16.msra.mxu1 %v4412_v38  ;;  %4477 = vmatpush1.bf16.msra.mxu0 %v4476_v39  ;;  %v2460_v38 = vld [vmem:[%s5872_s3 + $0x2e0] sm:$0xff]  ;;  %v2458_v39 = vld [vmem:[%s5872_s3 + $0x2d0] sm:$0xff] }
0x1826   :  { %4415 = vmatprep.subr.bf16.mxu1 %v4414_v40  ;;  %4479 = vmatprep.subr.bf16.mxu0 %v4478_v47  ;;  %v4494_v40 = vpack.c.bf16 %v2463_v29, %v2459_v28  ;;  %v2467_v47 = vld [vmem:[%s5872_s3 + $0x318] sm:$0xff]  ;;  %v4432_v49 = vpack.c.bf16 %v2460_v38, %v2456_v36  ;;  %v4496_v37 = vpack.c.bf16 %v2462_v42, %v2458_v39  ;;  %v2488_v29 = vld [vmem:[%s5872_s3 + $0x3c0] sm:$0xff]  ;;  %v2490_v36 = vld [vmem:[%s5872_s3 + $0x3d0] sm:$0xff] }
0x1827   :  { %v2495_v28 = vld [vmem:[%s5872_s3 + $0x3f8] sm:$0xff]  ;;  %v2494_v38 = vld [vmem:[%s5872_s3 + $0x3f0] sm:$0xff] }
0x1828   :  { %v4512_v39 = vpack.c.bf16 %v2494_v38, %v2490_v36 }
0x1829   :  { %4417 = vmatpush1.bf16.msra.mxu1 %v4416_v41  ;;  %4481 = vmatpush1.bf16.msra.mxu0 %v4480_v45  ;;  %v2468_v41 = vld [vmem:[%s5872_s3 + $0x320] sm:$0xff]  ;;  %v2466_v45 = vld [vmem:[%s5872_s3 + $0x310] sm:$0xff] }
0x182a   :  { %4419 = vmatprep.subr.bf16.mxu1 %v4418_v53  ;;  %4483 = vmatprep.subr.bf16.mxu0 %v4482_v58  ;;  %v4498_v53 = vpack.c.bf16 %v2471_v48, %v2467_v47  ;;  %v2475_v58 = vld [vmem:[%s5872_s3 + $0x358] sm:$0xff]  ;;  %v4436_v60 = vpack.c.bf16 %v2468_v41, %v2464_v52  ;;  %v4500_v62 = vpack.c.bf16 %v2470_v55, %v2466_v45  ;;  %v4580_v47 = vunpack.i.h.bf16 %v4578_v44 }
0x182b   :  { %v4579_v48 = vunpack.i.l.bf16 %v4578_v44  ;;  %v5631_v44 = vand.u32 127, %v2503_v57 }
0x182d   :  { %4421 = vmatpush1.bf16.msra.mxu1 %v4420_v1  ;;  %4485 = vmatpush1.bf16.msra.mxu0 %v4484_v2  ;;  %v2476_v1 = vld [vmem:[%s5872_s3 + $0x360] sm:$0xff]  ;;  %v2474_v2 = vld [vmem:[%s5872_s3 + $0x350] sm:$0xff] }
0x182e   :  { %4423 = vmatprep.subr.bf16.mxu1 %v4422_v5  ;;  %4487 = vmatprep.subr.bf16.mxu0 %v4486_v9  ;;  %v4502_v5 = vpack.c.bf16 %v2479_v59, %v2475_v58  ;;  %v2483_v9 = vld [vmem:[%s5872_s3 + $0x398] sm:$0xff]  ;;  %v4440_v12 = vpack.c.bf16 %v2476_v1, %v2472_v0  ;;  %v4504_v16 = vpack.c.bf16 %v2478_v8, %v2474_v2  ;;  %v5595_v58 = vshrl.u32 %v2503_v57, 7 }
0x1830   :  { %v5598_v59 = vsub.s32 0, %v5595_v58  ;;  %vm2870_vm6 = vcmp.lt.s32.totalorder %v5631_v44, %v5595_v58 }
0x1831   :  { %4425 = vmatpush1.bf16.msra.mxu1 %v4424_v20  ;;  %4489 = vmatpush1.bf16.msra.mxu0 %v4488_v13  ;;  %v2484_v20 = vld [vmem:[%s5872_s3 + $0x3a0] sm:$0xff]  ;;  %v4506_v13 = vpack.c.bf16 %v2487_v11, %v2483_v9  ;;  %v2513_v11 = vsub.s32 2, %v5595_v58 }
0x1832   :  { %4427 = vmatprep.subr.bf16.mxu1 %v4426_v21  ;;  %4491 = vmatprep.subr.bf16.mxu0 %v4490_v32  ;;  %v2482_v21 = vld [vmem:[%s5872_s3 + $0x390] sm:$0xff]  ;;  %v4444_v24 = vpack.c.bf16 %v2484_v20, %v2480_v18  ;;  %v2489_v32 = vld [vmem:[%s5872_s3 + $0x3c8] sm:$0xff] }
0x1833   :  { %v4508_v25 = vpack.c.bf16 %v2486_v22, %v2482_v21  ;;  %v4446_v15 = vpack.c.bf16 %v2493_v26, %v2489_v32 }
0x1835   :  { %4429 = vmatpush1.bf16.msra.mxu1 %v4428_v30  ;;  %4493 = vmatpush1.bf16.msra.mxu0 %v4492_v31  ;;  %v2492_v30 = vld [vmem:[%s5872_s3 + $0x3e0] sm:$0xff]  ;;  %v4510_v31 = vpack.c.bf16 %v2495_v28, %v2491_v34  ;;  %v4747_v34 = vmov 0  }
0x1836   :  { %4431 = vmatprep.subr.bf16.mxu1 %v4430_v33  ;;  %4495 = vmatprep.subr.bf16.mxu0 %v4494_v40  ;;  %v4448_v33 = vpack.c.bf16 %v2492_v30, %v2488_v29 }
0x1837   :  { %4587 = vset.pattern.permute.xlu0 %v4747_v34  ;;  %4586 = vset.pattern.permute.xlu1 %v4747_v34 }
0x1839   :  { %4433 = vmatpush1.bf16.msra.mxu1 %v4432_v49  ;;  %4497 = vmatpush1.bf16.msra.mxu0 %v4496_v37  ;;  %v2360_v49 = vsel %vm141_vm2, %v4924_v23, %v4580_v47  ;;  %v2365_v37 = vsel %vm141_vm2, %v5095_v14, %v4579_v48  ;;  %v2499_v23 = vld [vmem:[%s5872_s3 + $0x428] sm:$0xff]  ;;  %v2498_v14 = vld [vmem:[%s5872_s3 + $0x420] sm:$0xff] }
0x183a   :  { %4435 = vmatprep.subr.bf16.mxu1 %v4434_v50  ;;  %4499 = vmatprep.subr.bf16.mxu0 %v4498_v53  ;;  %v2366_v41 = vsel %vm2361_vm3, %v2365_v37, %v5164_v35  ;;  %v2362_v45 = vsel %vm2361_vm3, %v2360_v49, %v5006_v46 }
0x183d   :  { %4437 = vmatpush1.bf16.msra.mxu1 %v4436_v60  ;;  %4501 = vmatpush1.bf16.msra.mxu0 %v4500_v62  ;;  %v5601_v60 = vsub.s32 1, %v5595_v58  ;;  %v3772_v62 = vld [vmem:[%s5872_s3 + $0x400] ss:$8 sm:$0xf] }
0x183e   :  { %4439 = vmatprep.subr.bf16.mxu1 %v4438_v63  ;;  %4503 = vmatprep.subr.bf16.mxu0 %v4502_v5  ;;  %v2517_v63 = vsub.s32 3, %v5595_v58  ;;  %v2506_v0 = vrot.slane %v3772_v62, %v5598_v59 }
0x183f   :  { %v2510_v1 = vrot.slane %v3772_v62, %v5601_v60 }
0x1840   :  { %v2518_v2 = vrot.slane %v3772_v62, %v2517_v63 }
0x1841   :  { %4441 = vmatpush1.bf16.msra.mxu1 %v4440_v12  ;;  %4505 = vmatpush1.bf16.msra.mxu0 %v4504_v16 }
0x1842   :  { %4443 = vmatprep.subr.bf16.mxu1 %v4442_v17  ;;  %4507 = vmatprep.subr.bf16.mxu0 %v4506_v13  ;;  %v2514_v17 = vrot.slane %v3772_v62, %v2513_v11  ;;  %v2500_v13 = vld [vmem:[%s5872_s3 + $0x430] sm:$0xff] }
0x1845   :  { %4445 = vmatpush1.bf16.msra.mxu1 %v4444_v24  ;;  %4509 = vmatpush1.bf16.msra.mxu0 %v4508_v25 }
0x1846   :  { %4447 = vmatprep.subr.bf16.mxu1 %v4446_v15  ;;  %4511 = vmatprep.subr.bf16.mxu0 %v4510_v31 }
0x1849   :  { %4449 = vmatpush1.bf16.msra.mxu1 %v4448_v33  ;;  %4513 = vmatpush1.bf16.msra.mxu0 %v4512_v39  ;;  %v4748_v33 = vmov 1966171168  }
0x184a   :  { %4514 = vmatprep.subr.bf16.mxu0 %v4741_v3  ;;  %2669 = vmatprep.subr.mxu1 %v2499_v23  ;;  %v2831_v36 = vunpack.c.l.s4 %v4748_v33 }
0x184c   :  { %v2832_v38 = vunpack.c.0.s8 %v2831_v36  ;;  %v2925_v36 = vsub.s32 5, %v5595_v58 }
0x184e   :  { %v2835_v39 = vsub.s32 %v2832_v38, %v5595_v58 }
0x1894   :  { %v2342_v40 = vpop.permute.xlu0 %2341 }
0x1895   :  { %v5573_v42 = vmul.f32 %v5178_v51, %v2342_v40 }
0x1897   :  { %v4581_v43 = vpack.i.bf16 %v5048_v27, %v5573_v42 }
0x1899   :  { %4582 = vrot.lane.b32.xlu0 %v4581_v43, %s4746_s29 }
0x190b   :  { %v4583_v50 = vpop.permute.xlu0 %4582 }
0x190c   :  { %v4585_v51 = vunpack.i.h.bf16 %v4583_v50  ;;  %v4584_v52 = vunpack.i.l.bf16 %v4583_v50 }
0x190e   :  { %v2367_v53 = vsel %vm2363_vm4, %v2366_v41, %v4584_v52  ;;  %v2364_v55 = vsel %vm2363_vm4, %v2362_v45, %v4585_v51 }
0x190f   :  { %2587 = vmatprep.mubr.f32.mxu1 %v2367_v53  ;;  %2658 = vmatprep.mubr.f32.mxu0 %v2367_v53 }
0x1910   :  { %2588 = vmatmul.mubr.f32.vlgmr.msra.gmra.mrb[16].mxu1 %v2364_v55  ;;  %2659 = vmatmul.mubr.f32.vlgmr.msra.gmra.mrb[18].mxu0 %v2364_v55 }
0x1911   :  { %4221 = vmatprep.mubr.msk.f32.mxu0 %vm4742_vm1, %v4743_v4  ;;  %2670 = vmatpush1.xpose.msra.mxu1 %v2498_v14 }
0x1912   :  { %2739 = vmatprep.subr.mxu1 %v2501_v56 }
0x19e3   :  { %v2589_v5 = vpop.f32.mrb[16].mxu1  ;;  %v2660_v8 = vpop.f32.mrb[18].mxu0 }
0x19e4   :  { %v2591_v6 = vpop.f32.mrb[17].mxu1  ;;  %v2662_v10 = vpop.f32.mrb[19].mxu0  ;;  %v2590_v9 = vadd.f32 %v2589_v5, %v2506_v0  ;;  %v2661_v18 = vadd.f32 %v2660_v8, %v2514_v17  ;;  %v2906_v17 = vrot.slane %v5595_v58, %v5598_v59 }
0x19e5   :  { %v2592_v12 = vadd.f32 %v2591_v6, %v2510_v1  ;;  %v2663_v16 = vadd.f32 %v2662_v10, %v2518_v2 }
0x19e7   :  { %4723 = vtanh.f32 %v2592_v12 }
0x19e8   :  { %4725 = vtanh.f32 %v2590_v9  ;;  %v2914_v9 = vrot.slane %v5595_v58, %v2513_v11  ;;  %v2910_v11 = vrot.slane %v5595_v58, %v5601_v60 }
0x19e9   :  { %4727 = vtanh.f32 %v2663_v16 }
0x19ea   :  { %4729 = vtanh.f32 %v2661_v18 }
0x19f1   :  { %v4724_v20 = vpop.eup %4723 }
0x19f2   :  { %v4726_v21 = vpop.eup %4725  ;;  %2733 = vmatprep.mubr.f32.mxu1 %v4724_v20 }
0x19f3   :  { %v4728_v22 = vpop.eup %4727  ;;  %2734 = vmatmul.mubr.f32.vlgmr.msra.gmra.mrb[18].mxu1 %v4726_v21 }
0x19f4   :  { %2740 = vmatpush1.xpose.msra.mxu1 %v2500_v13  ;;  %2803 = vmatprep.mubr.f32.mxu1 %v4728_v22  ;;  %v4730_v24 = vpop.eup %4729  ;;  %v2918_v22 = vrot.slane %v5595_v58, %v2517_v63 }
0x19f5   :  { %4524 = vmatprep.subr.bf16.mxu1 %v4741_v3 }
0x19fb   :  { %2804 = vmatmul.mubr.f32.vlgmr.msra.gmra.mrb[18].mxu1 %v4730_v24  ;;  %v2921_v24 = vsub.s32 4, %v5595_v58 }
0x19fc   :  { %4232 = vmatprep.mubr.msk.f32.mxu1 %vm4742_vm1, %v4743_v4 }
0x19fd   :  { %v2922_v33 = vrot.slane %v5595_v58, %v2921_v24 }
0x1ace   :  { %v2805_v25 = vpop.f32.mrb[18].mxu1 }
0x1acf   :  { %v2807_v32 = vpop.f32.mrb[19].mxu1  ;;  %v2810_v26 = vsel %vm2809_vm5, %v2805_v25, -inf }
0x1ad0   :  { %2811 = vmax.xlane.f32.xlu1 %v2810_v26 }
0x1b5d   :  { %v2812_v15 = vpop.xlane.xlu1 %2811 }
0x1b5e   :  { %v2813_v28 = vsub.f32 %v2805_v25, %v2812_v15 }
0x1b60   :  { %v5623_v29 = vmul.f32 0.5, %v2813_v28 }
0x1b62   :  { %v2818_v30 = vrot.slane %v5623_v29, %v5598_v59  ;;  %v2825_v31 = vrot.slane %v5623_v29, %v5601_v60  ;;  %v2836_v40 = vrot.slane %v5623_v29, %v2835_v39 }
0x1b64   :  { %2820 = vbcast.lane.b32.xlu0 %v2818_v30, 256  ;;  %v2844_v43 = vrot.slane %v2836_v40, %v2835_v39  ;;  %v2837_v47 = vcombine.high %v2836_v40, %v2836_v40 }
0x1b66   :  { %v2859_v48 = vrot.slane %v2844_v43, %v5598_v59  ;;  %v2851_v49 = vrot.slane %v2837_v47, %v2835_v39  ;;  %v2926_v47 = vrot.slane %v5595_v58, %v2925_v36 }
0x1b68   :  { %2827 = vbcast.lane.b32.xlu0 %v2825_v31, 256  ;;  %v2863_v50 = vrot.slane %v2851_v49, %v5598_v59 }
0x1bd6   :  { %v2821_v37 = vpop.permute.xlu0 %2820 }
0x1bd7   :  { %vm2866_vm7 = vcmp.gt.f32.partialorder %v2859_v48, %v2821_v37  ;;  %vm2868_vm8 = vcmp.eq.f32.partialorder %v2859_v48, %v2821_v37 }
0x1bd8   :  { %vm2871_vm9 = vmand %vm2868_vm8, %vm2870_vm6 }
0x1bd9   :  { %vm2873_vm10 = vmor %vm2866_vm7, %vm2871_vm9 }
0x1bda   :  { %v2875_v51 = vsel %vm2873_vm10, 1, %v4747_v34  ;;  %v2828_v52 = vpop.permute.xlu0 %2827 }
0x1bdb   :  { %vm2867_vm11 = vcmp.gt.f32.partialorder %v2863_v50, %v2828_v52  ;;  %vm2869_vm12 = vcmp.eq.f32.partialorder %v2863_v50, %v2828_v52  ;;  %v2877_v41 = vsel %vm55_vm0, %v2875_v51, 0 }
0x1bdc   :  { %vm2872_vm13 = vmand %vm2869_vm12, %vm2870_vm6  ;;  %v2879_v45 = vshrl.u32 %v2877_v41, 16  ;;  %v2878_v0 = vand.u32 65535, %v2877_v41  ;;  %v2933_v41 = vsub.s32 7, %v5595_v58 }
0x1bdd   :  { %vm2874_vm14 = vmor %vm2867_vm11, %vm2872_vm13 }
0x1bde   :  { %v2876_v53 = vsel %vm2874_vm14, 1, %v4747_v34  ;;  %v2881_v55 = vcvt.s32.f32 %v2879_v45  ;;  %v2880_v1 = vcvt.s32.f32 %v2878_v0 }
0x1bdf   :  { %v2890_v23 = vsel %vm55_vm0, %v2876_v53, 0 }
0x1be0   :  { %2884 = vadd.xlane.f32.xlu0 %v2881_v55  ;;  %v2892_v14 = vshrl.u32 %v2890_v23, 16  ;;  %v2891_v56 = vand.u32 65535, %v2890_v23 }
0x1be2   :  { %v2894_v57 = vcvt.s32.f32 %v2892_v14  ;;  %v2893_v62 = vcvt.s32.f32 %v2891_v56  ;;  %v2934_v14 = vrot.slane %v5595_v58, %v2933_v41 }
0x1be4   :  { %2897 = vadd.xlane.f32.xlu1 %v2894_v57  ;;  %2895 = vadd.xlane.f32.xlu0 %v2893_v62 }
0x1be8   :  { %2882 = vadd.xlane.f32.xlu1 %v2880_v1 }
0x1bf9   :  { %2984 = vbcast.lane.b32.xlu1 %v2859_v48, 256  ;;  %v2929_v48 = vsub.s32 6, %v5595_v58 }
0x1bfa   :  { %2987 = vbcast.lane.b32.xlu0 %v2863_v50, 256 }
0x1bfb   :  { %v2930_v52 = vrot.slane %v5595_v58, %v2929_v48 }
0x1c6d   :  { %v2885_v2 = vpop.xlane.xlu0 %2884 }
0x1c6e   :  { %v2887_v6 = vcvt.f32.s32 %v2885_v2 }
0x1c70   :  { %v2888_v20 = vshll.u32 %v2887_v6, 16 }
0x1c71   :  { %v2898_v5 = vpop.xlane.xlu1 %2897  ;;  %v2896_v8 = vpop.xlane.xlu0 %2895 }
0x1c72   :  { %v2900_v10 = vcvt.f32.s32 %v2898_v5  ;;  %v2899_v16 = vcvt.f32.s32 %v2896_v8 }
0x1c74   :  { %v2901_v12 = vshll.u32 %v2900_v10, 16 }
0x1c75   :  { %v2883_v18 = vpop.xlane.xlu1 %2882  ;;  %v2988_v32 = vpop.permute.xlu0 %2987 }
0x1c76   :  { %v5646_v13 = vadd.s32 %v2901_v12, %v2899_v16  ;;  %v2886_v21 = vcvt.f32.s32 %v2883_v18 }
0x1c78   :  { %v5652_v25 = vadd.s32 %v2888_v20, %v2886_v21  ;;  %vm2943_vm15 = vcmp.eq.s32.totalorder %v5646_v13, %v2906_v17  ;;  %vm2945_vm3 = vcmp.eq.s32.totalorder %v5646_v13, %v2914_v9  ;;  %vm2946_vm7 = vcmp.eq.s32.totalorder %v5646_v13, %v2918_v22 }
0x1c79   :  { %v3781_v26 = vsel %vm2943_vm15, 1.0, %v4743_v4  ;;  %v5661_v63 = vpop.permute.xlu1 %2984  ;;  %v3783_v30 = vsel %vm2945_vm3, 1.0, %v4743_v4  ;;  %vm2944_vm8 = vcmp.eq.s32.totalorder %v5646_v13, %v2910_v11  ;;  %v3784_v40 = vsel %vm2946_vm7, 1.0, %v4743_v4 }
0x1c7a   :  { %v2999_v15 = vmul.f32 %v3781_v26, %v2988_v32  ;;  %vm2935_vm4 = vcmp.eq.s32.totalorder %v5652_v25, %v2906_v17  ;;  %vm2936_vm6 = vcmp.eq.s32.totalorder %v5652_v25, %v2910_v11  ;;  %v3001_v39 = vmul.f32 %v3783_v30, %v2988_v32 }
0x1c7b   :  { %v3773_v28 = vsel %vm2935_vm4, 1.0, %v4743_v4  ;;  %v3774_v38 = vsel %vm2936_vm6, 1.0, %v4743_v4  ;;  %vm2947_vm9 = vcmp.eq.s32.totalorder %v5646_v13, %v2922_v33  ;;  %v3782_v49 = vsel %vm2944_vm8, 1.0, %v4743_v4 }
0x1c7c   :  { %3048 = vperm.xlu0 %4587, %v2999_v15   ;;  %v2991_v31 = vmul.f32 %v3773_v28, %v5661_v63  ;;  %v2992_v43 = vmul.f32 %v3774_v38, %v5661_v63  ;;  %v3002_v37 = vmul.f32 %v3784_v40, %v2988_v32  ;;  %vm2937_vm10 = vcmp.eq.s32.totalorder %v5652_v25, %v2914_v9 }
0x1c7d   :  { %v3785_v50 = vsel %vm2947_vm9, 1.0, %v4743_v4  ;;  %v3000_v51 = vmul.f32 %v3782_v49, %v2988_v32  ;;  %vm2948_vm11 = vcmp.eq.s32.totalorder %v5646_v13, %v2926_v47  ;;  %v3775_v45 = vsel %vm2937_vm10, 1.0, %v4743_v4 }
0x1c7e   :  { %3024 = vperm.xlu1 %4586, %v2991_v31   ;;  %v3003_v53 = vmul.f32 %v3785_v50, %v2988_v32  ;;  %vm2938_vm12 = vcmp.eq.s32.totalorder %v5652_v25, %v2918_v22  ;;  %v3786_v55 = vsel %vm2948_vm11, 1.0, %v4743_v4  ;;  %v2993_v23 = vmul.f32 %v3775_v45, %v5661_v63 }
0x1c7f   :  { %vm2949_vm13 = vcmp.eq.s32.totalorder %v5646_v13, %v2930_v52  ;;  %v3776_v56 = vsel %vm2938_vm12, 1.0, %v4743_v4  ;;  %v3004_v57 = vmul.f32 %v3786_v55, %v2988_v32  ;;  %vm2939_vm14 = vcmp.eq.s32.totalorder %v5652_v25, %v2922_v33 }
0x1c80   :  { %3054 = vperm.xlu0 %4587, %v3001_v39   ;;  %v3787_v62 = vsel %vm2949_vm13, 1.0, %v4743_v4  ;;  %v2994_v0 = vmul.f32 %v3776_v56, %v5661_v63  ;;  %vm2950_vm15 = vcmp.eq.s32.totalorder %v5646_v13, %v2934_v14  ;;  %v3777_v1 = vsel %vm2939_vm14, 1.0, %v4743_v4 }
0x1c81   :  { %v3005_v2 = vmul.f32 %v3787_v62, %v2988_v32  ;;  %vm2940_vm3 = vcmp.eq.s32.totalorder %v5652_v25, %v2926_v47  ;;  %v3788_v5 = vsel %vm2950_vm15, 1.0, %v4743_v4  ;;  %v2995_v8 = vmul.f32 %v3777_v1, %v5661_v63 }
0x1c82   :  { %3027 = vperm.xlu1 %4586, %v2992_v43   ;;  %v3778_v6 = vsel %vm2940_vm3, 1.0, %v4743_v4  ;;  %v3006_v10 = vmul.f32 %v3788_v5, %v2988_v32  ;;  %vm2941_vm4 = vcmp.eq.s32.totalorder %v5652_v25, %v2930_v52  ;;  %vm2942_vm6 = vcmp.eq.s32.totalorder %v5652_v25, %v2934_v14 }
0x1c83   :  { %v2996_v9 = vmul.f32 %v3778_v6, %v5661_v63  ;;  %v3779_v12 = vsel %vm2941_vm4, 1.0, %v4743_v4  ;;  %v3780_v17 = vsel %vm2942_vm6, 1.0, %v4743_v4  ;;  %v5707_v11 = vsub.s32 %v5631_v44, %v5595_v58 }
0x1c84   :  { %3057 = vperm.xlu0 %4587, %v3002_v37   ;;  %v2997_v16 = vmul.f32 %v3779_v12, %v5661_v63  ;;  %v2998_v18 = vmul.f32 %v3780_v17, %v5661_v63  ;;  %vm3135_vm7 = vcmask 1041409   ;;  %vm3137_vm8 = vcmask 1042434  }
0x1c85   :  { %vm3139_vm9 = vcmask 1043459   ;;  %vm3141_vm10 = vcmask 1044484   ;;  %vm3143_vm11 = vcmask 1045509   ;;  %vm3145_vm12 = vcmask 1046534  }
0x1c86   :  { %3051 = vperm.xlu1 %4586, %v3000_v51   ;;  %vm3147_vm13 = vcmask 1047559   ;;  %vm3164_vm14 = vcmp.le.s32.totalorder %v5631_v44, %v5595_v58 }
0x1c88   :  { %3060 = vperm.xlu0 %4587, %v3003_v53  }
0x1c8a   :  { %3030 = vperm.xlu1 %4586, %v2993_v23  }
0x1c8c   :  { %3063 = vperm.xlu0 %4587, %v3004_v57  }
0x1c8e   :  { %3033 = vperm.xlu1 %4586, %v2994_v0  }
0x1c90   :  { %3066 = vperm.xlu0 %4587, %v3005_v2  }
0x1c92   :  { %3036 = vperm.xlu1 %4586, %v2995_v8  }
0x1c94   :  { %3069 = vperm.xlu0 %4587, %v3006_v10  }
0x1c96   :  { %3039 = vperm.xlu1 %4586, %v2996_v9  }
0x1c9a   :  { %3042 = vperm.xlu1 %4586, %v2997_v16  }
0x1c9e   :  { %3045 = vperm.xlu1 %4586, %v2998_v18  }
0x1cfb   :  { %v3049_v20 = vpop.permute.xlu0 %3048 }
0x1cfc   :  { %v3106_v15 = vrot.slane %v3049_v20, %v5707_v11 }
0x1cfd   :  { %v3025_v13 = vpop.permute.xlu1 %3024 }
0x1cfe   :  { %v3074_v56 = vrot.slane %v3025_v13, %v5707_v11 }
0x1cff   :  { %v3055_v21 = vpop.permute.xlu0 %3054 }
0x1d00   :  { %v3114_v30 = vrot.slane %v3055_v21, %v5707_v11  ;;  %v3789_v21 = vsel %vm3164_vm14, 1.0, %v4743_v4 }
0x1d01   :  { %v3028_v22 = vpop.permute.xlu1 %3027 }
0x1d02   :  { %v3078_v53 = vrot.slane %v3028_v22, %v5707_v11 }
0x1d03   :  { %v3058_v24 = vpop.permute.xlu0 %3057 }
0x1d04   :  { %v3118_v38 = vrot.slane %v3058_v24, %v5707_v11  ;;  %v3136_v1 = vsel %vm3135_vm7, %v3078_v53, %v3074_v56 }
0x1d05   :  { %v3052_v32 = vpop.permute.xlu1 %3051 }
0x1d06   :  { %v3110_v25 = vrot.slane %v3052_v32, %v5707_v11 }
0x1d07   :  { %v3061_v26 = vpop.permute.xlu0 %3060 }
0x1d08   :  { %v3149_v63 = vsel %vm3135_vm7, %v3110_v25, %v3106_v15  ;;  %v3122_v39 = vrot.slane %v3061_v26, %v5707_v11 }
0x1d09   :  { %v3031_v28 = vpop.permute.xlu1 %3030  ;;  %v3150_v33 = vsel %vm3137_vm8, %v3114_v30, %v3149_v63 }
0x1d0a   :  { %v3151_v43 = vsel %vm3139_vm9, %v3118_v38, %v3150_v33  ;;  %v3082_v23 = vrot.slane %v3031_v28, %v5707_v11 }
0x1d0b   :  { %v3064_v31 = vpop.permute.xlu0 %3063  ;;  %v3152_v37 = vsel %vm3141_vm10, %v3122_v39, %v3151_v43 }
0x1d0c   :  { %v3126_v47 = vrot.slane %v3064_v31, %v5707_v11  ;;  %v3138_v5 = vsel %vm3137_vm8, %v3082_v23, %v3136_v1  ;;  %vm4756_vm8 = vmmov 1  }
0x1d0d   :  { %v3034_v36 = vpop.permute.xlu1 %3033 }
0x1d0e   :  { %v3153_v51 = vsel %vm3143_vm11, %v3126_v47, %v3152_v37  ;;  %v3086_v57 = vrot.slane %v3034_v36, %v5707_v11 }
0x1d0f   :  { %v3067_v40 = vpop.permute.xlu0 %3066 }
0x1d10   :  { %v3130_v48 = vrot.slane %v3067_v40, %v5707_v11  ;;  %v3140_v6 = vsel %vm3139_vm9, %v3086_v57, %v3138_v5  ;;  %v3233_v40 = vadd.s32 1, %v5631_v44 }
0x1d11   :  { %v3037_v49 = vpop.permute.xlu1 %3036 }
0x1d12   :  { %v3154_v45 = vsel %vm3145_vm12, %v3130_v48, %v3153_v51  ;;  %v3090_v62 = vrot.slane %v3037_v49, %v5707_v11  ;;  %v3234_v43 = vcvt.s32.f32 %v3233_v40 }
0x1d13   :  { %v3070_v50 = vpop.permute.xlu0 %3069 }
0x1d14   :  { %v3134_v52 = vrot.slane %v3070_v50, %v5707_v11  ;;  %v3142_v10 = vsel %vm3141_vm10, %v3090_v62, %v3140_v6  ;;  %vm3482_vm10 = vcmask 334848  }
0x1d15   :  { %v3040_v41 = vpop.permute.xlu1 %3039 }
0x1d16   :  { %v3155_v55 = vsel %vm3147_vm13, %v3134_v52, %v3154_v45  ;;  %v3094_v2 = vrot.slane %v3040_v41, %v5707_v11 }
0x1d17   :  { %v3161_v14 = vsel %vm55_vm0, %v3155_v55, 0.0 }
0x1d18   :  { %3162 = vadd.xlane.f32.xlu0 %v3161_v14  ;;  %v3144_v12 = vsel %vm3143_vm11, %v3094_v2, %v3142_v10  ;;  %vm3723_vm11 = vcmask 195584  }
0x1d19   :  { %v3043_v0 = vpop.permute.xlu1 %3042 }
0x1d1a   :  { %v3098_v8 = vrot.slane %v3043_v0, %v5707_v11 }
0x1d1c   :  { %v3146_v17 = vsel %vm3145_vm12, %v3098_v8, %v3144_v12 }
0x1d1d   :  { %v3046_v9 = vpop.permute.xlu1 %3045 }
0x1d1e   :  { %v3102_v16 = vrot.slane %v3046_v9, %v5707_v11 }
0x1d20   :  { %v3148_v18 = vsel %vm3147_vm13, %v3102_v16, %v3146_v17 }
0x1d21   :  { %v3158_v20 = vsel %vm55_vm0, %v3148_v18, 0.0 }
0x1d22   :  { %3159 = vadd.xlane.f32.xlu1 %v3158_v20 }
0x1da5   :  { %v5743_v13 = vpop.xlane.xlu0 %3162 }
0x1da6   :  { %v3176_v22 = vrot.slane %v5743_v13, %v5707_v11  ;;  %v3200_v24 = vmul.f32 %v5743_v13, %v5743_v13 }
0x1da8   :  { %v3192_v32 = vmul.f32 %v3789_v21, %v3176_v22  ;;  %v3210_v25 = vrot.slane %v3200_v24, %v5707_v11 }
0x1daa   :  { %v3196_v26 = vsel %vm55_vm0, %v3192_v32, 0.0  ;;  %v3226_v15 = vmul.f32 %v3789_v21, %v3210_v25 }
0x1dab   :  { %3197 = vadd.xlane.f32.xlu1 %v3196_v26 }
0x1dac   :  { %v3230_v28 = vsel %vm55_vm0, %v3226_v15, 0.0 }
0x1daf   :  { %v3160_v58 = vpop.xlane.xlu1 %3159  ;;  %3231 = vadd.xlane.f32.xlu1 %v3230_v28 }
0x1db0   :  { %v3172_v63 = vrot.slane %v3160_v58, %v5707_v11  ;;  %v3199_v30 = vmul.f32 %v3160_v58, %v3160_v58 }
0x1db2   :  { %v3191_v31 = vmul.f32 %v3789_v21, %v3172_v63  ;;  %v3206_v33 = vrot.slane %v3199_v30, %v5707_v11 }
0x1db4   :  { %v3193_v36 = vsel %vm55_vm0, %v3191_v31, 0.0  ;;  %v3225_v38 = vmul.f32 %v3789_v21, %v3206_v33 }
0x1db5   :  { %3194 = vadd.xlane.f32.xlu0 %v3193_v36 }
0x1db6   :  { %v3227_v39 = vsel %vm55_vm0, %v3225_v38, 0.0 }
0x1db9   :  { %3228 = vadd.xlane.f32.xlu0 %v3227_v39 }
0x1dcf   :  { %3237 = vbcast.lane.b32.xlu0 %v3234_v43, 256 }
0x1e38   :  { %v3198_v50 = vpop.xlane.xlu1 %3197 }
0x1e3c   :  { %v3232_v23 = vpop.xlane.xlu1 %3231 }
0x1e42   :  { %v3195_v47 = vpop.xlane.xlu0 %3194 }
0x1e46   :  { %v3229_v48 = vpop.xlane.xlu0 %3228 }
0x1e4a   :  { %v3238_v49 = vpop.permute.xlu0 %3237 }
0x1e4b   :  { %4731 = vrcp.f32 %v3238_v49 }
0x1e4c   :  { %4733 = vrcp.f32 %v3234_v43 }
0x1e55   :  { %v4732_v37 = vpop.eup %4731 }
0x1e56   :  { %v3241_v51 = vmul.f32 %v4732_v37, %v3195_v47  ;;  %v3242_v52 = vmul.f32 %v4732_v37, %v3198_v50  ;;  %v3243_v41 = vmul.f32 %v4732_v37, %v3229_v48  ;;  %v3244_v14 = vmul.f32 %v4732_v37, %v3232_v23  ;;  %v4734_v8 = vpop.eup %4733 }
0x1e58   :  { %v3245_v45 = vmul.f32 %v3241_v51, %v3241_v51  ;;  %v3246_v55 = vmul.f32 %v3242_v52, %v3242_v52 }
0x1e5a   :  { %v3247_v53 = vsub.f32 %v3243_v41, %v3245_v45  ;;  %v3248_v56 = vsub.f32 %v3244_v14, %v3246_v55 }
0x1e5c   :  { %3252 = vperm.xlu1 %4586, %v3247_v53  }
0x1e60   :  { %3255 = vperm.xlu1 %4586, %v3248_v56  }
0x1edb   :  { %v3253_v57 = vpop.permute.xlu1 %3252 }
0x1edc   :  { %v3260_v0 = vrot.slane %v3253_v57, %v5707_v11 }
0x1edf   :  { %v3256_v62 = vpop.permute.xlu1 %3255 }
0x1ee0   :  { %v3264_v1 = vrot.slane %v3256_v62, %v5707_v11 }
0x1ee2   :  { %v3265_v2 = vsel %vm3135_vm7, %v3264_v1, %v3260_v0 }
0x1ee3   :  { %v3267_v5 = vmul.f32 %v3265_v2, %v3234_v43 }
0x1ee5   :  { %v3268_v6 = vsub.f32 1.0, %v3267_v5  ;;  %v4749_v5 = vmov 1  }
0x1ee7   :  { %v3270_v10 = vmul.f32 %v4734_v8, %v3268_v6  ;;  %v4750_v8 = vmov 2   ;;  %v4752_v6 = vmov 4  }
0x1ee9   :  { %v3271_v9 = vmax.f32 %v3270_v10, 0.0  ;;  %v4754_v10 = vmov 6  }
0x1eeb   :  { %4735 = vrsqrt.f32 %v3271_v9  ;;  %vm3274_vm0 = vcmp.eq.f32.partialorder %v3271_v9, inf  ;;  %v3277_v17 = vand.u32 2147483648, %v3271_v9  ;;  %vm3276_vm15 = vcmp.eq.f32.partialorder %v3271_v9, 0.0 }
0x1ef5   :  { %v4736_v12 = vpop.eup %4735 }
0x1ef6   :  { %v3273_v16 = vmul.f32 %v4736_v12, %v3271_v9 }
0x1ef8   :  { %v3275_v18 = vsel %vm3274_vm0, %v3271_v9, %v3273_v16  ;;  %v4755_v9 = vmov 7  }
0x1ef9   :  { %v3278_v20 = vsel %vm3276_vm15, %v3277_v17, %v3275_v18 }
0x1efa   :  { %v3290_v21 = vrot.slane %v3278_v20, %v5601_v60  ;;  %v3283_v22 = vrot.slane %v3278_v20, %v5598_v59 }
0x1efc   :  { %3292 = vbcast.lane.b32.xlu1 %v3290_v21, 256  ;;  %3285 = vbcast.lane.b32.xlu0 %v3283_v22, 256 }
0x1f6e   :  { %v3293_v24 = vpop.permute.xlu1 %3292  ;;  %v3286_v32 = vpop.permute.xlu0 %3285 }
0x1f6f   :  { %v3297_v25 = vsub.f32 %v3242_v52, %v3293_v24  ;;  %v3296_v26 = vsub.f32 %v3241_v51, %v3286_v32 }
0x1f71   :  { %vm3299_vm3 = vcmp.le.f32.partialorder %v3297_v25, %v5743_v13  ;;  %vm3298_vm4 = vcmp.le.f32.partialorder %v3296_v26, %v3160_v58 }
0x1f72   :  { %v3301_v15 = vsel %vm3299_vm3, 1, %v4747_v34  ;;  %v3300_v28 = vsel %vm3298_vm4, 1, %v4747_v34 }
0x1f73   :  { %3306 = vperm.xlu1 %4586, %v3301_v15   ;;  %3303 = vperm.xlu0 %4587, %v3300_v28  }
0x1ff2   :  { %v3307_v63 = vpop.permute.xlu1 %3306  ;;  %v3304_v30 = vpop.permute.xlu0 %3303 }
0x1ff3   :  { %v3315_v31 = vrot.slane %v3307_v63, %v5707_v11  ;;  %v3311_v33 = vrot.slane %v3304_v30, %v5707_v11 }
0x1ff5   :  { %v3316_v36 = vsel %vm3135_vm7, %v3315_v31, %v3311_v33 }
0x1ff6   :  { %v3317_v38 = vsel %vm2809_vm5, %v3316_v36, 0 }
0x1ff7   :  { %v3319_v39 = vshrl.u32 %v3317_v38, 16  ;;  %v3318_v40 = vand.u32 65535, %v3317_v38 }
0x1ff9   :  { %v3321_v13 = vcvt.s32.f32 %v3319_v39  ;;  %v3320_v58 = vcvt.s32.f32 %v3318_v40 }
0x1ffb   :  { %3324 = vadd.xlane.f32.xlu0 %v3321_v13  ;;  %3322 = vadd.xlane.f32.xlu1 %v3320_v58 }
0x2088   :  { %v3325_v43 = vpop.xlane.xlu0 %3324  ;;  %v3323_v34 = vpop.xlane.xlu1 %3322 }
0x2089   :  { %v3327_v47 = vcvt.f32.s32 %v3325_v43  ;;  %v3326_v49 = vcvt.f32.s32 %v3323_v34 }
0x208b   :  { %v3328_v48 = vshll.u32 %v3327_v47, 16 }
0x208d   :  { %v3329_v37 = vadd.s32 %v3328_v48, %v3326_v49 }
0x208f   :  { %v3790_v50 = vadd.s32 4294967295, %v3329_v37 }
0x2091   :  { %vm3331_vm6 = vcmp.eq.s32.totalorder %v5631_v44, %v3790_v50 }
0x2092   :  { %v3791_v51 = vsel %vm3331_vm6, 1.0, %v4743_v4 }
0x2093   :  { %v3345_v52 = vrot.slane %v3791_v51, %v5601_v60  ;;  %v3338_v41 = vrot.slane %v3791_v51, %v5598_v59  ;;  %v37_v51 = vld [vmem:[%s5870_s2 + $0x70] sm:$0xff] }
0x2095   :  { %3347 = vbcast.lane.b32.xlu1 %v3345_v52, 256  ;;  %3340 = vbcast.lane.b32.xlu0 %v3338_v41, 256  ;;  %v38_v52 = vld [vmem:[%s5870_s2 + $0x78] sm:$0xff]  ;;  %v39_v41 = vld [vmem:[%s5870_s2 + $0x80] sm:$0xff] }
0x2107   :  { %v3348_v45 = vpop.permute.xlu1 %3347  ;;  %v3341_v53 = vpop.permute.xlu0 %3340 }
0x2108   :  { %v3352_v55 = vmul.f32 %v3348_v45, %v3297_v25  ;;  %v3351_v23 = vmul.f32 %v3341_v53, %v3296_v26  ;;  %v4515_v45 = vpack.c.bf16 %v38_v52, %v37_v51  ;;  %v40_v53 = vld [vmem:[%s5870_s2 + $0x88] sm:$0xff] }
0x210a   :  { %3359 = vperm.xlu1 %4586, %v3352_v55   ;;  %3356 = vperm.xlu0 %4587, %v3351_v23   ;;  %v4518_v55 = vpack.c.bf16 %v40_v53, %v39_v41  ;;  %v41_v23 = vld [vmem:[%s5870_s2 + $0x90] sm:$0xff] }
0x210b   :  { %4516 = vmatpush3.bf16.msra.mxu0 %v4515_v45 }
0x210c   :  { %4517 = vmatprep.subr.bf16.mxu0 %v4741_v3 }
0x210f   :  { %4519 = vmatpush3.bf16.msra.mxu0 %v4518_v55 }
0x2110   :  { %4520 = vmatprep.subr.bf16.mxu0 %v4741_v3 }
0x2189   :  { %v3360_v14 = vpop.permute.xlu1 %3359  ;;  %v3357_v56 = vpop.permute.xlu0 %3356 }
0x218a   :  { %v3368_v57 = vrot.slane %v3360_v14, %v5707_v11  ;;  %v3364_v44 = vrot.slane %v3357_v56, %v5707_v11  ;;  %v4751_v11 = vmov 3   ;;  %v42_v14 = vld [vmem:[%s5870_s2 + $0x98] sm:$0x1] }
0x218b   :  { %v4521_v56 = vpack.c.bf16 %v42_v14, %v41_v23 }
0x218c   :  { %v3369_v62 = vsel %vm3135_vm7, %v3368_v57, %v3364_v44  ;;  %vm3486_vm7 = vcmask 1040384   ;;  %v43_v44 = vld [vmem:[%s5870_s2 + $0xa0] sm:$0xff] }
0x218d   :  { %v3371_v60 = vsel %vm2809_vm5, %v3369_v62, 0.0  ;;  %vm3439_vm5 = vcmask 517120   ;;  %vm4522_vm9 = vmpackc.low %vm3486_vm7, %vm4756_vm8  ;;  %v44_v62 = vld [vmem:[%s5870_s2 + $0xa8] sm:$0xff] }
0x218e   :  { %3372 = vadd.xlane.f32.xlu0 %v3371_v60  ;;  %4523 = vmatpush3.bf16.msk.msra.mxu0 %vm4522_vm9, %v4521_v56 }
0x218f   :  { %4530 = vmatprep.subr.bf16.mxu0 %v4741_v3 }
0x221b   :  { %v3373_v59 = vpop.xlane.xlu0 %3372 }
0x221c   :  { %v3374_v0 = vsub.f32 %v5623_v29, %v3373_v59  ;;  %v4753_v29 = vmov 5   ;;  %v4525_v59 = vpack.c.bf16 %v44_v62, %v43_v44 }
0x221e   :  { %v3375_v1 = vmax.f32 %v3374_v0, 0.0  ;;  %4526 = vmatpush3.bf16.msra.mxu1 %v4525_v59 }
0x221f   :  { %4527 = vmatprep.subr.bf16.mxu1 %v4741_v3  ;;  %v45_v3 = vld [vmem:[%s5870_s2 + $0xb0] sm:$0xff] }
0x2220   :  { %v5779_v2 = vmul.f32 %v3375_v1, %v3375_v1 }
0x2222   :  { %3379 = vperm.xlu1 %4586, %v5779_v2  }
0x2226   :  { %4588 = vset.pattern.permute.xlu1 %v4749_v5 }
0x2227   :  { %3385 = vperm.xlu1 %4588, %v5779_v2  }
0x222b   :  { %4589 = vset.pattern.permute.xlu1 %v4750_v8  ;;  %v3468_v8 = vld [vmem:[%s5873_s1] sm:$0x3] }
0x222c   :  { %3391 = vperm.xlu1 %4589, %v5779_v2  }
0x2230   :  { %4590 = vset.pattern.permute.xlu1 %v4751_v11 }
0x2231   :  { %3397 = vperm.xlu1 %4590, %v5779_v2  }
0x2235   :  { %4591 = vset.pattern.permute.xlu1 %v4752_v6 }
0x2236   :  { %3403 = vperm.xlu1 %4591, %v5779_v2  }
0x223a   :  { %4592 = vset.pattern.permute.xlu1 %v4753_v29  ;;  %v46_v29 = vld [vmem:[%s5870_s2 + $0xb8] sm:$0xff] }
0x223b   :  { %3409 = vperm.xlu1 %4592, %v5779_v2  }
0x223f   :  { %4593 = vset.pattern.permute.xlu1 %v4754_v10  ;;  %v4528_v10 = vpack.c.bf16 %v46_v29, %v45_v3 }
0x2240   :  { %3415 = vperm.xlu1 %4593, %v5779_v2  }
0x2241   :  { %4529 = vmatpush3.bf16.msra.mxu1 %v4528_v10 }
0x2244   :  { %4594 = vset.pattern.permute.xlu1 %v4755_v9 }
0x2245   :  { %3421 = vperm.xlu1 %4594, %v5779_v2  }
0x2249   :  { %3430 = vrot.lane.b32.xlu1 %v5573_v42, %s4745_s5 }
0x22a1   :  { %v3380_v12 = vpop.permute.xlu1 %3379 }
0x22a2   :  { %v3382_v22 = vmul.f32 %v3380_v12, %v4919_v19 }
0x22a6   :  { %v3386_v16 = vpop.permute.xlu1 %3385 }
0x22a7   :  { %v3388_v21 = vmul.f32 %v3386_v16, %v4964_v61 }
0x22a9   :  { %v3389_v25 = vadd.f32 %v3388_v21, %v3382_v22  ;;  %v3798_v21 = vld [vmem:[%s5870_s2 + $0x6c] ss:$0 sm:$0xff] }
0x22ab   :  { %v3392_v17 = vpop.permute.xlu1 %3391 }
0x22ac   :  { %v3394_v24 = vmul.f32 %v3392_v17, %v5006_v46 }
0x22ae   :  { %v3395_v15 = vadd.f32 %v3394_v24, %v3389_v25 }
0x22b0   :  { %v3398_v18 = vpop.permute.xlu1 %3397 }
0x22b1   :  { %v3400_v26 = vmul.f32 %v3398_v18, %v5048_v27  ;;  %v3792_v27 = vld [vmem:[%s5870_s2 + $0x6e] ss:$0 sm:$0xff] }
0x22b2   :  { %v48_v18 = vld [vmem:[%s5870_s2 + $0xc8] sm:$0xff] }
0x22b3   :  { %v3401_v63 = vadd.f32 %v3400_v26, %v3395_v15  ;;  %v3800_v26 = vld [vmem:[%s5870_s2 + $0x6d] ss:$0 sm:$0xff] }
0x22b5   :  { %v3404_v20 = vpop.permute.xlu1 %3403 }
0x22b6   :  { %v3406_v28 = vmul.f32 %v3404_v20, %v5090_v7 }
0x22b8   :  { %v3407_v33 = vadd.f32 %v3406_v28, %v3401_v63 }
0x22ba   :  { %v3410_v32 = vpop.permute.xlu1 %3409 }
0x22bb   :  { %v3412_v30 = vmul.f32 %v3410_v32, %v5135_v54 }
0x22bd   :  { %v3413_v38 = vadd.f32 %v3412_v30, %v3407_v33 }
0x22bf   :  { %v3416_v31 = vpop.permute.xlu1 %3415 }
0x22c0   :  { %v3418_v36 = vmul.f32 %v3416_v31, %v5164_v35  ;;  %v3793_v35 = vld [vmem:[%s5870_s2 + $0x6a] ss:$0 sm:$0xff] }
0x22c2   :  { %v3419_v39 = vadd.f32 %v3418_v36, %v3413_v38 }
0x22c4   :  { %v3422_v61 = vpop.permute.xlu1 %3421 }
0x22c5   :  { %v3424_v19 = vmul.f32 %v3422_v61, %v5573_v42 }
0x22c7   :  { %v3425_v46 = vadd.f32 %v3424_v19, %v3419_v39 }
0x22c8   :  { %v3431_v7 = vpop.permute.xlu1 %3430 }
0x22c9   :  { %3427 = vrot.lane.b32.xlu0 %v3425_v46, %s4744_s30 }
0x233b   :  { %v3428_v40 = vpop.permute.xlu0 %3427 }
0x233c   :  { %v3433_v54 = vsel %vm141_vm2, %v3428_v40, %v3431_v7 }
0x233d   :  { %v3438_v13 = vmul.f32 %v3792_v27, %v3433_v54 }
0x233f   :  { %v3440_v58 = vsel %vm3439_vm5, %v3438_v13, 0.0 }
0x2340   :  { %3441 = vadd.xlane.f32.xlu1 %v3440_v58 }
0x23cd   :  { %v3442_v43 = vpop.xlane.xlu1 %3441 }
0x23ce   :  { %v3447_v34 = vadd.f32 %v3793_v35, %v3442_v43 }
0x23d0   :  { %v3794_v47 = vmul.f32 -1.442695, %v3447_v34 }
0x23d2   :  { %4737 = vpow2.f32 %v3794_v47 }
0x23dc   :  { %v4738_v48 = vpop.eup %4737 }
0x23dd   :  { %v3451_v49 = vadd.f32 1.0, %v4738_v48 }
0x23df   :  { %4739 = vrcp.f32 %v3451_v49 }
0x23e9   :  { %v4740_v37 = vpop.eup %4739 }
0x23ea   :  { %3456 = vperm.xlu0 %4587, %v4740_v37   ;;  %v3460_v50 = vsub.f32 1.0, %v4740_v37 }
0x23ee   :  { %3463 = vperm.xlu0 %4587, %v3460_v50  }
0x2469   :  { %v3457_v57 = vpop.permute.xlu0 %3456 }
0x246a   :  { %v3459_v0 = vmul.f32 %v3457_v57, %v3425_v46 }
0x246d   :  { %v3464_v60 = vpop.permute.xlu0 %3463 }
0x246e   :  { %v3466_v1 = vmul.f32 %v3464_v60, %v5573_v42 }
0x2470   :  { %v3467_v5 = vadd.f32 %v3466_v1, %v3459_v0 }
0x2472   :  { %3470 = vrot.lane.b32.xlu0 %v3467_v5, %s4744_s30 }
0x2476   :  { %3474 = vrot.lane.b32.xlu0 %v3468_v8, %s4746_s29 }
0x247a   :  { %3717 = vrot.lane.b32.xlu0 %v5779_v2, %s4757_s12  ;;  %v3795_v2 = vld [vmem:[%s5870_s2 + $0x6b] ss:$0 sm:$0xff] }
0x24e4   :  { %v3471_v11 = vpop.permute.xlu0 %3470 }
0x24e8   :  { %v3475_v6 = vpop.permute.xlu0 %3474 }
0x24e9   :  { %v3477_v42 = vsel %vm141_vm2, %v3471_v11, %v3475_v6 }
0x24ea   :  { %4222 = vmatmul.mubr.msk.f32.vlgmr.msra.gmra.mrb[20].mxu0 %vm3482_vm10, %v3477_v42 }
0x24eb   :  { %4239 = vmatprep.mubr.msk.f32.mxu0 %vm4742_vm1, %v4743_v4  ;;  %v47_v4 = vld [vmem:[%s5870_s2 + $0xc0] sm:$0xff]  ;;  %vm3643_vm1 = vcmask 130048  }
0x24ec   :  { %v4531_v20 = vpack.c.bf16 %v48_v18, %v47_v4  ;;  %v3718_v30 = vpop.permute.xlu0 %3717 }
0x24ee   :  { %4532 = vmatpush3.bf16.msra.mxu0 %v4531_v20 }
0x25bd   :  { %v3556_v9 = vpop.f32.mrb[20].mxu0 }
0x25be   :  { %v3557_v12 = vadd.f32 %v3795_v2, %v3556_v9  ;;  %v4223_v16 = vpop.f32.mrb[21].mxu0 }
0x25c0   :  { %v3560_v17 = vmax.f32 %v3557_v12, 0.0 }
0x25c2   :  { %4233 = vmatmul.mubr.msk.f32.vlgmr.msra.gmra.mrb[20].mxu1 %vm141_vm2, %v3560_v17  ;;  %vm3720_vm2 = vcmask 113664  }
0x2695   :  { %v3634_v22 = vpop.f32.mrb[20].mxu1 }
0x2696   :  { %v3635_v24 = vadd.f32 %v3798_v21, %v3634_v22  ;;  %v4234_v32 = vpop.f32.mrb[21].mxu1 }
0x2698   :  { %v3638_v25 = vmax.f32 %v3635_v24, 0.0 }
0x269a   :  { %4240 = vmatmul.mubr.msk.f32.vlgmr.msra.gmra.mrb[22].mxu0 %vm3643_vm1, %v3638_v25 }
0x276d   :  { %v3713_v15 = vpop.f32.mrb[22].mxu0 }
0x276e   :  { %v3714_v28 = vadd.f32 %v3800_v26, %v3713_v15  ;;  %v4241_v63 = vpop.f32.mrb[23].mxu0 }
0x2770   :  { %v3721_v31 = vsel %vm3720_vm2, %v3714_v28, 0.0 }
0x2771   :  { %v3722_v33 = vsel %vm3643_vm1, %v3721_v31, %v3718_v30 }
0x2772   :  { %v3724_v36 = vsel %vm3723_vm11, %v3722_v33, 0.0 }
0x2773   :  { %3725 = vst [vmem:[%s5874_s4] sm:$0x3] %v3724_v36 }

</bundles_post_ra>
